<compile_context>
chip_gen: v5e
topology: v5e:2x2
jax: 0.10.0
libtpu: 0.0.40
codegen_flags: <defaults>
</compile_context>

<pallas_src>
import functools

import jax
import jax.numpy as jnp
from jax.experimental import pallas as pl
from jax.experimental.pallas import tpu as pltpu

KSIZE = 7
PAD = 3  # (KSIZE - 1) // 2 -> "same" conv


def _round_up(n, m):
    return ((n + m - 1) // m) * m


def _largest_divisor_leq(n, target):
    target = max(1, min(n, target))
    for d in range(target, 0, -1):
        if n % d == 0:
            return d
    return 1


def _vmem_limits():
    """Returns (vmem_limit_bytes cap, byte budget for the 4x-buffered blocks)."""
    try:
        cap = int(pltpu.get_tpu_info().vmem_capacity_bytes)
    except Exception:  # be robust if the query is unavailable
        cap = 64 << 20  # conservative: v7x per-TensorCore VMEM
    limit = min((cap * 3) // 4, 96 << 20)     # ~48 MiB on v7x, ~96 MiB v5e/v6e
    block_budget = max(4 << 20, limit - (8 << 20))  # headroom for scratch etc.
    return limit, block_budget


def _pick_block_n(N, C, HW, itemsize, block_budget):
    """Largest batch block NB<=8 whose double-buffered in+out blocks fit the
    budget, preferring an even (or single) grid step count (v7x balance)."""
    per = 4 * C * HW * itemsize  # 2x(in) + 2x(out) buffers per batch element
    feasible = [d for d in range(1, min(N, 8) + 1)
                if N % d == 0 and d * per <= block_budget]
    if not feasible:
        return 1
    good = [d for d in feasible if (N // d) % 2 == 0 or N // d == 1]
    return max(good) if good else max(feasible)


def _pick_c_chunk(C, HW, q):
    """Full-sublane C chunk (~<=128 KiB of f32) dividing C."""
    budget_elems = max(q, (128 * 1024) // (HW * 4))
    best = 0
    for d in range(1, C + 1):
        if C % d:
            continue
        if d <= budget_elems and (d % q == 0 or d == C):
            best = max(best, d)
    if best == 0:
        best = _largest_divisor_leq(C, budget_elems)
    return best


def sam_kernel(w_ref, x_ref, o_ref, mxmap_ref, avmap_ref, attn_ref, *,
               C, W, HW, LP, NB, C_CHUNK, RS):
    # w_ref    : SMEM (98,) f32   — flattened conv weight (out=1, in=2, 7, 7)
    # x_ref    : VMEM (NB, C, HW) — lane-dense batch block
    # o_ref    : VMEM (NB, C, HW)
    # mxmap_ref/avmap_ref/attn_ref : VMEM (NB, LP) f32 scratch
    f32 = jnp.float32
    n_chunks = C // C_CHUNK
    inv_c = f32(1.0 / C)

    # ---- hoisted constants (once per grid step) ----
    lane = jax.lax.broadcasted_iota(jnp.int32, (1, LP), 1)
    # Column index for data lanes; large-negative sentinel on the zero tail so
    # every dw!=0 mask forces tail positions to zero (robust wraparound).
    col = jnp.where(lane < HW, lane % W, -(1 << 20))
    fmask = {}
    for kw in range(KSIZE):
        dw = kw - PAD
        if dw != 0:
            fmask[kw] = jnp.logical_and(col >= -dw, col < W - dw).astype(f32)
    zero_tail = jnp.zeros((1, LP - HW), f32)

    # ---- Phase 1: per-batch channel max / mean -> zero-tailed (1, LP) rows
    #      of the sublane-batched conv-input maps ----
    for b in range(NB):
        if n_chunks == 1:
            ch = x_ref[b, :, :].astype(f32)                       # (C, HW)
            mx = jnp.max(ch, axis=0, keepdims=True)
            sm = jnp.sum(ch, axis=0, keepdims=True)
        else:
            if RS > 1:
                # Elementwise (RS, HW) running max/sum; one cross-sublane
                # reduce per batch element at the end.
                def fold(ci, carry, b=b):
                    m, s = carry
                    c0 = pl.multiple_of(ci * C_CHUNK, C_CHUNK)
                    for j in range(C_CHUNK // RS):
                        blk = x_ref[b, pl.ds(c0 + j * RS, RS), :].astype(f32)
                        m = jnp.maximum(m, blk)
                        s = s + blk
                    return m, s
            else:
                # Large HW: per-chunk cross-sublane reduce, (1, HW) carries.
                def fold(ci, carry, b=b):
                    m, s = carry
                    c0 = pl.multiple_of(ci * C_CHUNK, C_CHUNK)
                    chk = x_ref[b, pl.ds(c0, C_CHUNK), :].astype(f32)
                    m = jnp.maximum(m, jnp.max(chk, axis=0, keepdims=True))
                    s = s + jnp.sum(chk, axis=0, keepdims=True)
                    return m, s
            m0 = jnp.full((RS, HW), -jnp.inf, f32)
            s0 = jnp.zeros((RS, HW), f32)
            m, s = jax.lax.fori_loop(0, n_chunks, fold, (m0, s0))
            if RS > 1:
                mx = jnp.max(m, axis=0, keepdims=True)
                sm = jnp.sum(s, axis=0, keepdims=True)
            else:
                mx, sm = m, s
        mxmap_ref[pl.ds(b, 1), :] = jnp.concatenate([mx, zero_tail], axis=1)
        avmap_ref[pl.ds(b, 1), :] = jnp.concatenate(
            [sm * inv_c, zero_tail], axis=1)

    # ---- Phase 2: 7x7 same-conv (2 -> 1 ch), sublane-batched over NB.
    #      Each tap = static pltpu.roll (XLU) + scalar-weight FMA; per-kw
    #      column masks (hoisted) zero taps that crossed a row edge. ----
    mxm = mxmap_ref[...]                                          # (NB, LP)
    avm = avmap_ref[...]
    accs = [jnp.zeros((NB, LP), f32) for _ in range(4)]
    tap = 0
    for kw in range(KSIZE):
        dw = kw - PAD
        if dw == 0:
            hmx, hav = mxm, avm
        else:
            sh = (-dw) % LP
            hmx = pltpu.roll(mxm, shift=sh, axis=1) * fmask[kw]
            hav = pltpu.roll(avm, shift=sh, axis=1) * fmask[kw]
        for kh in range(KSIZE):
            dh = kh - PAD
            if dh == 0:
                vmx, vav = hmx, hav
            else:
                sh = (-dh * W) % LP
                vmx = pltpu.roll(hmx, shift=sh, axis=1)
                vav = pltpu.roll(hav, shift=sh, axis=1)
            w_mx = w_ref[kh * KSIZE + kw]
            w_av = w_ref[KSIZE * KSIZE + kh * KSIZE + kw]
            accs[tap % 4] = accs[tap % 4] + w_mx * vmx + w_av * vav
            tap += 1
    conv = (accs[0] + accs[1]) + (accs[2] + accs[3])
    attn_ref[...] = jax.nn.sigmoid(conv)          # tail lanes are don't-care

    # ---- Phase 3: attention * x (f32 multiply), chunked over C,
    #      lane-dense unmasked stores ----
    for b in range(NB):
        a_b = attn_ref[pl.ds(b, 1), pl.ds(0, HW)]                 # (1, HW) f32
        if n_chunks == 1:
            o_ref[b, :, :] = (x_ref[b, :, :].astype(f32) *
                              a_b).astype(o_ref.dtype)
        else:
            def mul_chunk(ci, carry, b=b, a_b=a_b):
                c0 = pl.multiple_of(ci * C_CHUNK, C_CHUNK)
                xb = x_ref[b, pl.ds(c0, C_CHUNK), :].astype(f32)
                o_ref[b, pl.ds(c0, C_CHUNK), :] = (xb * a_b).astype(o_ref.dtype)
                return carry
            jax.lax.fori_loop(0, n_chunks, mul_chunk, 0)


def sam_forward(x, weight):
    """x: (N, C, H, W); weight: (1, 2, 7, 7) (Conv2d 7x7, pad 3, bias=False)."""
    N, C, H, W = x.shape
    HW = H * W
    LP = _round_up(HW + 3 * W, 128)                  # 128-aligned, tail >= 3*W
    itemsize = x.dtype.itemsize
    q = 8 if itemsize >= 4 else (16 if itemsize == 2 else 32)
    C_CHUNK = _pick_c_chunk(C, HW, q)
    # (RS, HW) elementwise-fold carries only while they stay vreg-friendly.
    RS = q if (C_CHUNK % q == 0 and 2 * q * HW * 4 <= 64 * 1024) else 1
    limit, block_budget = _vmem_limits()
    NB = _pick_block_n(N, C, HW, itemsize, block_budget)

    x_flat = x.reshape(N, C, HW)                     # contiguous, free
    w_flat = weight.astype(jnp.float32).reshape(-1)  # (98,) scalar-prefetch

    kernel = functools.partial(
        sam_kernel, C=C, W=W, HW=HW, LP=LP, NB=NB, C_CHUNK=C_CHUNK, RS=RS)

    block_bytes = NB * C * HW * itemsize
    scratch_bytes = 3 * NB * LP * 4
    vmem_need = 4 * block_bytes + scratch_bytes + (4 << 20)
    cparams = pltpu.CompilerParams(
        dimension_semantics=("parallel",),
        vmem_limit_bytes=int(max(16 << 20, min(vmem_need, limit))),
    )
    cost = pl.CostEstimate(
        flops=int(N * (3 * C * HW + 4 * KSIZE * KSIZE * HW)),
        transcendentals=int(N * HW),
        bytes_accessed=int(2 * N * C * HW * itemsize + 2 * KSIZE * KSIZE * 4),
    )

    out_flat = pl.pallas_call(
        kernel,
        out_shape=jax.ShapeDtypeStruct((N, C, HW), x.dtype),
        grid_spec=pltpu.PrefetchScalarGridSpec(
            num_scalar_prefetch=1,
            grid=(N // NB,),
            in_specs=[pl.BlockSpec((NB, C, HW), lambda b, w: (b, 0, 0))],
            out_specs=pl.BlockSpec((NB, C, HW), lambda b, w: (b, 0, 0)),
            scratch_shapes=[
                pltpu.VMEM((NB, LP), jnp.float32),   # channel-max map
                pltpu.VMEM((NB, LP), jnp.float32),   # channel-avg map
                pltpu.VMEM((NB, LP), jnp.float32),   # sigmoid(conv) attention
            ],
        ),
        compiler_params=cparams,
        cost_estimate=cost,
    )(w_flat, x_flat)
    return out_flat.reshape(N, C, H, W)


def sam_reference(x, weight):
    """Pure-JAX reference matching the PyTorch forward (for verification)."""
    mx = jnp.max(x, axis=1, keepdims=True)
    av = jnp.mean(x, axis=1, keepdims=True)
    concat = jnp.concatenate([mx, av], axis=1)          # (N, 2, H, W)
    conv = jax.lax.conv_general_dilated(
        concat, weight, window_strides=(1, 1),
        padding=((PAD, PAD), (PAD, PAD)),
        dimension_numbers=("NCHW", "OIHW", "NCHW"))
    return jax.nn.sigmoid(conv) * x


if __name__ == "__main__":
    key = jax.random.PRNGKey(0)
    kx, kw = jax.random.split(key)

    N, C, H, W = 2, 4, 16, 16
    x = jax.random.normal(kx, (N, C, H, W), dtype=jnp.float32)
    # Deterministic synthetic conv weight: shape (out=1, in=2, 7, 7), bias=False.
    weight = (jax.random.normal(kw, (1, 2, KSIZE, KSIZE), dtype=jnp.float32)
              * 0.05)

    out = sam_forward(x, weight)
    out = jax.block_until_ready(out)

    ref = sam_reference(x, weight)
    assert out.shape == (N, C, H, W)
    assert jnp.allclose(out, ref, atol=1e-5, rtol=1e-5), (
        float(jnp.max(jnp.abs(out - ref))))

    print("KERNEL_OK")
</pallas_src>

<mosaic_0001>
module attributes {stable_mosaic.version = 11 : i64} {
  func.func @sam_kernel(%arg0: i32, %arg1: memref<98xf32, #tpu.memory_space<smem>>, %arg2: memref<2x4x256xf32, #tpu.memory_space<vmem>>, %arg3: memref<2x4x256xf32, #tpu.memory_space<vmem>>, %arg4: memref<2x384xf32, #tpu.memory_space<vmem>>, %arg5: memref<2x384xf32, #tpu.memory_space<vmem>>, %arg6: memref<2x384xf32, #tpu.memory_space<vmem>>) attributes {dimension_semantics = [#tpu.dimension_semantics<parallel>], iteration_bounds = array<i64: 1>, scalar_prefetch = 1 : i64, scratch_operands = 3 : i64, tpu.core_type = #tpu.core_type<tc>, window_params = [{transform_indices = @transform_0, window_bounds = array<i64: 2, 4, 256>}, {transform_indices = @transform_1, window_bounds = array<i64: 2, 4, 256>}]} {
    %0 = tpu.iota {dimensions = array<i32: 1>} : vector<1x384xi32>
    %c256_i32 = arith.constant 256 : i32
    %1 = vector.broadcast %c256_i32 : i32 to vector<1x384xi32>
    %2 = arith.cmpi slt, %0, %1 : vector<1x384xi32>
    %c16_i32 = arith.constant 16 : i32
    %c0_i32 = arith.constant 0 : i32
    %3 = arith.cmpi eq, %c16_i32, %c0_i32 : i32
    %c1_i32 = arith.constant 1 : i32
    %4 = arith.select %3, %c1_i32, %c16_i32 : i32
    %5 = vector.broadcast %4 : i32 to vector<1x384xi32>
    %6 = arith.remsi %0, %5 : vector<1x384xi32>
    %c0_i32_0 = arith.constant 0 : i32
    %7 = vector.broadcast %c0_i32_0 : i32 to vector<1x384xi32>
    %8 = arith.cmpi ne, %6, %7 : vector<1x384xi32>
    %c0_i32_1 = arith.constant 0 : i32
    %9 = vector.broadcast %c0_i32_1 : i32 to vector<1x384xi32>
    %10 = arith.cmpi slt, %6, %9 : vector<1x384xi32>
    %c0_i32_2 = arith.constant 0 : i32
    %11 = arith.cmpi slt, %4, %c0_i32_2 : i32
    %12 = vector.broadcast %11 : i1 to vector<1x384xi1>
    %13 = vector.broadcast %12 : vector<1x384xi1> to vector<1x384xi1>
    %14 = arith.xori %10, %13 : vector<1x384xi1>
    %15 = arith.andi %14, %8 : vector<1x384xi1>
    %16 = vector.broadcast %4 : i32 to vector<1x384xi32>
    %17 = arith.addi %6, %16 : vector<1x384xi32>
    %18 = arith.select %15, %17, %6 : vector<1x384xi1>, vector<1x384xi32>
    %c-1048576_i32 = arith.constant -1048576 : i32
    %19 = vector.broadcast %c-1048576_i32 : i32 to vector<1x384xi32>
    %20 = arith.select %2, %18, %19 : vector<1x384xi1>, vector<1x384xi32>
    %c3_i32 = arith.constant 3 : i32
    %21 = vector.broadcast %c3_i32 : i32 to vector<1x384xi32>
    %22 = arith.cmpi sge, %20, %21 : vector<1x384xi32>
    %c19_i32 = arith.constant 19 : i32
    %23 = vector.broadcast %c19_i32 : i32 to vector<1x384xi32>
    %24 = arith.cmpi slt, %20, %23 : vector<1x384xi32>
    %25 = arith.andi %22, %24 : vector<1x384xi1>
    %26 = arith.extui %25 : vector<1x384xi1> to vector<1x384xi32>
    %27 = arith.sitofp %26 : vector<1x384xi32> to vector<1x384xf32>
    %c2_i32 = arith.constant 2 : i32
    %28 = vector.broadcast %c2_i32 : i32 to vector<1x384xi32>
    %29 = arith.cmpi sge, %20, %28 : vector<1x384xi32>
    %c18_i32 = arith.constant 18 : i32
    %30 = vector.broadcast %c18_i32 : i32 to vector<1x384xi32>
    %31 = arith.cmpi slt, %20, %30 : vector<1x384xi32>
    %32 = arith.andi %29, %31 : vector<1x384xi1>
    %33 = arith.extui %32 : vector<1x384xi1> to vector<1x384xi32>
    %34 = arith.sitofp %33 : vector<1x384xi32> to vector<1x384xf32>
    %c1_i32_3 = arith.constant 1 : i32
    %35 = vector.broadcast %c1_i32_3 : i32 to vector<1x384xi32>
    %36 = arith.cmpi sge, %20, %35 : vector<1x384xi32>
    %c17_i32 = arith.constant 17 : i32
    %37 = vector.broadcast %c17_i32 : i32 to vector<1x384xi32>
    %38 = arith.cmpi slt, %20, %37 : vector<1x384xi32>
    %39 = arith.andi %36, %38 : vector<1x384xi1>
    %40 = arith.extui %39 : vector<1x384xi1> to vector<1x384xi32>
    %41 = arith.sitofp %40 : vector<1x384xi32> to vector<1x384xf32>
    %c-1_i32 = arith.constant -1 : i32
    %42 = vector.broadcast %c-1_i32 : i32 to vector<1x384xi32>
    %43 = arith.cmpi sge, %20, %42 : vector<1x384xi32>
    %c15_i32 = arith.constant 15 : i32
    %44 = vector.broadcast %c15_i32 : i32 to vector<1x384xi32>
    %45 = arith.cmpi slt, %20, %44 : vector<1x384xi32>
    %46 = arith.andi %43, %45 : vector<1x384xi1>
    %47 = arith.extui %46 : vector<1x384xi1> to vector<1x384xi32>
    %48 = arith.sitofp %47 : vector<1x384xi32> to vector<1x384xf32>
    %c-2_i32 = arith.constant -2 : i32
    %49 = vector.broadcast %c-2_i32 : i32 to vector<1x384xi32>
    %50 = arith.cmpi sge, %20, %49 : vector<1x384xi32>
    %c14_i32 = arith.constant 14 : i32
    %51 = vector.broadcast %c14_i32 : i32 to vector<1x384xi32>
    %52 = arith.cmpi slt, %20, %51 : vector<1x384xi32>
    %53 = arith.andi %50, %52 : vector<1x384xi1>
    %54 = arith.extui %53 : vector<1x384xi1> to vector<1x384xi32>
    %55 = arith.sitofp %54 : vector<1x384xi32> to vector<1x384xf32>
    %c-3_i32 = arith.constant -3 : i32
    %56 = vector.broadcast %c-3_i32 : i32 to vector<1x384xi32>
    %57 = arith.cmpi sge, %20, %56 : vector<1x384xi32>
    %c13_i32 = arith.constant 13 : i32
    %58 = vector.broadcast %c13_i32 : i32 to vector<1x384xi32>
    %59 = arith.cmpi slt, %20, %58 : vector<1x384xi32>
    %60 = arith.andi %57, %59 : vector<1x384xi1>
    %61 = arith.extui %60 : vector<1x384xi1> to vector<1x384xi32>
    %62 = arith.sitofp %61 : vector<1x384xi32> to vector<1x384xf32>
    %cst = arith.constant 0.000000e+00 : f32
    %63 = vector.broadcast %cst : f32 to vector<1x128xf32>
    %c0 = arith.constant 0 : index
    %c0_4 = arith.constant 0 : index
    %c0_5 = arith.constant 0 : index
    %64 = vector.load %arg2[%c0, %c0_4, %c0_5] : memref<2x4x256xf32, #tpu.memory_space<vmem>>, vector<1x4x256xf32>
    %65 = vector.shape_cast %64 : vector<1x4x256xf32> to vector<4x256xf32>
    %cst_6 = arith.constant dense<0xFF800000> : vector<256xf32>
    %66 = vector.multi_reduction <maximumf>, %65, %cst_6 [0] : vector<4x256xf32> to vector<256xf32>
    %67 = vector.shape_cast %66 : vector<256xf32> to vector<1x256xf32>
    %cst_7 = arith.constant dense<0.000000e+00> : vector<256xf32>
    %68 = vector.multi_reduction <add>, %65, %cst_7 [0] : vector<4x256xf32> to vector<256xf32>
    %69 = vector.shape_cast %68 : vector<256xf32> to vector<1x256xf32>
    %70 = tpu.concatenate %67, %63 in 1 : vector<1x256xf32>, vector<1x128xf32> -> vector<1x384xf32>
    %c0_8 = arith.constant 0 : index
    %c0_9 = arith.constant 0 : index
    %71 = vector.load %arg4[%c0_8, %c0_9] : memref<2x384xf32, #tpu.memory_space<vmem>>, vector<1x384xf32>
    tpu.vector_store %arg4[%c0_8, %c0_9], %70 {strides = array<i32>} : memref<2x384xf32, #tpu.memory_space<vmem>>, vector<1x384xf32>,
    %cst_10 = arith.constant 2.500000e-01 : f32
    %72 = vector.broadcast %cst_10 : f32 to vector<1x256xf32>
    %73 = arith.mulf %69, %72 : vector<1x256xf32>
    %74 = tpu.concatenate %73, %63 in 1 : vector<1x256xf32>, vector<1x128xf32> -> vector<1x384xf32>
    %c0_11 = arith.constant 0 : index
    %c0_12 = arith.constant 0 : index
    %75 = vector.load %arg5[%c0_11, %c0_12] : memref<2x384xf32, #tpu.memory_space<vmem>>, vector<1x384xf32>
    tpu.vector_store %arg5[%c0_11, %c0_12], %74 {strides = array<i32>} : memref<2x384xf32, #tpu.memory_space<vmem>>, vector<1x384xf32>,
    %c1 = arith.constant 1 : index
    %c0_13 = arith.constant 0 : index
    %c0_14 = arith.constant 0 : index
    %76 = vector.load %arg2[%c1, %c0_13, %c0_14] : memref<2x4x256xf32, #tpu.memory_space<vmem>>, vector<1x4x256xf32>
    %77 = vector.shape_cast %76 : vector<1x4x256xf32> to vector<4x256xf32>
    %cst_15 = arith.constant dense<0xFF800000> : vector<256xf32>
    %78 = vector.multi_reduction <maximumf>, %77, %cst_15 [0] : vector<4x256xf32> to vector<256xf32>
    %79 = vector.shape_cast %78 : vector<256xf32> to vector<1x256xf32>
    %cst_16 = arith.constant dense<0.000000e+00> : vector<256xf32>
    %80 = vector.multi_reduction <add>, %77, %cst_16 [0] : vector<4x256xf32> to vector<256xf32>
    %81 = vector.shape_cast %80 : vector<256xf32> to vector<1x256xf32>
    %82 = tpu.concatenate %79, %63 in 1 : vector<1x256xf32>, vector<1x128xf32> -> vector<1x384xf32>
    %c1_17 = arith.constant 1 : index
    %c0_18 = arith.constant 0 : index
    %83 = vector.load %arg4[%c1_17, %c0_18] : memref<2x384xf32, #tpu.memory_space<vmem>>, vector<1x384xf32>
    tpu.vector_store %arg4[%c1_17, %c0_18], %82 {strides = array<i32>} : memref<2x384xf32, #tpu.memory_space<vmem>>, vector<1x384xf32>,
    %cst_19 = arith.constant 2.500000e-01 : f32
    %84 = vector.broadcast %cst_19 : f32 to vector<1x256xf32>
    %85 = arith.mulf %81, %84 : vector<1x256xf32>
    %86 = tpu.concatenate %85, %63 in 1 : vector<1x256xf32>, vector<1x128xf32> -> vector<1x384xf32>
    %c1_20 = arith.constant 1 : index
    %c0_21 = arith.constant 0 : index
    %87 = vector.load %arg5[%c1_20, %c0_21] : memref<2x384xf32, #tpu.memory_space<vmem>>, vector<1x384xf32>
    tpu.vector_store %arg5[%c1_20, %c0_21], %86 {strides = array<i32>} : memref<2x384xf32, #tpu.memory_space<vmem>>, vector<1x384xf32>,
    %c0_22 = arith.constant 0 : index
    %c0_23 = arith.constant 0 : index
    %88 = vector.load %arg4[%c0_22, %c0_23] : memref<2x384xf32, #tpu.memory_space<vmem>>, vector<2x384xf32>
    %c0_24 = arith.constant 0 : index
    %c0_25 = arith.constant 0 : index
    %89 = vector.load %arg5[%c0_24, %c0_25] : memref<2x384xf32, #tpu.memory_space<vmem>>, vector<2x384xf32>
    %cst_26 = arith.constant 0.000000e+00 : f32
    %90 = vector.broadcast %cst_26 : f32 to vector<2x384xf32>
    %cst_27 = arith.constant 0.000000e+00 : f32
    %91 = vector.broadcast %cst_27 : f32 to vector<2x384xf32>
    %cst_28 = arith.constant 0.000000e+00 : f32
    %92 = vector.broadcast %cst_28 : f32 to vector<2x384xf32>
    %cst_29 = arith.constant 0.000000e+00 : f32
    %93 = vector.broadcast %cst_29 : f32 to vector<2x384xf32>
    %c3_i32_30 = arith.constant 3 : i32
    %94 = tpu.dynamic_rotate %88 by %c3_i32_30 dim 1 : vector<2x384xf32>, i32 -> vector<2x384xf32>
    %95 = vector.broadcast %27 : vector<1x384xf32> to vector<2x384xf32>
    %96 = arith.mulf %94, %95 : vector<2x384xf32>
    %c3_i32_31 = arith.constant 3 : i32
    %97 = tpu.dynamic_rotate %89 by %c3_i32_31 dim 1 : vector<2x384xf32>, i32 -> vector<2x384xf32>
    %98 = vector.broadcast %27 : vector<1x384xf32> to vector<2x384xf32>
    %99 = arith.mulf %97, %98 : vector<2x384xf32>
    %c48_i32 = arith.constant 48 : i32
    %100 = tpu.dynamic_rotate %96 by %c48_i32 dim 1 : vector<2x384xf32>, i32 -> vector<2x384xf32>
    %c48_i32_32 = arith.constant 48 : i32
    %101 = tpu.dynamic_rotate %99 by %c48_i32_32 dim 1 : vector<2x384xf32>, i32 -> vector<2x384xf32>
    %c0_33 = arith.constant 0 : index
    %102 = memref.load %arg1[%c0_33] : memref<98xf32, #tpu.memory_space<smem>>
    %c49 = arith.constant 49 : index
    %103 = memref.load %arg1[%c49] : memref<98xf32, #tpu.memory_space<smem>>
    %104 = vector.broadcast %102 : f32 to vector<2x384xf32>
    %105 = arith.mulf %104, %100 : vector<2x384xf32>
    %106 = arith.addf %90, %105 : vector<2x384xf32>
    %107 = vector.broadcast %103 : f32 to vector<2x384xf32>
    %108 = arith.mulf %107, %101 : vector<2x384xf32>
    %109 = arith.addf %106, %108 : vector<2x384xf32>
    %c32_i32 = arith.constant 32 : i32
    %110 = tpu.dynamic_rotate %96 by %c32_i32 dim 1 : vector<2x384xf32>, i32 -> vector<2x384xf32>
    %c32_i32_34 = arith.constant 32 : i32
    %111 = tpu.dynamic_rotate %99 by %c32_i32_34 dim 1 : vector<2x384xf32>, i32 -> vector<2x384xf32>
    %c7 = arith.constant 7 : index
    %112 = memref.load %arg1[%c7] : memref<98xf32, #tpu.memory_space<smem>>
    %c56 = arith.constant 56 : index
    %113 = memref.load %arg1[%c56] : memref<98xf32, #tpu.memory_space<smem>>
    %114 = vector.broadcast %112 : f32 to vector<2x384xf32>
    %115 = arith.mulf %114, %110 : vector<2x384xf32>
    %116 = arith.addf %91, %115 : vector<2x384xf32>
    %117 = vector.broadcast %113 : f32 to vector<2x384xf32>
    %118 = arith.mulf %117, %111 : vector<2x384xf32>
    %119 = arith.addf %116, %118 : vector<2x384xf32>
    %c16_i32_35 = arith.constant 16 : i32
    %120 = tpu.dynamic_rotate %96 by %c16_i32_35 dim 1 : vector<2x384xf32>, i32 -> vector<2x384xf32>
    %c16_i32_36 = arith.constant 16 : i32
    %121 = tpu.dynamic_rotate %99 by %c16_i32_36 dim 1 : vector<2x384xf32>, i32 -> vector<2x384xf32>
    %c14 = arith.constant 14 : index
    %122 = memref.load %arg1[%c14] : memref<98xf32, #tpu.memory_space<smem>>
    %c63 = arith.constant 63 : index
    %123 = memref.load %arg1[%c63] : memref<98xf32, #tpu.memory_space<smem>>
    %124 = vector.broadcast %122 : f32 to vector<2x384xf32>
    %125 = arith.mulf %124, %120 : vector<2x384xf32>
    %126 = arith.addf %92, %125 : vector<2x384xf32>
    %127 = vector.broadcast %123 : f32 to vector<2x384xf32>
    %128 = arith.mulf %127, %121 : vector<2x384xf32>
    %129 = arith.addf %126, %128 : vector<2x384xf32>
    %c21 = arith.constant 21 : index
    %130 = memref.load %arg1[%c21] : memref<98xf32, #tpu.memory_space<smem>>
    %c70 = arith.constant 70 : index
    %131 = memref.load %arg1[%c70] : memref<98xf32, #tpu.memory_space<smem>>
    %132 = vector.broadcast %130 : f32 to vector<2x384xf32>
    %133 = arith.mulf %132, %96 : vector<2x384xf32>
    %134 = arith.addf %93, %133 : vector<2x384xf32>
    %135 = vector.broadcast %131 : f32 to vector<2x384xf32>
    %136 = arith.mulf %135, %99 : vector<2x384xf32>
    %137 = arith.addf %134, %136 : vector<2x384xf32>
    %c368_i32 = arith.constant 368 : i32
    %138 = tpu.dynamic_rotate %96 by %c368_i32 dim 1 : vector<2x384xf32>, i32 -> vector<2x384xf32>
    %c368_i32_37 = arith.constant 368 : i32
    %139 = tpu.dynamic_rotate %99 by %c368_i32_37 dim 1 : vector<2x384xf32>, i32 -> vector<2x384xf32>
    %c28 = arith.constant 28 : index
    %140 = memref.load %arg1[%c28] : memref<98xf32, #tpu.memory_space<smem>>
    %c77 = arith.constant 77 : index
    %141 = memref.load %arg1[%c77] : memref<98xf32, #tpu.memory_space<smem>>
    %142 = vector.broadcast %140 : f32 to vector<2x384xf32>
    %143 = arith.mulf %142, %138 : vector<2x384xf32>
    %144 = arith.addf %109, %143 : vector<2x384xf32>
    %145 = vector.broadcast %141 : f32 to vector<2x384xf32>
    %146 = arith.mulf %145, %139 : vector<2x384xf32>
    %147 = arith.addf %144, %146 : vector<2x384xf32>
    %c352_i32 = arith.constant 352 : i32
    %148 = tpu.dynamic_rotate %96 by %c352_i32 dim 1 : vector<2x384xf32>, i32 -> vector<2x384xf32>
    %c352_i32_38 = arith.constant 352 : i32
    %149 = tpu.dynamic_rotate %99 by %c352_i32_38 dim 1 : vector<2x384xf32>, i32 -> vector<2x384xf32>
    %c35 = arith.constant 35 : index
    %150 = memref.load %arg1[%c35] : memref<98xf32, #tpu.memory_space<smem>>
    %c84 = arith.constant 84 : index
    %151 = memref.load %arg1[%c84] : memref<98xf32, #tpu.memory_space<smem>>
    %152 = vector.broadcast %150 : f32 to vector<2x384xf32>
    %153 = arith.mulf %152, %148 : vector<2x384xf32>
    %154 = arith.addf %119, %153 : vector<2x384xf32>
    %155 = vector.broadcast %151 : f32 to vector<2x384xf32>
    %156 = arith.mulf %155, %149 : vector<2x384xf32>
    %157 = arith.addf %154, %156 : vector<2x384xf32>
    %c336_i32 = arith.constant 336 : i32
    %158 = tpu.dynamic_rotate %96 by %c336_i32 dim 1 : vector<2x384xf32>, i32 -> vector<2x384xf32>
    %c336_i32_39 = arith.constant 336 : i32
    %159 = tpu.dynamic_rotate %99 by %c336_i32_39 dim 1 : vector<2x384xf32>, i32 -> vector<2x384xf32>
    %c42 = arith.constant 42 : index
    %160 = memref.load %arg1[%c42] : memref<98xf32, #tpu.memory_space<smem>>
    %c91 = arith.constant 91 : index
    %161 = memref.load %arg1[%c91] : memref<98xf32, #tpu.memory_space<smem>>
    %162 = vector.broadcast %160 : f32 to vector<2x384xf32>
    %163 = arith.mulf %162, %158 : vector<2x384xf32>
    %164 = arith.addf %129, %163 : vector<2x384xf32>
    %165 = vector.broadcast %161 : f32 to vector<2x384xf32>
    %166 = arith.mulf %165, %159 : vector<2x384xf32>
    %167 = arith.addf %164, %166 : vector<2x384xf32>
    %c2_i32_40 = arith.constant 2 : i32
    %168 = tpu.dynamic_rotate %88 by %c2_i32_40 dim 1 : vector<2x384xf32>, i32 -> vector<2x384xf32>
    %169 = vector.broadcast %34 : vector<1x384xf32> to vector<2x384xf32>
    %170 = arith.mulf %168, %169 : vector<2x384xf32>
    %c2_i32_41 = arith.constant 2 : i32
    %171 = tpu.dynamic_rotate %89 by %c2_i32_41 dim 1 : vector<2x384xf32>, i32 -> vector<2x384xf32>
    %172 = vector.broadcast %34 : vector<1x384xf32> to vector<2x384xf32>
    %173 = arith.mulf %171, %172 : vector<2x384xf32>
    %c48_i32_42 = arith.constant 48 : i32
    %174 = tpu.dynamic_rotate %170 by %c48_i32_42 dim 1 : vector<2x384xf32>, i32 -> vector<2x384xf32>
    %c48_i32_43 = arith.constant 48 : i32
    %175 = tpu.dynamic_rotate %173 by %c48_i32_43 dim 1 : vector<2x384xf32>, i32 -> vector<2x384xf32>
    %c1_44 = arith.constant 1 : index
    %176 = memref.load %arg1[%c1_44] : memref<98xf32, #tpu.memory_space<smem>>
    %c50 = arith.constant 50 : index
    %177 = memref.load %arg1[%c50] : memref<98xf32, #tpu.memory_space<smem>>
    %178 = vector.broadcast %176 : f32 to vector<2x384xf32>
    %179 = arith.mulf %178, %174 : vector<2x384xf32>
    %180 = arith.addf %137, %179 : vector<2x384xf32>
    %181 = vector.broadcast %177 : f32 to vector<2x384xf32>
    %182 = arith.mulf %181, %175 : vector<2x384xf32>
    %183 = arith.addf %180, %182 : vector<2x384xf32>
    %c32_i32_45 = arith.constant 32 : i32
    %184 = tpu.dynamic_rotate %170 by %c32_i32_45 dim 1 : vector<2x384xf32>, i32 -> vector<2x384xf32>
    %c32_i32_46 = arith.constant 32 : i32
    %185 = tpu.dynamic_rotate %173 by %c32_i32_46 dim 1 : vector<2x384xf32>, i32 -> vector<2x384xf32>
    %c8 = arith.constant 8 : index
    %186 = memref.load %arg1[%c8] : memref<98xf32, #tpu.memory_space<smem>>
    %c57 = arith.constant 57 : index
    %187 = memref.load %arg1[%c57] : memref<98xf32, #tpu.memory_space<smem>>
    %188 = vector.broadcast %186 : f32 to vector<2x384xf32>
    %189 = arith.mulf %188, %184 : vector<2x384xf32>
    %190 = arith.addf %147, %189 : vector<2x384xf32>
    %191 = vector.broadcast %187 : f32 to vector<2x384xf32>
    %192 = arith.mulf %191, %185 : vector<2x384xf32>
    %193 = arith.addf %190, %192 : vector<2x384xf32>
    %c16_i32_47 = arith.constant 16 : i32
    %194 = tpu.dynamic_rotate %170 by %c16_i32_47 dim 1 : vector<2x384xf32>, i32 -> vector<2x384xf32>
    %c16_i32_48 = arith.constant 16 : i32
    %195 = tpu.dynamic_rotate %173 by %c16_i32_48 dim 1 : vector<2x384xf32>, i32 -> vector<2x384xf32>
    %c15 = arith.constant 15 : index
    %196 = memref.load %arg1[%c15] : memref<98xf32, #tpu.memory_space<smem>>
    %c64 = arith.constant 64 : index
    %197 = memref.load %arg1[%c64] : memref<98xf32, #tpu.memory_space<smem>>
    %198 = vector.broadcast %196 : f32 to vector<2x384xf32>
    %199 = arith.mulf %198, %194 : vector<2x384xf32>
    %200 = arith.addf %157, %199 : vector<2x384xf32>
    %201 = vector.broadcast %197 : f32 to vector<2x384xf32>
    %202 = arith.mulf %201, %195 : vector<2x384xf32>
    %203 = arith.addf %200, %202 : vector<2x384xf32>
    %c22 = arith.constant 22 : index
    %204 = memref.load %arg1[%c22] : memref<98xf32, #tpu.memory_space<smem>>
    %c71 = arith.constant 71 : index
    %205 = memref.load %arg1[%c71] : memref<98xf32, #tpu.memory_space<smem>>
    %206 = vector.broadcast %204 : f32 to vector<2x384xf32>
    %207 = arith.mulf %206, %170 : vector<2x384xf32>
    %208 = arith.addf %167, %207 : vector<2x384xf32>
    %209 = vector.broadcast %205 : f32 to vector<2x384xf32>
    %210 = arith.mulf %209, %173 : vector<2x384xf32>
    %211 = arith.addf %208, %210 : vector<2x384xf32>
    %c368_i32_49 = arith.constant 368 : i32
    %212 = tpu.dynamic_rotate %170 by %c368_i32_49 dim 1 : vector<2x384xf32>, i32 -> vector<2x384xf32>
    %c368_i32_50 = arith.constant 368 : i32
    %213 = tpu.dynamic_rotate %173 by %c368_i32_50 dim 1 : vector<2x384xf32>, i32 -> vector<2x384xf32>
    %c29 = arith.constant 29 : index
    %214 = memref.load %arg1[%c29] : memref<98xf32, #tpu.memory_space<smem>>
    %c78 = arith.constant 78 : index
    %215 = memref.load %arg1[%c78] : memref<98xf32, #tpu.memory_space<smem>>
    %216 = vector.broadcast %214 : f32 to vector<2x384xf32>
    %217 = arith.mulf %216, %212 : vector<2x384xf32>
    %218 = arith.addf %183, %217 : vector<2x384xf32>
    %219 = vector.broadcast %215 : f32 to vector<2x384xf32>
    %220 = arith.mulf %219, %213 : vector<2x384xf32>
    %221 = arith.addf %218, %220 : vector<2x384xf32>
    %c352_i32_51 = arith.constant 352 : i32
    %222 = tpu.dynamic_rotate %170 by %c352_i32_51 dim 1 : vector<2x384xf32>, i32 -> vector<2x384xf32>
    %c352_i32_52 = arith.constant 352 : i32
    %223 = tpu.dynamic_rotate %173 by %c352_i32_52 dim 1 : vector<2x384xf32>, i32 -> vector<2x384xf32>
    %c36 = arith.constant 36 : index
    %224 = memref.load %arg1[%c36] : memref<98xf32, #tpu.memory_space<smem>>
    %c85 = arith.constant 85 : index
    %225 = memref.load %arg1[%c85] : memref<98xf32, #tpu.memory_space<smem>>
    %226 = vector.broadcast %224 : f32 to vector<2x384xf32>
    %227 = arith.mulf %226, %222 : vector<2x384xf32>
    %228 = arith.addf %193, %227 : vector<2x384xf32>
    %229 = vector.broadcast %225 : f32 to vector<2x384xf32>
    %230 = arith.mulf %229, %223 : vector<2x384xf32>
    %231 = arith.addf %228, %230 : vector<2x384xf32>
    %c336_i32_53 = arith.constant 336 : i32
    %232 = tpu.dynamic_rotate %170 by %c336_i32_53 dim 1 : vector<2x384xf32>, i32 -> vector<2x384xf32>
    %c336_i32_54 = arith.constant 336 : i32
    %233 = tpu.dynamic_rotate %173 by %c336_i32_54 dim 1 : vector<2x384xf32>, i32 -> vector<2x384xf32>
    %c43 = arith.constant 43 : index
    %234 = memref.load %arg1[%c43] : memref<98xf32, #tpu.memory_space<smem>>
    %c92 = arith.constant 92 : index
    %235 = memref.load %arg1[%c92] : memref<98xf32, #tpu.memory_space<smem>>
    %236 = vector.broadcast %234 : f32 to vector<2x384xf32>
    %237 = arith.mulf %236, %232 : vector<2x384xf32>
    %238 = arith.addf %203, %237 : vector<2x384xf32>
    %239 = vector.broadcast %235 : f32 to vector<2x384xf32>
    %240 = arith.mulf %239, %233 : vector<2x384xf32>
    %241 = arith.addf %238, %240 : vector<2x384xf32>
    %c1_i32_55 = arith.constant 1 : i32
    %242 = tpu.dynamic_rotate %88 by %c1_i32_55 dim 1 : vector<2x384xf32>, i32 -> vector<2x384xf32>
    %243 = vector.broadcast %41 : vector<1x384xf32> to vector<2x384xf32>
    %244 = arith.mulf %242, %243 : vector<2x384xf32>
    %c1_i32_56 = arith.constant 1 : i32
    %245 = tpu.dynamic_rotate %89 by %c1_i32_56 dim 1 : vector<2x384xf32>, i32 -> vector<2x384xf32>
    %246 = vector.broadcast %41 : vector<1x384xf32> to vector<2x384xf32>
    %247 = arith.mulf %245, %246 : vector<2x384xf32>
    %c48_i32_57 = arith.constant 48 : i32
    %248 = tpu.dynamic_rotate %244 by %c48_i32_57 dim 1 : vector<2x384xf32>, i32 -> vector<2x384xf32>
    %c48_i32_58 = arith.constant 48 : i32
    %249 = tpu.dynamic_rotate %247 by %c48_i32_58 dim 1 : vector<2x384xf32>, i32 -> vector<2x384xf32>
    %c2 = arith.constant 2 : index
    %250 = memref.load %arg1[%c2] : memref<98xf32, #tpu.memory_space<smem>>
    %c51 = arith.constant 51 : index
    %251 = memref.load %arg1[%c51] : memref<98xf32, #tpu.memory_space<smem>>
    %252 = vector.broadcast %250 : f32 to vector<2x384xf32>
    %253 = arith.mulf %252, %248 : vector<2x384xf32>
    %254 = arith.addf %211, %253 : vector<2x384xf32>
    %255 = vector.broadcast %251 : f32 to vector<2x384xf32>
    %256 = arith.mulf %255, %249 : vector<2x384xf32>
    %257 = arith.addf %254, %256 : vector<2x384xf32>
    %c32_i32_59 = arith.constant 32 : i32
    %258 = tpu.dynamic_rotate %244 by %c32_i32_59 dim 1 : vector<2x384xf32>, i32 -> vector<2x384xf32>
    %c32_i32_60 = arith.constant 32 : i32
    %259 = tpu.dynamic_rotate %247 by %c32_i32_60 dim 1 : vector<2x384xf32>, i32 -> vector<2x384xf32>
    %c9 = arith.constant 9 : index
    %260 = memref.load %arg1[%c9] : memref<98xf32, #tpu.memory_space<smem>>
    %c58 = arith.constant 58 : index
    %261 = memref.load %arg1[%c58] : memref<98xf32, #tpu.memory_space<smem>>
    %262 = vector.broadcast %260 : f32 to vector<2x384xf32>
    %263 = arith.mulf %262, %258 : vector<2x384xf32>
    %264 = arith.addf %221, %263 : vector<2x384xf32>
    %265 = vector.broadcast %261 : f32 to vector<2x384xf32>
    %266 = arith.mulf %265, %259 : vector<2x384xf32>
    %267 = arith.addf %264, %266 : vector<2x384xf32>
    %c16_i32_61 = arith.constant 16 : i32
    %268 = tpu.dynamic_rotate %244 by %c16_i32_61 dim 1 : vector<2x384xf32>, i32 -> vector<2x384xf32>
    %c16_i32_62 = arith.constant 16 : i32
    %269 = tpu.dynamic_rotate %247 by %c16_i32_62 dim 1 : vector<2x384xf32>, i32 -> vector<2x384xf32>
    %c16 = arith.constant 16 : index
    %270 = memref.load %arg1[%c16] : memref<98xf32, #tpu.memory_space<smem>>
    %c65 = arith.constant 65 : index
    %271 = memref.load %arg1[%c65] : memref<98xf32, #tpu.memory_space<smem>>
    %272 = vector.broadcast %270 : f32 to vector<2x384xf32>
    %273 = arith.mulf %272, %268 : vector<2x384xf32>
    %274 = arith.addf %231, %273 : vector<2x384xf32>
    %275 = vector.broadcast %271 : f32 to vector<2x384xf32>
    %276 = arith.mulf %275, %269 : vector<2x384xf32>
    %277 = arith.addf %274, %276 : vector<2x384xf32>
    %c23 = arith.constant 23 : index
    %278 = memref.load %arg1[%c23] : memref<98xf32, #tpu.memory_space<smem>>
    %c72 = arith.constant 72 : index
    %279 = memref.load %arg1[%c72] : memref<98xf32, #tpu.memory_space<smem>>
    %280 = vector.broadcast %278 : f32 to vector<2x384xf32>
    %281 = arith.mulf %280, %244 : vector<2x384xf32>
    %282 = arith.addf %241, %281 : vector<2x384xf32>
    %283 = vector.broadcast %279 : f32 to vector<2x384xf32>
    %284 = arith.mulf %283, %247 : vector<2x384xf32>
    %285 = arith.addf %282, %284 : vector<2x384xf32>
    %c368_i32_63 = arith.constant 368 : i32
    %286 = tpu.dynamic_rotate %244 by %c368_i32_63 dim 1 : vector<2x384xf32>, i32 -> vector<2x384xf32>
    %c368_i32_64 = arith.constant 368 : i32
    %287 = tpu.dynamic_rotate %247 by %c368_i32_64 dim 1 : vector<2x384xf32>, i32 -> vector<2x384xf32>
    %c30 = arith.constant 30 : index
    %288 = memref.load %arg1[%c30] : memref<98xf32, #tpu.memory_space<smem>>
    %c79 = arith.constant 79 : index
    %289 = memref.load %arg1[%c79] : memref<98xf32, #tpu.memory_space<smem>>
    %290 = vector.broadcast %288 : f32 to vector<2x384xf32>
    %291 = arith.mulf %290, %286 : vector<2x384xf32>
    %292 = arith.addf %257, %291 : vector<2x384xf32>
    %293 = vector.broadcast %289 : f32 to vector<2x384xf32>
    %294 = arith.mulf %293, %287 : vector<2x384xf32>
    %295 = arith.addf %292, %294 : vector<2x384xf32>
    %c352_i32_65 = arith.constant 352 : i32
    %296 = tpu.dynamic_rotate %244 by %c352_i32_65 dim 1 : vector<2x384xf32>, i32 -> vector<2x384xf32>
    %c352_i32_66 = arith.constant 352 : i32
    %297 = tpu.dynamic_rotate %247 by %c352_i32_66 dim 1 : vector<2x384xf32>, i32 -> vector<2x384xf32>
    %c37 = arith.constant 37 : index
    %298 = memref.load %arg1[%c37] : memref<98xf32, #tpu.memory_space<smem>>
    %c86 = arith.constant 86 : index
    %299 = memref.load %arg1[%c86] : memref<98xf32, #tpu.memory_space<smem>>
    %300 = vector.broadcast %298 : f32 to vector<2x384xf32>
    %301 = arith.mulf %300, %296 : vector<2x384xf32>
    %302 = arith.addf %267, %301 : vector<2x384xf32>
    %303 = vector.broadcast %299 : f32 to vector<2x384xf32>
    %304 = arith.mulf %303, %297 : vector<2x384xf32>
    %305 = arith.addf %302, %304 : vector<2x384xf32>
    %c336_i32_67 = arith.constant 336 : i32
    %306 = tpu.dynamic_rotate %244 by %c336_i32_67 dim 1 : vector<2x384xf32>, i32 -> vector<2x384xf32>
    %c336_i32_68 = arith.constant 336 : i32
    %307 = tpu.dynamic_rotate %247 by %c336_i32_68 dim 1 : vector<2x384xf32>, i32 -> vector<2x384xf32>
    %c44 = arith.constant 44 : index
    %308 = memref.load %arg1[%c44] : memref<98xf32, #tpu.memory_space<smem>>
    %c93 = arith.constant 93 : index
    %309 = memref.load %arg1[%c93] : memref<98xf32, #tpu.memory_space<smem>>
    %310 = vector.broadcast %308 : f32 to vector<2x384xf32>
    %311 = arith.mulf %310, %306 : vector<2x384xf32>
    %312 = arith.addf %277, %311 : vector<2x384xf32>
    %313 = vector.broadcast %309 : f32 to vector<2x384xf32>
    %314 = arith.mulf %313, %307 : vector<2x384xf32>
    %315 = arith.addf %312, %314 : vector<2x384xf32>
    %c48_i32_69 = arith.constant 48 : i32
    %316 = tpu.dynamic_rotate %88 by %c48_i32_69 dim 1 : vector<2x384xf32>, i32 -> vector<2x384xf32>
    %c48_i32_70 = arith.constant 48 : i32
    %317 = tpu.dynamic_rotate %89 by %c48_i32_70 dim 1 : vector<2x384xf32>, i32 -> vector<2x384xf32>
    %c3 = arith.constant 3 : index
    %318 = memref.load %arg1[%c3] : memref<98xf32, #tpu.memory_space<smem>>
    %c52 = arith.constant 52 : index
    %319 = memref.load %arg1[%c52] : memref<98xf32, #tpu.memory_space<smem>>
    %320 = vector.broadcast %318 : f32 to vector<2x384xf32>
    %321 = arith.mulf %320, %316 : vector<2x384xf32>
    %322 = arith.addf %285, %321 : vector<2x384xf32>
    %323 = vector.broadcast %319 : f32 to vector<2x384xf32>
    %324 = arith.mulf %323, %317 : vector<2x384xf32>
    %325 = arith.addf %322, %324 : vector<2x384xf32>
    %c32_i32_71 = arith.constant 32 : i32
    %326 = tpu.dynamic_rotate %88 by %c32_i32_71 dim 1 : vector<2x384xf32>, i32 -> vector<2x384xf32>
    %c32_i32_72 = arith.constant 32 : i32
    %327 = tpu.dynamic_rotate %89 by %c32_i32_72 dim 1 : vector<2x384xf32>, i32 -> vector<2x384xf32>
    %c10 = arith.constant 10 : index
    %328 = memref.load %arg1[%c10] : memref<98xf32, #tpu.memory_space<smem>>
    %c59 = arith.constant 59 : index
    %329 = memref.load %arg1[%c59] : memref<98xf32, #tpu.memory_space<smem>>
    %330 = vector.broadcast %328 : f32 to vector<2x384xf32>
    %331 = arith.mulf %330, %326 : vector<2x384xf32>
    %332 = arith.addf %295, %331 : vector<2x384xf32>
    %333 = vector.broadcast %329 : f32 to vector<2x384xf32>
    %334 = arith.mulf %333, %327 : vector<2x384xf32>
    %335 = arith.addf %332, %334 : vector<2x384xf32>
    %c16_i32_73 = arith.constant 16 : i32
    %336 = tpu.dynamic_rotate %88 by %c16_i32_73 dim 1 : vector<2x384xf32>, i32 -> vector<2x384xf32>
    %c16_i32_74 = arith.constant 16 : i32
    %337 = tpu.dynamic_rotate %89 by %c16_i32_74 dim 1 : vector<2x384xf32>, i32 -> vector<2x384xf32>
    %c17 = arith.constant 17 : index
    %338 = memref.load %arg1[%c17] : memref<98xf32, #tpu.memory_space<smem>>
    %c66 = arith.constant 66 : index
    %339 = memref.load %arg1[%c66] : memref<98xf32, #tpu.memory_space<smem>>
    %340 = vector.broadcast %338 : f32 to vector<2x384xf32>
    %341 = arith.mulf %340, %336 : vector<2x384xf32>
    %342 = arith.addf %305, %341 : vector<2x384xf32>
    %343 = vector.broadcast %339 : f32 to vector<2x384xf32>
    %344 = arith.mulf %343, %337 : vector<2x384xf32>
    %345 = arith.addf %342, %344 : vector<2x384xf32>
    %c24 = arith.constant 24 : index
    %346 = memref.load %arg1[%c24] : memref<98xf32, #tpu.memory_space<smem>>
    %c73 = arith.constant 73 : index
    %347 = memref.load %arg1[%c73] : memref<98xf32, #tpu.memory_space<smem>>
    %348 = vector.broadcast %346 : f32 to vector<2x384xf32>
    %349 = arith.mulf %348, %88 : vector<2x384xf32>
    %350 = arith.addf %315, %349 : vector<2x384xf32>
    %351 = vector.broadcast %347 : f32 to vector<2x384xf32>
    %352 = arith.mulf %351, %89 : vector<2x384xf32>
    %353 = arith.addf %350, %352 : vector<2x384xf32>
    %c368_i32_75 = arith.constant 368 : i32
    %354 = tpu.dynamic_rotate %88 by %c368_i32_75 dim 1 : vector<2x384xf32>, i32 -> vector<2x384xf32>
    %c368_i32_76 = arith.constant 368 : i32
    %355 = tpu.dynamic_rotate %89 by %c368_i32_76 dim 1 : vector<2x384xf32>, i32 -> vector<2x384xf32>
    %c31 = arith.constant 31 : index
    %356 = memref.load %arg1[%c31] : memref<98xf32, #tpu.memory_space<smem>>
    %c80 = arith.constant 80 : index
    %357 = memref.load %arg1[%c80] : memref<98xf32, #tpu.memory_space<smem>>
    %358 = vector.broadcast %356 : f32 to vector<2x384xf32>
    %359 = arith.mulf %358, %354 : vector<2x384xf32>
    %360 = arith.addf %325, %359 : vector<2x384xf32>
    %361 = vector.broadcast %357 : f32 to vector<2x384xf32>
    %362 = arith.mulf %361, %355 : vector<2x384xf32>
    %363 = arith.addf %360, %362 : vector<2x384xf32>
    %c352_i32_77 = arith.constant 352 : i32
    %364 = tpu.dynamic_rotate %88 by %c352_i32_77 dim 1 : vector<2x384xf32>, i32 -> vector<2x384xf32>
    %c352_i32_78 = arith.constant 352 : i32
    %365 = tpu.dynamic_rotate %89 by %c352_i32_78 dim 1 : vector<2x384xf32>, i32 -> vector<2x384xf32>
    %c38 = arith.constant 38 : index
    %366 = memref.load %arg1[%c38] : memref<98xf32, #tpu.memory_space<smem>>
    %c87 = arith.constant 87 : index
    %367 = memref.load %arg1[%c87] : memref<98xf32, #tpu.memory_space<smem>>
    %368 = vector.broadcast %366 : f32 to vector<2x384xf32>
    %369 = arith.mulf %368, %364 : vector<2x384xf32>
    %370 = arith.addf %335, %369 : vector<2x384xf32>
    %371 = vector.broadcast %367 : f32 to vector<2x384xf32>
    %372 = arith.mulf %371, %365 : vector<2x384xf32>
    %373 = arith.addf %370, %372 : vector<2x384xf32>
    %c336_i32_79 = arith.constant 336 : i32
    %374 = tpu.dynamic_rotate %88 by %c336_i32_79 dim 1 : vector<2x384xf32>, i32 -> vector<2x384xf32>
    %c336_i32_80 = arith.constant 336 : i32
    %375 = tpu.dynamic_rotate %89 by %c336_i32_80 dim 1 : vector<2x384xf32>, i32 -> vector<2x384xf32>
    %c45 = arith.constant 45 : index
    %376 = memref.load %arg1[%c45] : memref<98xf32, #tpu.memory_space<smem>>
    %c94 = arith.constant 94 : index
    %377 = memref.load %arg1[%c94] : memref<98xf32, #tpu.memory_space<smem>>
    %378 = vector.broadcast %376 : f32 to vector<2x384xf32>
    %379 = arith.mulf %378, %374 : vector<2x384xf32>
    %380 = arith.addf %345, %379 : vector<2x384xf32>
    %381 = vector.broadcast %377 : f32 to vector<2x384xf32>
    %382 = arith.mulf %381, %375 : vector<2x384xf32>
    %383 = arith.addf %380, %382 : vector<2x384xf32>
    %c383_i32 = arith.constant 383 : i32
    %384 = tpu.dynamic_rotate %88 by %c383_i32 dim 1 : vector<2x384xf32>, i32 -> vector<2x384xf32>
    %385 = vector.broadcast %48 : vector<1x384xf32> to vector<2x384xf32>
    %386 = arith.mulf %384, %385 : vector<2x384xf32>
    %c383_i32_81 = arith.constant 383 : i32
    %387 = tpu.dynamic_rotate %89 by %c383_i32_81 dim 1 : vector<2x384xf32>, i32 -> vector<2x384xf32>
    %388 = vector.broadcast %48 : vector<1x384xf32> to vector<2x384xf32>
    %389 = arith.mulf %387, %388 : vector<2x384xf32>
    %c48_i32_82 = arith.constant 48 : i32
    %390 = tpu.dynamic_rotate %386 by %c48_i32_82 dim 1 : vector<2x384xf32>, i32 -> vector<2x384xf32>
    %c48_i32_83 = arith.constant 48 : i32
    %391 = tpu.dynamic_rotate %389 by %c48_i32_83 dim 1 : vector<2x384xf32>, i32 -> vector<2x384xf32>
    %c4 = arith.constant 4 : index
    %392 = memref.load %arg1[%c4] : memref<98xf32, #tpu.memory_space<smem>>
    %c53 = arith.constant 53 : index
    %393 = memref.load %arg1[%c53] : memref<98xf32, #tpu.memory_space<smem>>
    %394 = vector.broadcast %392 : f32 to vector<2x384xf32>
    %395 = arith.mulf %394, %390 : vector<2x384xf32>
    %396 = arith.addf %353, %395 : vector<2x384xf32>
    %397 = vector.broadcast %393 : f32 to vector<2x384xf32>
    %398 = arith.mulf %397, %391 : vector<2x384xf32>
    %399 = arith.addf %396, %398 : vector<2x384xf32>
    %c32_i32_84 = arith.constant 32 : i32
    %400 = tpu.dynamic_rotate %386 by %c32_i32_84 dim 1 : vector<2x384xf32>, i32 -> vector<2x384xf32>
    %c32_i32_85 = arith.constant 32 : i32
    %401 = tpu.dynamic_rotate %389 by %c32_i32_85 dim 1 : vector<2x384xf32>, i32 -> vector<2x384xf32>
    %c11 = arith.constant 11 : index
    %402 = memref.load %arg1[%c11] : memref<98xf32, #tpu.memory_space<smem>>
    %c60 = arith.constant 60 : index
    %403 = memref.load %arg1[%c60] : memref<98xf32, #tpu.memory_space<smem>>
    %404 = vector.broadcast %402 : f32 to vector<2x384xf32>
    %405 = arith.mulf %404, %400 : vector<2x384xf32>
    %406 = arith.addf %363, %405 : vector<2x384xf32>
    %407 = vector.broadcast %403 : f32 to vector<2x384xf32>
    %408 = arith.mulf %407, %401 : vector<2x384xf32>
    %409 = arith.addf %406, %408 : vector<2x384xf32>
    %c16_i32_86 = arith.constant 16 : i32
    %410 = tpu.dynamic_rotate %386 by %c16_i32_86 dim 1 : vector<2x384xf32>, i32 -> vector<2x384xf32>
    %c16_i32_87 = arith.constant 16 : i32
    %411 = tpu.dynamic_rotate %389 by %c16_i32_87 dim 1 : vector<2x384xf32>, i32 -> vector<2x384xf32>
    %c18 = arith.constant 18 : index
    %412 = memref.load %arg1[%c18] : memref<98xf32, #tpu.memory_space<smem>>
    %c67 = arith.constant 67 : index
    %413 = memref.load %arg1[%c67] : memref<98xf32, #tpu.memory_space<smem>>
    %414 = vector.broadcast %412 : f32 to vector<2x384xf32>
    %415 = arith.mulf %414, %410 : vector<2x384xf32>
    %416 = arith.addf %373, %415 : vector<2x384xf32>
    %417 = vector.broadcast %413 : f32 to vector<2x384xf32>
    %418 = arith.mulf %417, %411 : vector<2x384xf32>
    %419 = arith.addf %416, %418 : vector<2x384xf32>
    %c25 = arith.constant 25 : index
    %420 = memref.load %arg1[%c25] : memref<98xf32, #tpu.memory_space<smem>>
    %c74 = arith.constant 74 : index
    %421 = memref.load %arg1[%c74] : memref<98xf32, #tpu.memory_space<smem>>
    %422 = vector.broadcast %420 : f32 to vector<2x384xf32>
    %423 = arith.mulf %422, %386 : vector<2x384xf32>
    %424 = arith.addf %383, %423 : vector<2x384xf32>
    %425 = vector.broadcast %421 : f32 to vector<2x384xf32>
    %426 = arith.mulf %425, %389 : vector<2x384xf32>
    %427 = arith.addf %424, %426 : vector<2x384xf32>
    %c368_i32_88 = arith.constant 368 : i32
    %428 = tpu.dynamic_rotate %386 by %c368_i32_88 dim 1 : vector<2x384xf32>, i32 -> vector<2x384xf32>
    %c368_i32_89 = arith.constant 368 : i32
    %429 = tpu.dynamic_rotate %389 by %c368_i32_89 dim 1 : vector<2x384xf32>, i32 -> vector<2x384xf32>
    %c32 = arith.constant 32 : index
    %430 = memref.load %arg1[%c32] : memref<98xf32, #tpu.memory_space<smem>>
    %c81 = arith.constant 81 : index
    %431 = memref.load %arg1[%c81] : memref<98xf32, #tpu.memory_space<smem>>
    %432 = vector.broadcast %430 : f32 to vector<2x384xf32>
    %433 = arith.mulf %432, %428 : vector<2x384xf32>
    %434 = arith.addf %399, %433 : vector<2x384xf32>
    %435 = vector.broadcast %431 : f32 to vector<2x384xf32>
    %436 = arith.mulf %435, %429 : vector<2x384xf32>
    %437 = arith.addf %434, %436 : vector<2x384xf32>
    %c352_i32_90 = arith.constant 352 : i32
    %438 = tpu.dynamic_rotate %386 by %c352_i32_90 dim 1 : vector<2x384xf32>, i32 -> vector<2x384xf32>
    %c352_i32_91 = arith.constant 352 : i32
    %439 = tpu.dynamic_rotate %389 by %c352_i32_91 dim 1 : vector<2x384xf32>, i32 -> vector<2x384xf32>
    %c39 = arith.constant 39 : index
    %440 = memref.load %arg1[%c39] : memref<98xf32, #tpu.memory_space<smem>>
    %c88 = arith.constant 88 : index
    %441 = memref.load %arg1[%c88] : memref<98xf32, #tpu.memory_space<smem>>
    %442 = vector.broadcast %440 : f32 to vector<2x384xf32>
    %443 = arith.mulf %442, %438 : vector<2x384xf32>
    %444 = arith.addf %409, %443 : vector<2x384xf32>
    %445 = vector.broadcast %441 : f32 to vector<2x384xf32>
    %446 = arith.mulf %445, %439 : vector<2x384xf32>
    %447 = arith.addf %444, %446 : vector<2x384xf32>
    %c336_i32_92 = arith.constant 336 : i32
    %448 = tpu.dynamic_rotate %386 by %c336_i32_92 dim 1 : vector<2x384xf32>, i32 -> vector<2x384xf32>
    %c336_i32_93 = arith.constant 336 : i32
    %449 = tpu.dynamic_rotate %389 by %c336_i32_93 dim 1 : vector<2x384xf32>, i32 -> vector<2x384xf32>
    %c46 = arith.constant 46 : index
    %450 = memref.load %arg1[%c46] : memref<98xf32, #tpu.memory_space<smem>>
    %c95 = arith.constant 95 : index
    %451 = memref.load %arg1[%c95] : memref<98xf32, #tpu.memory_space<smem>>
    %452 = vector.broadcast %450 : f32 to vector<2x384xf32>
    %453 = arith.mulf %452, %448 : vector<2x384xf32>
    %454 = arith.addf %419, %453 : vector<2x384xf32>
    %455 = vector.broadcast %451 : f32 to vector<2x384xf32>
    %456 = arith.mulf %455, %449 : vector<2x384xf32>
    %457 = arith.addf %454, %456 : vector<2x384xf32>
    %c382_i32 = arith.constant 382 : i32
    %458 = tpu.dynamic_rotate %88 by %c382_i32 dim 1 : vector<2x384xf32>, i32 -> vector<2x384xf32>
    %459 = vector.broadcast %55 : vector<1x384xf32> to vector<2x384xf32>
    %460 = arith.mulf %458, %459 : vector<2x384xf32>
    %c382_i32_94 = arith.constant 382 : i32
    %461 = tpu.dynamic_rotate %89 by %c382_i32_94 dim 1 : vector<2x384xf32>, i32 -> vector<2x384xf32>
    %462 = vector.broadcast %55 : vector<1x384xf32> to vector<2x384xf32>
    %463 = arith.mulf %461, %462 : vector<2x384xf32>
    %c48_i32_95 = arith.constant 48 : i32
    %464 = tpu.dynamic_rotate %460 by %c48_i32_95 dim 1 : vector<2x384xf32>, i32 -> vector<2x384xf32>
    %c48_i32_96 = arith.constant 48 : i32
    %465 = tpu.dynamic_rotate %463 by %c48_i32_96 dim 1 : vector<2x384xf32>, i32 -> vector<2x384xf32>
    %c5 = arith.constant 5 : index
    %466 = memref.load %arg1[%c5] : memref<98xf32, #tpu.memory_space<smem>>
    %c54 = arith.constant 54 : index
    %467 = memref.load %arg1[%c54] : memref<98xf32, #tpu.memory_space<smem>>
    %468 = vector.broadcast %466 : f32 to vector<2x384xf32>
    %469 = arith.mulf %468, %464 : vector<2x384xf32>
    %470 = arith.addf %427, %469 : vector<2x384xf32>
    %471 = vector.broadcast %467 : f32 to vector<2x384xf32>
    %472 = arith.mulf %471, %465 : vector<2x384xf32>
    %473 = arith.addf %470, %472 : vector<2x384xf32>
    %c32_i32_97 = arith.constant 32 : i32
    %474 = tpu.dynamic_rotate %460 by %c32_i32_97 dim 1 : vector<2x384xf32>, i32 -> vector<2x384xf32>
    %c32_i32_98 = arith.constant 32 : i32
    %475 = tpu.dynamic_rotate %463 by %c32_i32_98 dim 1 : vector<2x384xf32>, i32 -> vector<2x384xf32>
    %c12 = arith.constant 12 : index
    %476 = memref.load %arg1[%c12] : memref<98xf32, #tpu.memory_space<smem>>
    %c61 = arith.constant 61 : index
    %477 = memref.load %arg1[%c61] : memref<98xf32, #tpu.memory_space<smem>>
    %478 = vector.broadcast %476 : f32 to vector<2x384xf32>
    %479 = arith.mulf %478, %474 : vector<2x384xf32>
    %480 = arith.addf %437, %479 : vector<2x384xf32>
    %481 = vector.broadcast %477 : f32 to vector<2x384xf32>
    %482 = arith.mulf %481, %475 : vector<2x384xf32>
    %483 = arith.addf %480, %482 : vector<2x384xf32>
    %c16_i32_99 = arith.constant 16 : i32
    %484 = tpu.dynamic_rotate %460 by %c16_i32_99 dim 1 : vector<2x384xf32>, i32 -> vector<2x384xf32>
    %c16_i32_100 = arith.constant 16 : i32
    %485 = tpu.dynamic_rotate %463 by %c16_i32_100 dim 1 : vector<2x384xf32>, i32 -> vector<2x384xf32>
    %c19 = arith.constant 19 : index
    %486 = memref.load %arg1[%c19] : memref<98xf32, #tpu.memory_space<smem>>
    %c68 = arith.constant 68 : index
    %487 = memref.load %arg1[%c68] : memref<98xf32, #tpu.memory_space<smem>>
    %488 = vector.broadcast %486 : f32 to vector<2x384xf32>
    %489 = arith.mulf %488, %484 : vector<2x384xf32>
    %490 = arith.addf %447, %489 : vector<2x384xf32>
    %491 = vector.broadcast %487 : f32 to vector<2x384xf32>
    %492 = arith.mulf %491, %485 : vector<2x384xf32>
    %493 = arith.addf %490, %492 : vector<2x384xf32>
    %c26 = arith.constant 26 : index
    %494 = memref.load %arg1[%c26] : memref<98xf32, #tpu.memory_space<smem>>
    %c75 = arith.constant 75 : index
    %495 = memref.load %arg1[%c75] : memref<98xf32, #tpu.memory_space<smem>>
    %496 = vector.broadcast %494 : f32 to vector<2x384xf32>
    %497 = arith.mulf %496, %460 : vector<2x384xf32>
    %498 = arith.addf %457, %497 : vector<2x384xf32>
    %499 = vector.broadcast %495 : f32 to vector<2x384xf32>
    %500 = arith.mulf %499, %463 : vector<2x384xf32>
    %501 = arith.addf %498, %500 : vector<2x384xf32>
    %c368_i32_101 = arith.constant 368 : i32
    %502 = tpu.dynamic_rotate %460 by %c368_i32_101 dim 1 : vector<2x384xf32>, i32 -> vector<2x384xf32>
    %c368_i32_102 = arith.constant 368 : i32
    %503 = tpu.dynamic_rotate %463 by %c368_i32_102 dim 1 : vector<2x384xf32>, i32 -> vector<2x384xf32>
    %c33 = arith.constant 33 : index
    %504 = memref.load %arg1[%c33] : memref<98xf32, #tpu.memory_space<smem>>
    %c82 = arith.constant 82 : index
    %505 = memref.load %arg1[%c82] : memref<98xf32, #tpu.memory_space<smem>>
    %506 = vector.broadcast %504 : f32 to vector<2x384xf32>
    %507 = arith.mulf %506, %502 : vector<2x384xf32>
    %508 = arith.addf %473, %507 : vector<2x384xf32>
    %509 = vector.broadcast %505 : f32 to vector<2x384xf32>
    %510 = arith.mulf %509, %503 : vector<2x384xf32>
    %511 = arith.addf %508, %510 : vector<2x384xf32>
    %c352_i32_103 = arith.constant 352 : i32
    %512 = tpu.dynamic_rotate %460 by %c352_i32_103 dim 1 : vector<2x384xf32>, i32 -> vector<2x384xf32>
    %c352_i32_104 = arith.constant 352 : i32
    %513 = tpu.dynamic_rotate %463 by %c352_i32_104 dim 1 : vector<2x384xf32>, i32 -> vector<2x384xf32>
    %c40 = arith.constant 40 : index
    %514 = memref.load %arg1[%c40] : memref<98xf32, #tpu.memory_space<smem>>
    %c89 = arith.constant 89 : index
    %515 = memref.load %arg1[%c89] : memref<98xf32, #tpu.memory_space<smem>>
    %516 = vector.broadcast %514 : f32 to vector<2x384xf32>
    %517 = arith.mulf %516, %512 : vector<2x384xf32>
    %518 = arith.addf %483, %517 : vector<2x384xf32>
    %519 = vector.broadcast %515 : f32 to vector<2x384xf32>
    %520 = arith.mulf %519, %513 : vector<2x384xf32>
    %521 = arith.addf %518, %520 : vector<2x384xf32>
    %c336_i32_105 = arith.constant 336 : i32
    %522 = tpu.dynamic_rotate %460 by %c336_i32_105 dim 1 : vector<2x384xf32>, i32 -> vector<2x384xf32>
    %c336_i32_106 = arith.constant 336 : i32
    %523 = tpu.dynamic_rotate %463 by %c336_i32_106 dim 1 : vector<2x384xf32>, i32 -> vector<2x384xf32>
    %c47 = arith.constant 47 : index
    %524 = memref.load %arg1[%c47] : memref<98xf32, #tpu.memory_space<smem>>
    %c96 = arith.constant 96 : index
    %525 = memref.load %arg1[%c96] : memref<98xf32, #tpu.memory_space<smem>>
    %526 = vector.broadcast %524 : f32 to vector<2x384xf32>
    %527 = arith.mulf %526, %522 : vector<2x384xf32>
    %528 = arith.addf %493, %527 : vector<2x384xf32>
    %529 = vector.broadcast %525 : f32 to vector<2x384xf32>
    %530 = arith.mulf %529, %523 : vector<2x384xf32>
    %531 = arith.addf %528, %530 : vector<2x384xf32>
    %c381_i32 = arith.constant 381 : i32
    %532 = tpu.dynamic_rotate %88 by %c381_i32 dim 1 : vector<2x384xf32>, i32 -> vector<2x384xf32>
    %533 = vector.broadcast %62 : vector<1x384xf32> to vector<2x384xf32>
    %534 = arith.mulf %532, %533 : vector<2x384xf32>
    %c381_i32_107 = arith.constant 381 : i32
    %535 = tpu.dynamic_rotate %89 by %c381_i32_107 dim 1 : vector<2x384xf32>, i32 -> vector<2x384xf32>
    %536 = vector.broadcast %62 : vector<1x384xf32> to vector<2x384xf32>
    %537 = arith.mulf %535, %536 : vector<2x384xf32>
    %c48_i32_108 = arith.constant 48 : i32
    %538 = tpu.dynamic_rotate %534 by %c48_i32_108 dim 1 : vector<2x384xf32>, i32 -> vector<2x384xf32>
    %c48_i32_109 = arith.constant 48 : i32
    %539 = tpu.dynamic_rotate %537 by %c48_i32_109 dim 1 : vector<2x384xf32>, i32 -> vector<2x384xf32>
    %c6 = arith.constant 6 : index
    %540 = memref.load %arg1[%c6] : memref<98xf32, #tpu.memory_space<smem>>
    %c55 = arith.constant 55 : index
    %541 = memref.load %arg1[%c55] : memref<98xf32, #tpu.memory_space<smem>>
    %542 = vector.broadcast %540 : f32 to vector<2x384xf32>
    %543 = arith.mulf %542, %538 : vector<2x384xf32>
    %544 = arith.addf %501, %543 : vector<2x384xf32>
    %545 = vector.broadcast %541 : f32 to vector<2x384xf32>
    %546 = arith.mulf %545, %539 : vector<2x384xf32>
    %547 = arith.addf %544, %546 : vector<2x384xf32>
    %c32_i32_110 = arith.constant 32 : i32
    %548 = tpu.dynamic_rotate %534 by %c32_i32_110 dim 1 : vector<2x384xf32>, i32 -> vector<2x384xf32>
    %c32_i32_111 = arith.constant 32 : i32
    %549 = tpu.dynamic_rotate %537 by %c32_i32_111 dim 1 : vector<2x384xf32>, i32 -> vector<2x384xf32>
    %c13 = arith.constant 13 : index
    %550 = memref.load %arg1[%c13] : memref<98xf32, #tpu.memory_space<smem>>
    %c62 = arith.constant 62 : index
    %551 = memref.load %arg1[%c62] : memref<98xf32, #tpu.memory_space<smem>>
    %552 = vector.broadcast %550 : f32 to vector<2x384xf32>
    %553 = arith.mulf %552, %548 : vector<2x384xf32>
    %554 = arith.addf %511, %553 : vector<2x384xf32>
    %555 = vector.broadcast %551 : f32 to vector<2x384xf32>
    %556 = arith.mulf %555, %549 : vector<2x384xf32>
    %557 = arith.addf %554, %556 : vector<2x384xf32>
    %c16_i32_112 = arith.constant 16 : i32
    %558 = tpu.dynamic_rotate %534 by %c16_i32_112 dim 1 : vector<2x384xf32>, i32 -> vector<2x384xf32>
    %c16_i32_113 = arith.constant 16 : i32
    %559 = tpu.dynamic_rotate %537 by %c16_i32_113 dim 1 : vector<2x384xf32>, i32 -> vector<2x384xf32>
    %c20 = arith.constant 20 : index
    %560 = memref.load %arg1[%c20] : memref<98xf32, #tpu.memory_space<smem>>
    %c69 = arith.constant 69 : index
    %561 = memref.load %arg1[%c69] : memref<98xf32, #tpu.memory_space<smem>>
    %562 = vector.broadcast %560 : f32 to vector<2x384xf32>
    %563 = arith.mulf %562, %558 : vector<2x384xf32>
    %564 = arith.addf %521, %563 : vector<2x384xf32>
    %565 = vector.broadcast %561 : f32 to vector<2x384xf32>
    %566 = arith.mulf %565, %559 : vector<2x384xf32>
    %567 = arith.addf %564, %566 : vector<2x384xf32>
    %c27 = arith.constant 27 : index
    %568 = memref.load %arg1[%c27] : memref<98xf32, #tpu.memory_space<smem>>
    %c76 = arith.constant 76 : index
    %569 = memref.load %arg1[%c76] : memref<98xf32, #tpu.memory_space<smem>>
    %570 = vector.broadcast %568 : f32 to vector<2x384xf32>
    %571 = arith.mulf %570, %534 : vector<2x384xf32>
    %572 = arith.addf %531, %571 : vector<2x384xf32>
    %573 = vector.broadcast %569 : f32 to vector<2x384xf32>
    %574 = arith.mulf %573, %537 : vector<2x384xf32>
    %575 = arith.addf %572, %574 : vector<2x384xf32>
    %c368_i32_114 = arith.constant 368 : i32
    %576 = tpu.dynamic_rotate %534 by %c368_i32_114 dim 1 : vector<2x384xf32>, i32 -> vector<2x384xf32>
    %c368_i32_115 = arith.constant 368 : i32
    %577 = tpu.dynamic_rotate %537 by %c368_i32_115 dim 1 : vector<2x384xf32>, i32 -> vector<2x384xf32>
    %c34 = arith.constant 34 : index
    %578 = memref.load %arg1[%c34] : memref<98xf32, #tpu.memory_space<smem>>
    %c83 = arith.constant 83 : index
    %579 = memref.load %arg1[%c83] : memref<98xf32, #tpu.memory_space<smem>>
    %580 = vector.broadcast %578 : f32 to vector<2x384xf32>
    %581 = arith.mulf %580, %576 : vector<2x384xf32>
    %582 = arith.addf %547, %581 : vector<2x384xf32>
    %583 = vector.broadcast %579 : f32 to vector<2x384xf32>
    %584 = arith.mulf %583, %577 : vector<2x384xf32>
    %585 = arith.addf %582, %584 : vector<2x384xf32>
    %c352_i32_116 = arith.constant 352 : i32
    %586 = tpu.dynamic_rotate %534 by %c352_i32_116 dim 1 : vector<2x384xf32>, i32 -> vector<2x384xf32>
    %c352_i32_117 = arith.constant 352 : i32
    %587 = tpu.dynamic_rotate %537 by %c352_i32_117 dim 1 : vector<2x384xf32>, i32 -> vector<2x384xf32>
    %c41 = arith.constant 41 : index
    %588 = memref.load %arg1[%c41] : memref<98xf32, #tpu.memory_space<smem>>
    %c90 = arith.constant 90 : index
    %589 = memref.load %arg1[%c90] : memref<98xf32, #tpu.memory_space<smem>>
    %590 = vector.broadcast %588 : f32 to vector<2x384xf32>
    %591 = arith.mulf %590, %586 : vector<2x384xf32>
    %592 = arith.addf %557, %591 : vector<2x384xf32>
    %593 = vector.broadcast %589 : f32 to vector<2x384xf32>
    %594 = arith.mulf %593, %587 : vector<2x384xf32>
    %595 = arith.addf %592, %594 : vector<2x384xf32>
    %c336_i32_118 = arith.constant 336 : i32
    %596 = tpu.dynamic_rotate %534 by %c336_i32_118 dim 1 : vector<2x384xf32>, i32 -> vector<2x384xf32>
    %c336_i32_119 = arith.constant 336 : i32
    %597 = tpu.dynamic_rotate %537 by %c336_i32_119 dim 1 : vector<2x384xf32>, i32 -> vector<2x384xf32>
    %c48 = arith.constant 48 : index
    %598 = memref.load %arg1[%c48] : memref<98xf32, #tpu.memory_space<smem>>
    %c97 = arith.constant 97 : index
    %599 = memref.load %arg1[%c97] : memref<98xf32, #tpu.memory_space<smem>>
    %600 = vector.broadcast %598 : f32 to vector<2x384xf32>
    %601 = arith.mulf %600, %596 : vector<2x384xf32>
    %602 = arith.addf %567, %601 : vector<2x384xf32>
    %603 = vector.broadcast %599 : f32 to vector<2x384xf32>
    %604 = arith.mulf %603, %597 : vector<2x384xf32>
    %605 = arith.addf %602, %604 : vector<2x384xf32>
    %606 = arith.addf %605, %575 : vector<2x384xf32>
    %607 = arith.addf %585, %595 : vector<2x384xf32>
    %608 = arith.addf %606, %607 : vector<2x384xf32>
    %609 = arith.negf %608 : vector<2x384xf32>
    %610 = math.exp %609 : vector<2x384xf32>
    %cst_120 = arith.constant 1.000000e+00 : f32
    %611 = vector.broadcast %cst_120 : f32 to vector<2x384xf32>
    %612 = arith.addf %611, %610 : vector<2x384xf32>
    %613 = arith.divf %611, %612 : vector<2x384xf32>
    %c0_121 = arith.constant 0 : index
    %c0_122 = arith.constant 0 : index
    %614 = vector.load %arg6[%c0_121, %c0_122] : memref<2x384xf32, #tpu.memory_space<vmem>>, vector<2x384xf32>
    tpu.vector_store %arg6[%c0_121, %c0_122], %613 {strides = array<i32>} : memref<2x384xf32, #tpu.memory_space<vmem>>, vector<2x384xf32>,
    %c0_123 = arith.constant 0 : index
    %c0_124 = arith.constant 0 : index
    %615 = vector.load %arg6[%c0_123, %c0_124] : memref<2x384xf32, #tpu.memory_space<vmem>>, vector<1x256xf32>
    %c0_125 = arith.constant 0 : index
    %c0_126 = arith.constant 0 : index
    %c0_127 = arith.constant 0 : index
    %616 = vector.load %arg2[%c0_125, %c0_126, %c0_127] : memref<2x4x256xf32, #tpu.memory_space<vmem>>, vector<1x4x256xf32>
    %617 = vector.shape_cast %616 : vector<1x4x256xf32> to vector<4x256xf32>
    %618 = vector.broadcast %615 : vector<1x256xf32> to vector<4x256xf32>
    %619 = arith.mulf %617, %618 : vector<4x256xf32>
    %c0_128 = arith.constant 0 : index
    %c0_129 = arith.constant 0 : index
    %c0_130 = arith.constant 0 : index
    %620 = vector.load %arg3[%c0_128, %c0_129, %c0_130] : memref<2x4x256xf32, #tpu.memory_space<vmem>>, vector<1x4x256xf32>
    %621 = vector.shape_cast %620 : vector<1x4x256xf32> to vector<4x256xf32>
    %622 = vector.shape_cast %619 : vector<4x256xf32> to vector<1x4x256xf32>
    tpu.vector_store %arg3[%c0_128, %c0_129, %c0_130], %622 {strides = array<i32>} : memref<2x4x256xf32, #tpu.memory_space<vmem>>, vector<1x4x256xf32>,
    %c1_131 = arith.constant 1 : index
    %c0_132 = arith.constant 0 : index
    %623 = vector.load %arg6[%c1_131, %c0_132] : memref<2x384xf32, #tpu.memory_space<vmem>>, vector<1x256xf32>
    %c1_133 = arith.constant 1 : index
    %c0_134 = arith.constant 0 : index
    %c0_135 = arith.constant 0 : index
    %624 = vector.load %arg2[%c1_133, %c0_134, %c0_135] : memref<2x4x256xf32, #tpu.memory_space<vmem>>, vector<1x4x256xf32>
    %625 = vector.shape_cast %624 : vector<1x4x256xf32> to vector<4x256xf32>
    %626 = vector.broadcast %623 : vector<1x256xf32> to vector<4x256xf32>
    %627 = arith.mulf %625, %626 : vector<4x256xf32>
    %c1_136 = arith.constant 1 : index
    %c0_137 = arith.constant 0 : index
    %c0_138 = arith.constant 0 : index
    %628 = vector.load %arg3[%c1_136, %c0_137, %c0_138] : memref<2x4x256xf32, #tpu.memory_space<vmem>>, vector<1x4x256xf32>
    %629 = vector.shape_cast %628 : vector<1x4x256xf32> to vector<4x256xf32>
    %630 = vector.shape_cast %627 : vector<4x256xf32> to vector<1x4x256xf32>
    tpu.vector_store %arg3[%c1_136, %c0_137, %c0_138], %630 {strides = array<i32>} : memref<2x4x256xf32, #tpu.memory_space<vmem>>, vector<1x4x256xf32>,
    return
  }
  func.func @transform_0(%arg0: i32, %arg1: memref<98xf32, #tpu.memory_space<smem>>) -> (i32, i32, i32) {
    %c0_i32 = arith.constant 0 : i32
    %c0_i32_0 = arith.constant 0 : i32
    %c0_i32_1 = arith.constant 0 : i32
    return %arg0, %c0_i32, %c0_i32_0 : i32, i32, i32
  }
  func.func @transform_1(%arg0: i32, %arg1: memref<98xf32, #tpu.memory_space<smem>>) -> (i32, i32, i32) {
    %c0_i32 = arith.constant 0 : i32
    %c0_i32_0 = arith.constant 0 : i32
    %c0_i32_1 = arith.constant 0 : i32
    return %arg0, %c0_i32, %c0_i32_0 : i32, i32, i32
  }
}

</mosaic_0001>

<bundles_post_ra>
// kernel: tpu_custom_call.1
= control target key start
LH: loop header
LB: loop body
LE: loop exit
PB: predicated region body
PF: predicated region fallthrough
CT: control target
= control target key end

     0   :  { %s2498_s12 = smov [#allocation6]   ;;  %s4781_s0 = inlined_call_operand.hbm [shape: f32[98], index: 0, kind: input, shape index: {}]   ;;  %s4782_s1 = inlined_call_operand.hbm [shape: f32[2,4,256], index: 1, kind: input, shape index: {}]   ;;  %s4783_s2 = inlined_call_operand.hbm [shape: f32[2,4,256], index: 2, kind: output, shape index: {}]  }
   0x1   :  { %s8_s11 = sshll.u32 %s4781_s0, 4  ;;  %s9_s11 = int_to_ptr.hbm [resolvable:$true] %s8_s11 }
   0x2   :  { %11 = dma.hbm_to_smem %s9_s11, 16, %s2498_s12, [#allocation5] }
   0x3   :  { %2492 = dma.done.wait [#allocation5], 16 }
   0x4   :  { %2493 = vsyncadd [#allocation5], 4294967280 }
   0x5   :  { %14 = sfence }
   0x6   :  { %15 = vsyncpa [#allocation8], 0 }
   0x7   :  { %16 = vsyncpa [#allocation9], 0  ;;  %s21_s15 = sshll.u32 %s4782_s1, 4  ;;  %s2499_s16 = smov [#allocation7]   ;;  %s22_s15 = int_to_ptr.hbm [resolvable:$true] %s21_s15 }
   0x8   :  { %s23_s17 = sshll.u32 %s2499_s16, 4  ;;  %s2500_s18 = smov 128   ;;  %s24_s17 = int_to_ptr.vmem [resolvable:$true] %s23_s17 }
   0x9   :  { %s2501_s19 = smov 8  }
   0xa   :  { %29 = dma.hbm_to_vmem [thread:$0]  %s22_s15, 256, %s24_s17, [#allocation8], %s2500_s18, %s2500_s18, %s2501_s19  }
   0xb   :  { %2494 = dma.done.wait [#allocation8], 256  }
   0xc   :  { %2495 = vsyncadd [#allocation8], 4294967040  ;;  %v170_v0 = vld [vmem:[#allocation7] sm:$0xff]  ;;  %vm177_vm0 = vcmask 1043456   ;;  %v236_v11 = vld [vmem:[#allocation7 + $0x8] sm:$0xff]  ;;  %v34_v22 = vlaneseq  ;;  %v4784_v27 = vmov 0.0  }
   0xd   :  { %172 = vst [vmem:[#allocation1] ss:$2 sm:$0xff] %v170_v0  ;;  %v2545_v28 = vrot.slane %v4784_v27, 6  ;;  %vm216_vm1 = vcmask 1040384   ;;  %vm218_vm2 = vcmask 1041408   ;;  %s2503_s0 = smov 3  }
   0xe   :  { %vm2548_vm3 = vcmp.lt.s32.totalorder %v34_v22, 384  ;;  %s2504_s1 = smov 2   ;;  %s2505_s20 = smov 48  }
   0xf   :  { %s2506_s21 = smov 32   ;;  %s2507_s22 = smov 16  }
  0x10   :  { %s2508_s23 = smov 112   ;;  %s2509_s24 = smov 96  }
  0x11   :  { %s2510_s25 = smov 80   ;;  %s2511_s26 = smov 1  }
  0x12   :  { %s2349_s27 = sld [smem:[#allocation6 + $0x18]]  ;;  %s2512_s8 = smov 127  }
  0x13   :  { %s2350_s28 = sld [smem:[#allocation6 + $0x49]] }
  0x14   :  { %v173_v1 = vld.sshfl [vmem:[#allocation1] sm:$0xff pattern:$0x75316420]  ;;  %v174_v2 = vld.sshfl [vmem:[#allocation1 + $0x8] sm:$0xff pattern:$0x75316420] }
  0x15   :  { %v178_v3 = vsel %vm177_vm0, %v173_v1, -inf  ;;  %v185_v4 = vsel %vm177_vm0, %v174_v2, -inf  ;;  %192 = vst [vmem:[#allocation1] ss:$2 sm:$0xff] %v170_v0  ;;  %s2308_s29 = sld [smem:[#allocation6 + $0x46]] }
  0x16   :  { %v179_v5 = vrot.slane %v178_v3, 4  ;;  %v186_v6 = vrot.slane %v185_v4, 4  ;;  %s2307_s30 = sld [smem:[#allocation6 + $0x15]] }
  0x17   :  { %s2321_s3 = sld [smem:[#allocation6 + $0x16]] }
  0x18   :  { %v180_v7 = vmax.f32 %v178_v3, %v179_v5  ;;  %v187_v8 = vmax.f32 %v185_v4, %v186_v6  ;;  %s2322_s4 = sld [smem:[#allocation6 + $0x47]] }
  0x19   :  { %s3170_s5 = sld [smem:[#allocation6 + $0x7]] }
  0x1a   :  { %v181_v9 = vrot.slane %v180_v7, 2  ;;  %v188_v10 = vrot.slane %v187_v8, 2  ;;  %s3176_s6 = sld [smem:[#allocation6 + $0xe]] }
  0x1b   :  { %s3181_s7 = sld [smem:[#allocation6 + $0x2a]] }
  0x1c   :  { %v182_v12 = vmax.f32 %v180_v7, %v181_v9  ;;  %v189_v13 = vmax.f32 %v187_v8, %v188_v10  ;;  %v193_v14 = vld.sshfl [vmem:[#allocation1] sm:$0xff pattern:$0x75316420]  ;;  %v194_v15 = vld.sshfl [vmem:[#allocation1 + $0x8] sm:$0xff pattern:$0x75316420] }
  0x1d   :  { %238 = vst [vmem:[#allocation1] ss:$2 sm:$0xff] %v236_v11  ;;  %v197_v16 = vsel %vm177_vm0, %v193_v14, 0.0  ;;  %v204_v17 = vsel %vm177_vm0, %v194_v15, 0.0  ;;  %s3187_s9 = sld [smem:[#allocation6 + $0x3f]] }
  0x1e   :  { %v183_v18 = vrot.slane %v182_v12, 1  ;;  %v190_v19 = vrot.slane %v189_v13, 1  ;;  %v198_v20 = vrot.slane %v197_v16, 4  ;;  %v205_v21 = vrot.slane %v204_v17, 4  ;;  %s3199_s10 = sld [smem:[#allocation6 + $0x38]] }
  0x1f   :  { %s3224_s11 = sld [smem:[#allocation6 + $0x5b]] }
  0x20   :  { %v184_v23 = vmax.f32 %v182_v12, %v183_v18  ;;  %v191_v24 = vmax.f32 %v189_v13, %v190_v19  ;;  %v199_v25 = vadd.f32 %v198_v20, %v197_v16  ;;  %v206_v26 = vadd.f32 %v205_v21, %v204_v17  ;;  %s3245_s12 = sld [smem:[#allocation6 + $0x23]] }
  0x21   :  { %s3288_s13 = sld [smem:[#allocation6 + $0x54]] }
  0x22   :  { %v214_v29 = vrot.slane %v191_v24, 7  ;;  %v200_v30 = vrot.slane %v199_v25, 2  ;;  %v207_v31 = vrot.slane %v206_v26, 2  ;;  %s3329_s14 = sld [smem:[#allocation6 + $0x1]] }
  0x23   :  { %s3343_s15 = sld [smem:[#allocation6 + $0xf]] }
  0x24   :  { %v217_v33 = vsel %vm216_vm1, %v184_v23, %v214_v29  ;;  %v239_v34 = vld.sshfl [vmem:[#allocation1] sm:$0xff pattern:$0x75316420]  ;;  %v240_v35 = vld.sshfl [vmem:[#allocation1 + $0x8] sm:$0xff pattern:$0x75316420]  ;;  %v201_v36 = vadd.f32 %v200_v30, %v199_v25  ;;  %v208_v37 = vadd.f32 %v207_v31, %v206_v26 }
  0x25   :  { %v219_v38 = vsel %vm218_vm2, %v217_v33, %v2545_v28  ;;  %v243_v39 = vsel %vm177_vm0, %v239_v34, -inf  ;;  %v250_v40 = vsel %vm177_vm0, %v240_v35, -inf  ;;  %257 = vst [vmem:[#allocation1] ss:$2 sm:$0xff] %v236_v11  ;;  %s3352_s16 = sld [smem:[#allocation6 + $0x1d]] }
  0x26   :  { %225 = vst.msk [vmem:[#allocation2] ss:$2 sm:$0x7] %vm2548_vm3, %v219_v38  ;;  %v244_v41 = vrot.slane %v243_v39, 4  ;;  %v251_v42 = vrot.slane %v250_v40, 4  ;;  %v202_v43 = vrot.slane %v201_v36, 1 }
  0x27   :  { %v209_v44 = vrot.slane %v208_v37, 1  ;;  %v2586_v38 = vand.u32 127, %v34_v22  ;;  %s3367_s17 = sld [smem:[#allocation6 + $0x32]] }
  0x28   :  { %v245_v45 = vmax.f32 %v243_v39, %v244_v41  ;;  %v252_v46 = vmax.f32 %v250_v40, %v251_v42  ;;  %v203_v47 = vadd.f32 %v202_v43, %v201_v36 }
  0x29   :  { %v210_v48 = vadd.f32 %v209_v44, %v208_v37  ;;  %v2589_v39 = vand.u32 15, %v2586_v38  ;;  %v36_v40 = vadd.s32 128, %v2586_v38  ;;  %vm310_vm5 = vcmp.lt.s32.totalorder %v2586_v38, 3 }
  0x2a   :  { %v246_v49 = vrot.slane %v245_v45, 2  ;;  %v253_v50 = vrot.slane %v252_v46, 2  ;;  %v226_v51 = vmul.f32 0.25, %v203_v47  ;;  %vm576_vm8 = vcmp.lt.s32.totalorder %v2586_v38, 2 }
  0x2b   :  { %v227_v52 = vmul.f32 0.25, %v210_v48  ;;  %4878 = vst [vmem:[#allocation16_spill] sm:$0xff] %v2589_v39  ;;  %vm80_vm4 = vcmp.ge.s32.totalorder %v2589_v39, 3  ;;  %v2595_v44 = vand.u32 15, %v36_v40  ;;  %vm95_vm7 = vcmp.ge.s32.totalorder %v2589_v39, 2 }
  0x2c   :  { %v247_v53 = vmax.f32 %v245_v45, %v246_v49  ;;  %v254_v54 = vmax.f32 %v252_v46, %v253_v50  ;;  %v258_v55 = vld.sshfl [vmem:[#allocation1] sm:$0xff pattern:$0x75316420]  ;;  %v259_v56 = vld.sshfl [vmem:[#allocation1 + $0x8] sm:$0xff pattern:$0x75316420] }
  0x2d   :  { %v230_v57 = vrot.slane %v227_v52, 7  ;;  %v262_v58 = vsel %vm177_vm0, %v258_v55, 0.0  ;;  %v269_v59 = vsel %vm177_vm0, %v259_v56, 0.0  ;;  %v2290_v41 = vsel %vm80_vm4, 1.0, %v4784_v27  ;;  %4879 = vst [vmem:[#allocation17_spill] sm:$0xff] %v2595_v44 }
  0x2e   :  { %v248_v60 = vrot.slane %v247_v53, 1  ;;  %v255_v61 = vrot.slane %v254_v54, 1  ;;  %v263_v62 = vrot.slane %v262_v58, 4  ;;  %v270_v63 = vrot.slane %v269_v59, 4 }
  0x2f   :  { %v231_v0 = vsel %vm216_vm1, %v226_v51, %v230_v57  ;;  %vm81_vm6 = vcmp.ge.s32.totalorder %v2595_v44, 3  ;;  %vm96_vm9 = vcmp.ge.s32.totalorder %v2595_v44, 2  ;;  %vm110_vm10 = vcmp.ge.s32.totalorder %v2589_v39, 1 }
  0x30   :  { %v249_v1 = vmax.f32 %v247_v53, %v248_v60  ;;  %v256_v2 = vmax.f32 %v254_v54, %v255_v61  ;;  %v232_v3 = vsel %vm218_vm2, %v231_v0, %v2545_v28  ;;  %v264_v4 = vadd.f32 %v263_v62, %v262_v58 }
  0x31   :  { %234 = vst.msk [vmem:[#allocation3] ss:$2 sm:$0x7] %vm2548_vm3, %v232_v3  ;;  %v271_v5 = vadd.f32 %v270_v63, %v269_v59  ;;  %v2291_v46 = vsel %vm81_vm6, 1.0, %v4784_v27  ;;  %v2292_v0 = vsel %vm95_vm7, 1.0, %v4784_v27  ;;  %vm835_vm11 = vcmp.lt.s32.totalorder %v2586_v38, 1 }
  0x32   :  { %v278_v6 = vrot.slane %v256_v2, 7  ;;  %v265_v7 = vrot.slane %v264_v4, 2  ;;  %vm111_vm12 = vcmp.ge.s32.totalorder %v2595_v44, 1  ;;  %vm378_vm13 = vcmp.lt.s32.totalorder %v2586_v38, 32 }
  0x33   :  { %v272_v8 = vrot.slane %v271_v5, 2  ;;  %vm413_vm14 = vcmp.lt.s32.totalorder %v2586_v38, 16  ;;  %vm499_vm15 = vcmp.lt.s32.totalorder %v2586_v38, 96  ;;  %vm464_vm4 = vcmp.lt.s32.totalorder %v2586_v38, 112 }
  0x34   :  { %v279_v9 = vsel %vm216_vm1, %v249_v1, %v278_v6  ;;  %v266_v10 = vadd.f32 %v265_v7, %v264_v4  ;;  %v2293_v4 = vsel %vm96_vm9, 1.0, %v4784_v27 }
  0x35   :  { %v280_v11 = vsel %vm218_vm2, %v279_v9, %v2545_v28  ;;  %v273_v12 = vadd.f32 %v272_v8, %v271_v5 }
  0x36   :  { %283 = vst.msk [vmem:[#allocation2 + $0x1] ss:$2 sm:$0x7] %vm2548_vm3, %v280_v11  ;;  %v267_v13 = vrot.slane %v266_v10, 1 }
  0x37   :  { %v274_v14 = vrot.slane %v273_v12, 1 }
  0x38   :  { %v268_v15 = vadd.f32 %v267_v13, %v266_v10 }
  0x39   :  { %v275_v16 = vadd.f32 %v274_v14, %v273_v12 }
  0x3a   :  { %v284_v17 = vmul.f32 0.25, %v268_v15 }
  0x3b   :  { %v285_v18 = vmul.f32 0.25, %v275_v16 }
  0x3d   :  { %v2571_v19 = vld [vmem:[#allocation2] sm:$0x3f]  ;;  %v288_v20 = vrot.slane %v285_v18, 7 }
  0x3e   :  { %4876 = vst [vmem:[#allocation14_spill] sm:$0xff] %v2571_v19 }
  0x3f   :  { %297 = vst [vmem:[#allocation1] ss:$4 sm:$0xff] %v2571_v19  ;;  %v289_v21 = vsel %vm216_vm1, %v284_v17, %v288_v20  ;;  %vm534_vm1 = vcmp.lt.s32.totalorder %v2586_v38, 80 }
  0x40   :  { %v290_v23 = vsel %vm218_vm2, %v289_v21, %v2545_v28 }
  0x41   :  { %293 = vst.msk [vmem:[#allocation3 + $0x1] ss:$2 sm:$0x7] %vm2548_vm3, %v290_v23  ;;  %vm343_vm3 = vcmp.lt.s32.totalorder %v2586_v38, 48 }
  0x46   :  { %v300_v24 = vld.sshfl [vmem:[#allocation1 + $0x10] sm:$0xff pattern:$0x73625140]  ;;  %v298_v25 = vld.sshfl [vmem:[#allocation1] sm:$0xff pattern:$0x73625140] }
  0x47   :  { %308 = vrot.lane.b32.xlu1 %v300_v24, %s2503_s0  ;;  %304 = vrot.lane.b32.xlu0 %v298_v25, %s2503_s0  ;;  %v299_v26 = vld.sshfl [vmem:[#allocation1 + $0x8] sm:$0xff pattern:$0x73625140] }
  0x48   :  { %v2579_v29 = vld [vmem:[#allocation3] sm:$0x3f] }
  0x49   :  { %4877 = vst [vmem:[#allocation15_spill] sm:$0xff] %v2579_v29 }
  0x4a   :  { %318 = vst [vmem:[#allocation1] ss:$4 sm:$0xff] %v2579_v29 }
  0x4f   :  { %306 = vrot.lane.b32.xlu0 %v299_v26, %s2503_s0 }
  0x51   :  { %v319_v30 = vld.sshfl [vmem:[#allocation1] sm:$0xff pattern:$0x73625140]  ;;  %v320_v31 = vld.sshfl [vmem:[#allocation1 + $0x8] sm:$0xff pattern:$0x73625140] }
  0x52   :  { %325 = vrot.lane.b32.xlu1 %v319_v30, %s2503_s0  ;;  %327 = vrot.lane.b32.xlu2 %v320_v31, %s2503_s0  ;;  %v321_v33 = vld.sshfl [vmem:[#allocation1 + $0x10] sm:$0xff pattern:$0x73625140] }
  0x53   :  { %563 = vst [vmem:[#allocation1] ss:$4 sm:$0xff] %v2571_v19 }
  0x5a   :  { %329 = vrot.lane.b32.xlu2 %v321_v33, %s2503_s0  ;;  %v564_v28 = vld.sshfl [vmem:[#allocation1] sm:$0xff pattern:$0x73625140]  ;;  %v565_v32 = vld.sshfl [vmem:[#allocation1 + $0x8] sm:$0xff pattern:$0x73625140] }
  0x5b   :  { %570 = vrot.lane.b32.xlu0 %v564_v28, %s2504_s1  ;;  %572 = vrot.lane.b32.xlu1 %v565_v32, %s2504_s1  ;;  %v566_v34 = vld.sshfl [vmem:[#allocation1 + $0x10] sm:$0xff pattern:$0x73625140]  ;;  %s3374_s0 = sld [smem:[#allocation6 + $0x2b]] }
  0x5c   :  { %583 = vst [vmem:[#allocation1] ss:$4 sm:$0xff] %v2579_v29 }
  0x62   :  { %574 = vrot.lane.b32.xlu2 %v566_v34, %s2504_s1 }
  0x63   :  { %v584_v35 = vld.sshfl [vmem:[#allocation1] sm:$0xff pattern:$0x73625140]  ;;  %v586_v36 = vld.sshfl [vmem:[#allocation1 + $0x10] sm:$0xff pattern:$0x73625140] }
  0x64   :  { %590 = vrot.lane.b32.xlu0 %v584_v35, %s2504_s1  ;;  %v585_v37 = vld.sshfl [vmem:[#allocation1 + $0x8] sm:$0xff pattern:$0x73625140] }
  0x65   :  { %592 = vrot.lane.b32.xlu1 %v585_v37, %s2504_s1  ;;  %822 = vst [vmem:[#allocation1] ss:$4 sm:$0xff] %v2571_v19 }
  0x6a   :  { %594 = vrot.lane.b32.xlu2 %v586_v36, %s2504_s1  ;;  %s3380_s1 = sld [smem:[#allocation6 + $0x40]] }
  0xac   :  { %v328_v52 = vpop.permute.xlu2 %327 }
  0xb4   :  { %v330_v54 = vpop.permute.xlu2 %329 }
  0xb5   :  { %v331_v57 = vsel %vm310_vm5, %v328_v52, %v330_v54 }
  0xb6   :  { %v2657_v59 = vmul.f32 0.0, %v331_v57 }
  0xb9   :  { %v309_v42 = vpop.permute.xlu1 %308  ;;  %v305_v43 = vpop.permute.xlu0 %304 }
  0xba   :  { %v313_v45 = vsel %vm310_vm5, %v309_v42, %v305_v43 }
  0xbb   :  { %v2599_v22 = vmul.f32 %v2290_v41, %v313_v45  ;;  %v824_v45 = vld.sshfl [vmem:[#allocation1 + $0x8] sm:$0xff pattern:$0x73625140] }
  0xbc   :  { %v575_v61 = vpop.permute.xlu2 %574 }
  0xbd   :  { %337 = vrot.lane.b32.xlu0 %v2599_v22, %s2505_s20 }
  0xc1   :  { %v307_v47 = vpop.permute.xlu0 %306 }
  0xc2   :  { %v311_v48 = vsel %vm310_vm5, %v307_v47, %v309_v42  ;;  %v312_v49 = vsel %vm310_vm5, %v305_v43, %v307_v47  ;;  %v825_v42 = vld.sshfl [vmem:[#allocation1 + $0x10] sm:$0xff pattern:$0x73625140]  ;;  %v823_v43 = vld.sshfl [vmem:[#allocation1] sm:$0xff pattern:$0x73625140] }
  0xc3   :  { %v2609_v50 = vmul.f32 %v2291_v46, %v312_v49  ;;  %v2611_v51 = vmul.f32 0.0, %v311_v48  ;;  %842 = vst [vmem:[#allocation1] ss:$4 sm:$0xff] %v2579_v29 }
  0xc4   :  { %v326_v53 = vpop.permute.xlu1 %325  ;;  %v595_v63 = vpop.permute.xlu2 %594 }
  0xc5   :  { %341 = vrot.lane.b32.xlu2 %v2611_v51, %s2505_s20  ;;  %339 = vrot.lane.b32.xlu1 %v2609_v50, %s2505_s20  ;;  %v333_v55 = vsel %vm310_vm5, %v330_v54, %v326_v53  ;;  %v332_v58 = vsel %vm310_vm5, %v326_v53, %v328_v52  ;;  %vm1410_vm5 = vcmp.lt.s32.totalorder %v2586_v38, 127 }
  0xc6   :  { %372 = vrot.lane.b32.xlu0 %v2599_v22, %s2506_s21  ;;  %v2645_v56 = vmul.f32 %v2290_v41, %v333_v55  ;;  %v2659_v60 = vmul.f32 %v2291_v46, %v332_v58 }
  0xcd   :  { %376 = vrot.lane.b32.xlu2 %v2611_v51, %s2506_s21  ;;  %374 = vrot.lane.b32.xlu1 %v2609_v50, %s2506_s21  ;;  %v571_v62 = vpop.permute.xlu0 %570  ;;  %v573_v3 = vpop.permute.xlu1 %572 }
  0xce   :  { %407 = vrot.lane.b32.xlu0 %v2599_v22, %s2507_s22  ;;  %v579_v1 = vsel %vm576_vm8, %v575_v61, %v571_v62  ;;  %v577_v5 = vsel %vm576_vm8, %v573_v3, %v575_v61  ;;  %v578_v6 = vsel %vm576_vm8, %v571_v62, %v573_v3 }
  0xcf   :  { %v2696_v2 = vmul.f32 %v2292_v0, %v579_v1  ;;  %v2712_v8 = vmul.f32 %v2293_v4, %v578_v6  ;;  %v2714_v9 = vmul.f32 0.0, %v577_v5  ;;  %v845_v1 = vld.sshfl [vmem:[#allocation1 + $0x10] sm:$0xff pattern:$0x73625140] }
  0xd5   :  { %411 = vrot.lane.b32.xlu2 %v2611_v51, %s2507_s22  ;;  %409 = vrot.lane.b32.xlu1 %v2609_v50, %s2507_s22 }
  0xd6   :  { %458 = vrot.lane.b32.xlu0 %v2599_v22, %s2508_s23  ;;  %v591_v10 = vpop.permute.xlu0 %590 }
  0xd7   :  { %v593_v12 = vpop.permute.xlu1 %592  ;;  %v598_v26 = vsel %vm576_vm8, %v595_v63, %v591_v10 }
  0xd8   :  { %v2772_v30 = vmul.f32 %v2292_v0, %v598_v26  ;;  %v596_v28 = vsel %vm576_vm8, %v593_v12, %v595_v63  ;;  %v597_v32 = vsel %vm576_vm8, %v591_v10, %v593_v12  ;;  %v843_v63 = vld.sshfl [vmem:[#allocation1] sm:$0xff pattern:$0x73625140]  ;;  %v844_v0 = vld.sshfl [vmem:[#allocation1 + $0x8] sm:$0xff pattern:$0x73625140] }
  0xd9   :  { %v2790_v35 = vmul.f32 %v2293_v4, %v597_v32  ;;  %v2792_v36 = vmul.f32 0.0, %v596_v28  ;;  %1081 = vst [vmem:[#allocation1] ss:$4 sm:$0xff] %v2571_v19 }
  0xdd   :  { %462 = vrot.lane.b32.xlu2 %v2611_v51, %s2508_s23  ;;  %460 = vrot.lane.b32.xlu1 %v2609_v50, %s2508_s23 }
  0xde   :  { %493 = vrot.lane.b32.xlu0 %v2599_v22, %s2509_s24 }
  0xe5   :  { %497 = vrot.lane.b32.xlu2 %v2611_v51, %s2509_s24  ;;  %495 = vrot.lane.b32.xlu1 %v2609_v50, %s2509_s24 }
  0xe6   :  { %528 = vrot.lane.b32.xlu0 %v2599_v22, %s2510_s25 }
  0xed   :  { %532 = vrot.lane.b32.xlu2 %v2611_v51, %s2510_s25  ;;  %530 = vrot.lane.b32.xlu1 %v2609_v50, %s2510_s25 }
  0xee   :  { %347 = vrot.lane.b32.xlu0 %v2645_v56, %s2505_s20 }
  0xf5   :  { %351 = vrot.lane.b32.xlu2 %v2657_v59, %s2505_s20  ;;  %349 = vrot.lane.b32.xlu1 %v2659_v60, %s2505_s20 }
  0xf6   :  { %382 = vrot.lane.b32.xlu0 %v2645_v56, %s2506_s21 }
  0xfd   :  { %386 = vrot.lane.b32.xlu2 %v2657_v59, %s2506_s21  ;;  %384 = vrot.lane.b32.xlu1 %v2659_v60, %s2506_s21 }
  0xfe   :  { %417 = vrot.lane.b32.xlu0 %v2645_v56, %s2507_s22 }
 0x105   :  { %421 = vrot.lane.b32.xlu2 %v2657_v59, %s2507_s22  ;;  %419 = vrot.lane.b32.xlu1 %v2659_v60, %s2507_s22 }
 0x106   :  { %468 = vrot.lane.b32.xlu0 %v2645_v56, %s2508_s23 }
 0x10d   :  { %472 = vrot.lane.b32.xlu2 %v2657_v59, %s2508_s23  ;;  %470 = vrot.lane.b32.xlu1 %v2659_v60, %s2508_s23 }
 0x10e   :  { %503 = vrot.lane.b32.xlu0 %v2645_v56, %s2509_s24 }
 0x115   :  { %507 = vrot.lane.b32.xlu2 %v2657_v59, %s2509_s24  ;;  %505 = vrot.lane.b32.xlu1 %v2659_v60, %s2509_s24 }
 0x116   :  { %538 = vrot.lane.b32.xlu0 %v2645_v56, %s2510_s25 }
 0x11d   :  { %542 = vrot.lane.b32.xlu2 %v2657_v59, %s2510_s25  ;;  %540 = vrot.lane.b32.xlu1 %v2659_v60, %s2510_s25 }
 0x11e   :  { %602 = vrot.lane.b32.xlu0 %v2696_v2, %s2505_s20 }
 0x11f   :  { %v2710_v7 = vpop.permute.xlu2 %341 }
 0x120   :  { %4880 = vst [vmem:[#allocation18_spill] sm:$0xff] %v2710_v7 }
 0x125   :  { %606 = vrot.lane.b32.xlu2 %v2714_v9, %s2505_s20  ;;  %604 = vrot.lane.b32.xlu1 %v2712_v8, %s2505_s20 }
 0x126   :  { %636 = vrot.lane.b32.xlu0 %v2696_v2, %s2506_s21 }
 0x127   :  { %v2722_v11 = vpop.permute.xlu2 %376 }
 0x12d   :  { %640 = vrot.lane.b32.xlu2 %v2714_v9, %s2506_s21  ;;  %638 = vrot.lane.b32.xlu1 %v2712_v8, %s2506_s21 }
 0x12e   :  { %670 = vrot.lane.b32.xlu0 %v2696_v2, %s2507_s22 }
 0x12f   :  { %v2730_v13 = vpop.permute.xlu2 %411  ;;  %v2732_v14 = vpop.permute.xlu0 %337 }
 0x130   :  { %4881 = vst [vmem:[#allocation19_spill] sm:$0xff] %v2732_v14 }
 0x135   :  { %674 = vrot.lane.b32.xlu2 %v2714_v9, %s2507_s22  ;;  %672 = vrot.lane.b32.xlu1 %v2712_v8, %s2507_s22 }
 0x136   :  { %720 = vrot.lane.b32.xlu0 %v2696_v2, %s2508_s23 }
 0x137   :  { %v2740_v15 = vpop.permute.xlu2 %462  ;;  %v2742_v16 = vpop.permute.xlu1 %339 }
 0x138   :  { %4882 = vst [vmem:[#allocation20_spill] sm:$0xff] %v2740_v15  ;;  %v2744_v17 = vpop.permute.xlu0 %372 }
 0x139   :  { %4883 = vst [vmem:[#allocation21_spill] sm:$0xff] %v2742_v16 }
 0x13d   :  { %724 = vrot.lane.b32.xlu2 %v2714_v9, %s2508_s23  ;;  %722 = vrot.lane.b32.xlu1 %v2712_v8, %s2508_s23 }
 0x13e   :  { %754 = vrot.lane.b32.xlu0 %v2696_v2, %s2509_s24 }
 0x13f   :  { %v2752_v18 = vpop.permute.xlu2 %497  ;;  %v2754_v20 = vpop.permute.xlu1 %374 }
 0x140   :  { %v2756_v21 = vpop.permute.xlu0 %407 }
 0x145   :  { %758 = vrot.lane.b32.xlu2 %v2714_v9, %s2509_s24  ;;  %756 = vrot.lane.b32.xlu1 %v2712_v8, %s2509_s24 }
 0x146   :  { %788 = vrot.lane.b32.xlu0 %v2696_v2, %s2510_s25 }
 0x147   :  { %v2764_v23 = vpop.permute.xlu2 %532  ;;  %v2766_v24 = vpop.permute.xlu1 %409 }
 0x148   :  { %v2768_v25 = vpop.permute.xlu0 %458 }
 0x149   :  { %4884 = vst [vmem:[#allocation22_spill] sm:$0xff] %v2768_v25 }
 0x14d   :  { %792 = vrot.lane.b32.xlu2 %v2714_v9, %s2510_s25  ;;  %790 = vrot.lane.b32.xlu1 %v2712_v8, %s2510_s25 }
 0x14e   :  { %611 = vrot.lane.b32.xlu0 %v2772_v30, %s2505_s20 }
 0x14f   :  { %v2780_v31 = vpop.permute.xlu2 %351  ;;  %v2782_v33 = vpop.permute.xlu1 %460 }
 0x150   :  { %4885 = vst [vmem:[#allocation23_spill] sm:$0xff] %v2780_v31  ;;  %v2788_v34 = vpop.permute.xlu0 %493 }
 0x151   :  { %4886 = vst [vmem:[#allocation24_spill] sm:$0xff] %v2782_v33 }
 0x155   :  { %615 = vrot.lane.b32.xlu2 %v2792_v36, %s2505_s20  ;;  %613 = vrot.lane.b32.xlu1 %v2790_v35, %s2505_s20 }
 0x156   :  { %645 = vrot.lane.b32.xlu0 %v2772_v30, %s2506_s21 }
 0x157   :  { %v2800_v37 = vpop.permute.xlu2 %386  ;;  %v2802_v40 = vpop.permute.xlu1 %495 }
 0x158   :  { %v2804_v41 = vpop.permute.xlu0 %528 }
 0x15d   :  { %649 = vrot.lane.b32.xlu2 %v2792_v36, %s2506_s21  ;;  %647 = vrot.lane.b32.xlu1 %v2790_v35, %s2506_s21 }
 0x15e   :  { %679 = vrot.lane.b32.xlu0 %v2772_v30, %s2507_s22 }
 0x15f   :  { %v2813_v46 = vpop.permute.xlu2 %421  ;;  %v2815_v47 = vpop.permute.xlu1 %530 }
 0x160   :  { %v2817_v48 = vpop.permute.xlu0 %347 }
 0x161   :  { %4887 = vst [vmem:[#allocation25_spill] sm:$0xff] %v2817_v48 }
 0x165   :  { %683 = vrot.lane.b32.xlu2 %v2792_v36, %s2507_s22  ;;  %681 = vrot.lane.b32.xlu1 %v2790_v35, %s2507_s22 }
 0x166   :  { %729 = vrot.lane.b32.xlu0 %v2772_v30, %s2508_s23 }
 0x167   :  { %v2825_v49 = vpop.permute.xlu2 %472  ;;  %v2827_v52 = vpop.permute.xlu1 %349 }
 0x168   :  { %4888 = vst [vmem:[#allocation26_spill] sm:$0xff] %v2825_v49  ;;  %v2829_v53 = vpop.permute.xlu0 %382 }
 0x169   :  { %4889 = vst [vmem:[#allocation27_spill] sm:$0xff] %v2827_v52 }
 0x16d   :  { %733 = vrot.lane.b32.xlu2 %v2792_v36, %s2508_s23  ;;  %731 = vrot.lane.b32.xlu1 %v2790_v35, %s2508_s23 }
 0x16e   :  { %763 = vrot.lane.b32.xlu0 %v2772_v30, %s2509_s24 }
 0x16f   :  { %v2837_v54 = vpop.permute.xlu2 %507  ;;  %v2839_v55 = vpop.permute.xlu1 %384 }
 0x170   :  { %4890 = vst [vmem:[#allocation28_spill] sm:$0xff] %v2837_v54  ;;  %v2841_v57 = vpop.permute.xlu0 %417 }
 0x175   :  { %767 = vrot.lane.b32.xlu2 %v2792_v36, %s2509_s24  ;;  %765 = vrot.lane.b32.xlu1 %v2790_v35, %s2509_s24 }
 0x176   :  { %797 = vrot.lane.b32.xlu0 %v2772_v30, %s2510_s25 }
 0x177   :  { %v2849_v58 = vpop.permute.xlu2 %542  ;;  %v2851_v61 = vpop.permute.xlu1 %419 }
 0x178   :  { %v2853_v62 = vpop.permute.xlu0 %468 }
 0x179   :  { %4891 = vst [vmem:[#allocation29_spill] sm:$0xff] %v2853_v62 }
 0x17d   :  { %801 = vrot.lane.b32.xlu2 %v2792_v36, %s2510_s25  ;;  %799 = vrot.lane.b32.xlu1 %v2790_v35, %s2510_s25 }
 0x17e   :  { %829 = vrot.lane.b32.xlu0 %v823_v43, %s2511_s26 }
 0x17f   :  { %v2860_v3 = vpop.permute.xlu2 %606  ;;  %v2862_v4 = vpop.permute.xlu1 %470 }
 0x180   :  { %4892 = vst [vmem:[#allocation30_spill] sm:$0xff] %v2860_v3  ;;  %v2864_v5 = vpop.permute.xlu0 %503 }
 0x181   :  { %4893 = vst [vmem:[#allocation31_spill] sm:$0xff] %v2862_v4 }
 0x185   :  { %831 = vrot.lane.b32.xlu1 %v824_v45, %s2511_s26  ;;  %833 = vrot.lane.b32.xlu2 %v825_v42, %s2511_s26 }
 0x186   :  { %849 = vrot.lane.b32.xlu0 %v843_v63, %s2511_s26 }
 0x187   :  { %v2866_v6 = vpop.permute.xlu2 %640  ;;  %v2868_v10 = vpop.permute.xlu1 %505 }
 0x188   :  { %4894 = vst [vmem:[#allocation32_spill] sm:$0xff] %v2866_v6  ;;  %v2870_v12 = vpop.permute.xlu0 %538 }
 0x189   :  { %4895 = vst [vmem:[#allocation33_spill] sm:$0xff] %v2868_v10 }
 0x18d   :  { %851 = vrot.lane.b32.xlu1 %v844_v0, %s2511_s26  ;;  %853 = vrot.lane.b32.xlu2 %v845_v1, %s2511_s26  ;;  %s3414_s26 = sld [smem:[#allocation6 + $0x4e]] }
 0x18f   :  { %v2872_v26 = vpop.permute.xlu2 %674  ;;  %v2874_v28 = vpop.permute.xlu1 %540 }
 0x190   :  { %4896 = vst [vmem:[#allocation34_spill] sm:$0xff] %v2872_v26  ;;  %v2876_v32 = vpop.permute.xlu0 %602 }
 0x191   :  { %4897 = vst [vmem:[#allocation35_spill] sm:$0xff] %v2876_v32 }
 0x197   :  { %v2878_v43 = vpop.permute.xlu2 %724  ;;  %v2880_v27 = vpop.permute.xlu1 %604 }
 0x198   :  { %4898 = vst [vmem:[#allocation36_spill] sm:$0xff] %v2878_v43  ;;  %v2882_v42 = vpop.permute.xlu0 %636 }
 0x199   :  { %4899 = vst [vmem:[#allocation37_spill] sm:$0xff] %v2880_v27 }
 0x19a   :  { %4900 = vst [vmem:[#allocation38_spill] sm:$0xff] %v2882_v42 }
 0x19f   :  { %v2884_v45 = vpop.permute.xlu2 %758  ;;  %v2886_v63 = vpop.permute.xlu1 %638 }
 0x1a0   :  { %4901 = vst [vmem:[#allocation39_spill] sm:$0xff] %v2884_v45  ;;  %v2888_v6 = vpop.permute.xlu0 %670 }
 0x1a1   :  { %4902 = vst [vmem:[#allocation40_spill] sm:$0xff] %v2886_v63 }
 0x1a2   :  { %4903 = vst [vmem:[#allocation41_spill] sm:$0xff] %v2888_v6  ;;  %v1227_v6 = vstv %s2349_s27  ;;  %s3441_s27 = sld [smem:[#allocation6 + $0x5c]] }
 0x1a3   :  { %v1228_v27 = vmul.f32 %v1227_v6, %v2571_v19 }
 0x1a7   :  { %v2890_v0 = vpop.permute.xlu1 %672  ;;  %v2892_v1 = vpop.permute.xlu2 %792 }
 0x1a8   :  { %4904 = vst [vmem:[#allocation42_spill] sm:$0xff] %v2890_v0  ;;  %v2894_v4 = vpop.permute.xlu0 %720 }
 0x1a9   :  { %4905 = vst [vmem:[#allocation43_spill] sm:$0xff] %v2892_v1 }
 0x1aa   :  { %4906 = vst [vmem:[#allocation44_spill] sm:$0xff] %v2894_v4 }
 0x1af   :  { %v2896_v49 = vpop.permute.xlu1 %722  ;;  %v2900_v33 = vpop.permute.xlu2 %615 }
 0x1b0   :  { %4907 = vst [vmem:[#allocation45_spill] sm:$0xff] %v2896_v49  ;;  %v2898_v62 = vpop.permute.xlu0 %754 }
 0x1b1   :  { %4908 = vst [vmem:[#allocation46_spill] sm:$0xff] %v2898_v62 }
 0x1b2   :  { %4909 = vst [vmem:[#allocation47_spill] sm:$0xff] %v2900_v33 }
 0x1b7   :  { %v2902_v15 = vpop.permute.xlu1 %756  ;;  %v2906_v45 = vpop.permute.xlu2 %649 }
 0x1b8   :  { %4910 = vst [vmem:[#allocation48_spill] sm:$0xff] %v2902_v15  ;;  %v2904_v42 = vpop.permute.xlu0 %788 }
 0x1b9   :  { %4911 = vst [vmem:[#allocation49_spill] sm:$0xff] %v2904_v42 }
 0x1ba   :  { %4912 = vst [vmem:[#allocation50_spill] sm:$0xff] %v2906_v45 }
 0x1bf   :  { %v2908_v63 = vpop.permute.xlu1 %790  ;;  %v2912_v16 = vpop.permute.xlu2 %683 }
 0x1c0   :  { %4913 = vst [vmem:[#allocation51_spill] sm:$0xff] %v2908_v63  ;;  %v2910_v25 = vpop.permute.xlu0 %611 }
 0x1c1   :  { %4914 = vst [vmem:[#allocation52_spill] sm:$0xff] %v2910_v25 }
 0x1c2   :  { %4915 = vst [vmem:[#allocation53_spill] sm:$0xff] %v2912_v16 }
 0x1c7   :  { %v2914_v7 = vpop.permute.xlu1 %613  ;;  %v2920_v62 = vpop.permute.xlu2 %733 }
 0x1c8   :  { %4916 = vst [vmem:[#allocation54_spill] sm:$0xff] %v2914_v7  ;;  %v2916_v14 = vpop.permute.xlu0 %645 }
 0x1c9   :  { %4917 = vst [vmem:[#allocation55_spill] sm:$0xff] %v2916_v14 }
 0x1ca   :  { %4919 = vst [vmem:[#allocation57_spill] sm:$0xff] %v2920_v62 }
 0x1cf   :  { %v2918_v52 = vpop.permute.xlu1 %647  ;;  %v2928_v45 = vpop.permute.xlu2 %767 }
 0x1d0   :  { %4918 = vst [vmem:[#allocation56_spill] sm:$0xff] %v2918_v52  ;;  %v2922_v31 = vpop.permute.xlu0 %679 }
 0x1d1   :  { %4920 = vst [vmem:[#allocation58_spill] sm:$0xff] %v2922_v31 }
 0x1d2   :  { %4923 = vst [vmem:[#allocation61_spill] sm:$0xff] %v2928_v45 }
 0x1d7   :  { %v2924_v15 = vpop.permute.xlu1 %681  ;;  %v2934_v42 = vpop.permute.xlu2 %801 }
 0x1d8   :  { %4921 = vst [vmem:[#allocation59_spill] sm:$0xff] %v2924_v15  ;;  %v2926_v48 = vpop.permute.xlu0 %729 }
 0x1d9   :  { %4922 = vst [vmem:[#allocation60_spill] sm:$0xff] %v2926_v48  ;;  %v4930_v48 = vmov 0.0  }
 0x1da   :  { %4926 = vst [vmem:[#allocation64_spill] sm:$0xff] %v2934_v42  ;;  %v2294_v15 = vsel %vm110_vm10, 1.0, %v4930_v48  ;;  %vm1669_vm10 = vcmp.lt.s32.totalorder %v2586_v38, 126 }
 0x1df   :  { %v2930_v63 = vpop.permute.xlu1 %731  ;;  %v834_v52 = vpop.permute.xlu2 %833 }
 0x1e0   :  { %4924 = vst [vmem:[#allocation62_spill] sm:$0xff] %v2930_v63  ;;  %v2932_v1 = vpop.permute.xlu0 %763 }
 0x1e1   :  { %4925 = vst [vmem:[#allocation63_spill] sm:$0xff] %v2932_v1 }
 0x1e7   :  { %v2936_v49 = vpop.permute.xlu1 %765  ;;  %v854_v39 = vpop.permute.xlu2 %853 }
 0x1e8   :  { %4927 = vst [vmem:[#allocation65_spill] sm:$0xff] %v2936_v49  ;;  %v2938_v14 = vpop.permute.xlu0 %797  ;;  %v2295_v49 = vsel %vm111_vm12, 1.0, %v4930_v48 }
 0x1e9   :  { %4928 = vst [vmem:[#allocation66_spill] sm:$0xff] %v2938_v14 }
 0x1ef   :  { %v2942_v62 = vpop.permute.xlu1 %799 }
 0x1f0   :  { %4929 = vst [vmem:[#allocation67_spill] sm:$0xff] %v2942_v62  ;;  %v830_v45 = vpop.permute.xlu0 %829 }
 0x1f1   :  { %v838_v63 = vsel %vm835_vm11, %v834_v52, %v830_v45 }
 0x1f2   :  { %v2947_v1 = vmul.f32 %v2294_v15, %v838_v63 }
 0x1f4   :  { %4931 = vst [vmem:[#allocation68_spill] sm:$0xff] %v2947_v1  ;;  %861 = vrot.lane.b32.xlu0 %v2947_v1, %s2505_s20 }
 0x1f7   :  { %v832_v42 = vpop.permute.xlu1 %831 }
 0x1f8   :  { %v836_v14 = vsel %vm835_vm11, %v832_v42, %v834_v52  ;;  %v837_v62 = vsel %vm835_vm11, %v830_v45, %v832_v42  ;;  %v850_v16 = vpop.permute.xlu0 %849 }
 0x1f9   :  { %v2957_v31 = vmul.f32 %v2295_v49, %v837_v62  ;;  %v2959_v63 = vmul.f32 0.0, %v836_v14  ;;  %v857_v44 = vsel %vm835_vm11, %v854_v39, %v850_v16 }
 0x1fa   :  { %v2963_v7 = vmul.f32 %v2294_v15, %v857_v44  ;;  %v1083_v15 = vld.sshfl [vmem:[#allocation1 + $0x8] sm:$0xff pattern:$0x73625140] }
 0x1fb   :  { %4932 = vst [vmem:[#allocation69_spill] sm:$0xff] %v2957_v31  ;;  %865 = vrot.lane.b32.xlu2 %v2959_v63, %s2505_s20  ;;  %863 = vrot.lane.b32.xlu1 %v2957_v31, %s2505_s20 }
 0x1fc   :  { %4933 = vst [vmem:[#allocation70_spill] sm:$0xff] %v2959_v63  ;;  %870 = vrot.lane.b32.xlu0 %v2963_v7, %s2505_s20 }
 0x1fd   :  { %4934 = vst [vmem:[#allocation71_spill] sm:$0xff] %v2963_v7 }
 0x1ff   :  { %v852_v52 = vpop.permute.xlu1 %851 }
 0x200   :  { %v855_v62 = vsel %vm835_vm11, %v852_v52, %v854_v39  ;;  %v856_v14 = vsel %vm835_vm11, %v850_v16, %v852_v52  ;;  %v1082_v39 = vld.sshfl [vmem:[#allocation1] sm:$0xff pattern:$0x73625140]  ;;  %v1084_v16 = vld.sshfl [vmem:[#allocation1 + $0x10] sm:$0xff pattern:$0x73625140] }
 0x201   :  { %v2975_v42 = vmul.f32 %v2295_v49, %v856_v14  ;;  %v2977_v44 = vmul.f32 0.0, %v855_v62  ;;  %1097 = vst [vmem:[#allocation1] ss:$4 sm:$0xff] %v2579_v29 }
 0x203   :  { %4935 = vst [vmem:[#allocation72_spill] sm:$0xff] %v2975_v42  ;;  %874 = vrot.lane.b32.xlu2 %v2977_v44, %s2505_s20  ;;  %872 = vrot.lane.b32.xlu1 %v2975_v42, %s2505_s20 }
 0x204   :  { %4936 = vst [vmem:[#allocation73_spill] sm:$0xff] %v2977_v44  ;;  %895 = vrot.lane.b32.xlu0 %v2947_v1, %s2506_s21 }
 0x208   :  { %v1098_v49 = vld.sshfl [vmem:[#allocation1] sm:$0xff pattern:$0x73625140]  ;;  %v1099_v45 = vld.sshfl [vmem:[#allocation1 + $0x8] sm:$0xff pattern:$0x73625140] }
 0x209   :  { %v1100_v52 = vld.sshfl [vmem:[#allocation1 + $0x10] sm:$0xff pattern:$0x73625140] }
 0x20a   :  { %1129 = vst [vmem:[#allocation1] ss:$4 sm:$0xff] %v2571_v19 }
 0x20b   :  { %899 = vrot.lane.b32.xlu2 %v2959_v63, %s2506_s21  ;;  %897 = vrot.lane.b32.xlu1 %v2957_v31, %s2506_s21 }
 0x20c   :  { %904 = vrot.lane.b32.xlu0 %v2963_v7, %s2506_s21 }
 0x211   :  { %v1130_v62 = vld.sshfl [vmem:[#allocation1] sm:$0xff pattern:$0x73625140]  ;;  %v1131_v14 = vld.sshfl [vmem:[#allocation1 + $0x8] sm:$0xff pattern:$0x73625140] }
 0x212   :  { %v1132_v48 = vld.sshfl [vmem:[#allocation1 + $0x10] sm:$0xff pattern:$0x73625140] }
 0x213   :  { %908 = vrot.lane.b32.xlu2 %v2977_v44, %s2506_s21  ;;  %906 = vrot.lane.b32.xlu1 %v2975_v42, %s2506_s21  ;;  %1145 = vst [vmem:[#allocation1] ss:$4 sm:$0xff] %v2579_v29 }
 0x214   :  { %929 = vrot.lane.b32.xlu0 %v2947_v1, %s2507_s22 }
 0x21a   :  { %v1146_v43 = vld.sshfl [vmem:[#allocation1] sm:$0xff pattern:$0x73625140]  ;;  %v1147_v4 = vld.sshfl [vmem:[#allocation1 + $0x8] sm:$0xff pattern:$0x73625140] }
 0x21b   :  { %933 = vrot.lane.b32.xlu2 %v2959_v63, %s2507_s22  ;;  %931 = vrot.lane.b32.xlu1 %v2957_v31, %s2507_s22  ;;  %v1148_v33 = vld.sshfl [vmem:[#allocation1 + $0x10] sm:$0xff pattern:$0x73625140] }
 0x21c   :  { %938 = vrot.lane.b32.xlu0 %v2963_v7, %s2507_s22  ;;  %1177 = vst [vmem:[#allocation1] ss:$4 sm:$0xff] %v2571_v19 }
 0x223   :  { %942 = vrot.lane.b32.xlu2 %v2977_v44, %s2507_s22  ;;  %940 = vrot.lane.b32.xlu1 %v2975_v42, %s2507_s22  ;;  %v1178_v25 = vld.sshfl [vmem:[#allocation1] sm:$0xff pattern:$0x73625140]  ;;  %v1179_v0 = vld.sshfl [vmem:[#allocation1 + $0x8] sm:$0xff pattern:$0x73625140] }
 0x224   :  { %979 = vrot.lane.b32.xlu0 %v2947_v1, %s2508_s23  ;;  %v1180_v26 = vld.sshfl [vmem:[#allocation1 + $0x10] sm:$0xff pattern:$0x73625140] }
 0x225   :  { %1193 = vst [vmem:[#allocation1] ss:$4 sm:$0xff] %v2579_v29 }
 0x22b   :  { %983 = vrot.lane.b32.xlu2 %v2959_v63, %s2508_s23  ;;  %981 = vrot.lane.b32.xlu1 %v2957_v31, %s2508_s23 }
 0x22c   :  { %988 = vrot.lane.b32.xlu0 %v2963_v7, %s2508_s23  ;;  %v1194_v3 = vld.sshfl [vmem:[#allocation1] sm:$0xff pattern:$0x73625140]  ;;  %v1196_v32 = vld.sshfl [vmem:[#allocation1 + $0x10] sm:$0xff pattern:$0x73625140] }
 0x233   :  { %992 = vrot.lane.b32.xlu2 %v2977_v44, %s2508_s23  ;;  %990 = vrot.lane.b32.xlu1 %v2975_v42, %s2508_s23 }
 0x234   :  { %1013 = vrot.lane.b32.xlu0 %v2947_v1, %s2509_s24 }
 0x23b   :  { %1017 = vrot.lane.b32.xlu2 %v2959_v63, %s2509_s24  ;;  %1015 = vrot.lane.b32.xlu1 %v2957_v31, %s2509_s24 }
 0x23c   :  { %1022 = vrot.lane.b32.xlu0 %v2963_v7, %s2509_s24 }
 0x243   :  { %1026 = vrot.lane.b32.xlu2 %v2977_v44, %s2509_s24  ;;  %1024 = vrot.lane.b32.xlu1 %v2975_v42, %s2509_s24 }
 0x244   :  { %1047 = vrot.lane.b32.xlu0 %v2947_v1, %s2510_s25  ;;  %v1195_v1 = vld.sshfl [vmem:[#allocation1 + $0x8] sm:$0xff pattern:$0x73625140] }
 0x245   :  { %1230 = vst [vmem:[#allocation1] ss:$4 sm:$0xff] %v1228_v27 }
 0x24b   :  { %1051 = vrot.lane.b32.xlu2 %v2959_v63, %s2510_s25  ;;  %1049 = vrot.lane.b32.xlu1 %v2957_v31, %s2510_s25  ;;  %v1240_v63 = vstv %s2350_s28  ;;  %s3464_s28 = sld [smem:[#allocation6 + $0x17]] }
 0x24c   :  { %1056 = vrot.lane.b32.xlu0 %v2963_v7, %s2510_s25  ;;  %v1241_v10 = vmul.f32 %v1240_v63, %v2579_v29  ;;  %v3053_v7 = vld.sshfl [vmem:[#allocation1] sm:$0xff pattern:$0x73625140]  ;;  %v3055_v6 = vld.sshfl [vmem:[#allocation1 + $0x8] sm:$0xff pattern:$0x73625140] }
 0x24d   :  { %4937 = vst [vmem:[#allocation74_spill] sm:$0xff] %v3053_v7  ;;  %v3057_v54 = vld.sshfl [vmem:[#allocation1 + $0x10] sm:$0xff pattern:$0x73625140] }
 0x24e   :  { %4938 = vst [vmem:[#allocation75_spill] sm:$0xff] %v3055_v6 }
 0x24f   :  { %4939 = vst [vmem:[#allocation76_spill] sm:$0xff] %v3057_v54 }
 0x250   :  { %1243 = vst [vmem:[#allocation1] ss:$4 sm:$0xff] %v1241_v10 }
 0x253   :  { %1060 = vrot.lane.b32.xlu2 %v2977_v44, %s2510_s25  ;;  %1058 = vrot.lane.b32.xlu1 %v2975_v42, %s2510_s25 }
 0x254   :  { %1088 = vrot.lane.b32.xlu0 %v1082_v39, %s2505_s20 }
 0x255   :  { %v3050_v31 = vpop.permute.xlu2 %865 }
 0x257   :  { %v3064_v39 = vld.sshfl [vmem:[#allocation1] sm:$0xff pattern:$0x73625140]  ;;  %v3066_v44 = vld.sshfl [vmem:[#allocation1 + $0x8] sm:$0xff pattern:$0x73625140] }
 0x258   :  { %4941 = vst [vmem:[#allocation78_spill] sm:$0xff] %v3064_v39  ;;  %v3070_v63 = vld.sshfl [vmem:[#allocation1 + $0x10] sm:$0xff pattern:$0x73625140] }
 0x259   :  { %4942 = vst [vmem:[#allocation79_spill] sm:$0xff] %v3066_v44 }
 0x25a   :  { %4943 = vst [vmem:[#allocation80_spill] sm:$0xff] %v3070_v63 }
 0x25b   :  { %1090 = vrot.lane.b32.xlu1 %v1083_v15, %s2505_s20  ;;  %1092 = vrot.lane.b32.xlu2 %v1084_v16, %s2505_s20  ;;  %1253 = vst [vmem:[#allocation1] ss:$4 sm:$0xff] %v2571_v19 }
 0x25c   :  { %1104 = vrot.lane.b32.xlu0 %v1098_v49, %s2505_s20 }
 0x25d   :  { %v3062_v27 = vpop.permute.xlu2 %874 }
 0x25e   :  { %4940 = vst [vmem:[#allocation77_spill] sm:$0xff] %v3062_v27 }
 0x262   :  { %v1254_v16 = vld.sshfl [vmem:[#allocation1] sm:$0xff pattern:$0x73625140]  ;;  %v1255_v49 = vld.sshfl [vmem:[#allocation1 + $0x8] sm:$0xff pattern:$0x73625140] }
 0x263   :  { %1106 = vrot.lane.b32.xlu1 %v1099_v45, %s2505_s20  ;;  %1108 = vrot.lane.b32.xlu2 %v1100_v52, %s2505_s20  ;;  %v1256_v45 = vld.sshfl [vmem:[#allocation1 + $0x10] sm:$0xff pattern:$0x73625140] }
 0x264   :  { %1136 = vrot.lane.b32.xlu0 %v1130_v62, %s2506_s21  ;;  %1269 = vst [vmem:[#allocation1] ss:$4 sm:$0xff] %v2579_v29 }
 0x265   :  { %v3074_v15 = vpop.permute.xlu2 %899 }
 0x266   :  { %v3076_v10 = vpop.permute.xlu0 %861 }
 0x26b   :  { %1138 = vrot.lane.b32.xlu1 %v1131_v14, %s2506_s21  ;;  %1140 = vrot.lane.b32.xlu2 %v1132_v48, %s2506_s21  ;;  %v1270_v48 = vld.sshfl [vmem:[#allocation1] sm:$0xff pattern:$0x73625140]  ;;  %v1271_v14 = vld.sshfl [vmem:[#allocation1 + $0x8] sm:$0xff pattern:$0x73625140] }
 0x26c   :  { %1152 = vrot.lane.b32.xlu0 %v1146_v43, %s2506_s21  ;;  %v1272_v63 = vld.sshfl [vmem:[#allocation1 + $0x10] sm:$0xff pattern:$0x73625140] }
 0x26d   :  { %v3081_v52 = vpop.permute.xlu2 %908  ;;  %v3083_v44 = vpop.permute.xlu1 %863  ;;  %1301 = vst [vmem:[#allocation1] ss:$4 sm:$0xff] %v2571_v19 }
 0x26e   :  { %v3086_v62 = vpop.permute.xlu0 %870 }
 0x26f   :  { %4944 = vst [vmem:[#allocation81_spill] sm:$0xff] %v3086_v62 }
 0x273   :  { %1154 = vrot.lane.b32.xlu1 %v1147_v4, %s2506_s21  ;;  %1156 = vrot.lane.b32.xlu2 %v1148_v33, %s2506_s21 }
 0x274   :  { %1184 = vrot.lane.b32.xlu0 %v1178_v25, %s2507_s22  ;;  %v1302_v4 = vld.sshfl [vmem:[#allocation1] sm:$0xff pattern:$0x73625140]  ;;  %v1303_v7 = vld.sshfl [vmem:[#allocation1 + $0x8] sm:$0xff pattern:$0x73625140] }
 0x275   :  { %v3091_v39 = vpop.permute.xlu2 %933  ;;  %v3093_v43 = vpop.permute.xlu1 %872 }
 0x276   :  { %4945 = vst [vmem:[#allocation82_spill] sm:$0xff] %v3091_v39  ;;  %v3095_v6 = vpop.permute.xlu0 %895  ;;  %v1304_v39 = vld.sshfl [vmem:[#allocation1 + $0x10] sm:$0xff pattern:$0x73625140] }
 0x277   :  { %4946 = vst [vmem:[#allocation83_spill] sm:$0xff] %v3093_v43 }
 0x278   :  { %1317 = vst [vmem:[#allocation1] ss:$4 sm:$0xff] %v2579_v29 }
 0x27b   :  { %1186 = vrot.lane.b32.xlu1 %v1179_v0, %s2507_s22  ;;  %1188 = vrot.lane.b32.xlu2 %v1180_v26, %s2507_s22 }
 0x27c   :  { %1200 = vrot.lane.b32.xlu0 %v1194_v3, %s2507_s22 }
 0x27d   :  { %v3101_v33 = vpop.permute.xlu2 %942  ;;  %v3103_v25 = vpop.permute.xlu1 %897 }
 0x27e   :  { %4947 = vst [vmem:[#allocation84_spill] sm:$0xff] %v3101_v33  ;;  %v3105_v54 = vpop.permute.xlu0 %904 }
 0x27f   :  { %v1318_v33 = vld.sshfl [vmem:[#allocation1] sm:$0xff pattern:$0x73625140]  ;;  %v1319_v43 = vld.sshfl [vmem:[#allocation1 + $0x8] sm:$0xff pattern:$0x73625140] }
 0x280   :  { %v1320_v42 = vld.sshfl [vmem:[#allocation1 + $0x10] sm:$0xff pattern:$0x73625140] }
 0x281   :  { %1349 = vst [vmem:[#allocation1] ss:$4 sm:$0xff] %v2571_v19 }
 0x283   :  { %1202 = vrot.lane.b32.xlu1 %v1195_v1, %s2507_s22  ;;  %1204 = vrot.lane.b32.xlu2 %v1196_v32, %s2507_s22 }
 0x284   :  { %1260 = vrot.lane.b32.xlu0 %v1254_v16, %s2508_s23 }
 0x285   :  { %v3111_v26 = vpop.permute.xlu2 %983  ;;  %v3113_v3 = vpop.permute.xlu1 %906 }
 0x286   :  { %4948 = vst [vmem:[#allocation85_spill] sm:$0xff] %v3111_v26  ;;  %v3115_v0 = vpop.permute.xlu0 %929 }
 0x287   :  { %4949 = vst [vmem:[#allocation86_spill] sm:$0xff] %v3115_v0 }
 0x288   :  { %v1350_v26 = vld.sshfl [vmem:[#allocation1] sm:$0xff pattern:$0x73625140]  ;;  %v1351_v27 = vld.sshfl [vmem:[#allocation1 + $0x8] sm:$0xff pattern:$0x73625140] }
 0x289   :  { %v1352_v0 = vld.sshfl [vmem:[#allocation1 + $0x10] sm:$0xff pattern:$0x73625140] }
 0x28a   :  { %1365 = vst [vmem:[#allocation1] ss:$4 sm:$0xff] %v2579_v29 }
 0x28b   :  { %1262 = vrot.lane.b32.xlu1 %v1255_v49, %s2508_s23  ;;  %1264 = vrot.lane.b32.xlu2 %v1256_v45, %s2508_s23 }
 0x28c   :  { %1276 = vrot.lane.b32.xlu0 %v1270_v48, %s2508_s23 }
 0x28d   :  { %v3121_v32 = vpop.permute.xlu2 %992  ;;  %v3123_v1 = vpop.permute.xlu1 %931 }
 0x28e   :  { %4950 = vst [vmem:[#allocation87_spill] sm:$0xff] %v3121_v32  ;;  %v3125_v16 = vpop.permute.xlu0 %938 }
 0x28f   :  { %4951 = vst [vmem:[#allocation88_spill] sm:$0xff] %v3123_v1 }
 0x290   :  { %4952 = vst [vmem:[#allocation89_spill] sm:$0xff] %v3125_v16 }
 0x291   :  { %v1366_v1 = vld.sshfl [vmem:[#allocation1] sm:$0xff pattern:$0x73625140]  ;;  %v1367_v32 = vld.sshfl [vmem:[#allocation1 + $0x8] sm:$0xff pattern:$0x73625140] }
 0x292   :  { %v1368_v16 = vld.sshfl [vmem:[#allocation1 + $0x10] sm:$0xff pattern:$0x73625140] }
 0x293   :  { %1278 = vrot.lane.b32.xlu1 %v1271_v14, %s2508_s23  ;;  %1280 = vrot.lane.b32.xlu2 %v1272_v63, %s2508_s23  ;;  %1397 = vst [vmem:[#allocation1] ss:$4 sm:$0xff] %v2571_v19 }
 0x294   :  { %1308 = vrot.lane.b32.xlu0 %v1302_v4, %s2509_s24 }
 0x295   :  { %v3131_v49 = vpop.permute.xlu2 %1017  ;;  %v3133_v45 = vpop.permute.xlu1 %940 }
 0x296   :  { %4953 = vst [vmem:[#allocation90_spill] sm:$0xff] %v3133_v45  ;;  %v3135_v48 = vpop.permute.xlu0 %979 }
 0x297   :  { %4954 = vst [vmem:[#allocation91_spill] sm:$0xff] %v3135_v48 }
 0x29a   :  { %v1398_v45 = vld.sshfl [vmem:[#allocation1] sm:$0xff pattern:$0x73625140]  ;;  %v3147_v62 = vld.sshfl [vmem:[#allocation1 + $0x8] sm:$0xff pattern:$0x73625140] }
 0x29b   :  { %1310 = vrot.lane.b32.xlu1 %v1303_v7, %s2509_s24  ;;  %1312 = vrot.lane.b32.xlu2 %v1304_v39, %s2509_s24  ;;  %v3149_v48 = vld.sshfl [vmem:[#allocation1 + $0x10] sm:$0xff pattern:$0x73625140] }
 0x29c   :  { %1324 = vrot.lane.b32.xlu0 %v1318_v33, %s2509_s24  ;;  %1417 = vst [vmem:[#allocation1] ss:$4 sm:$0xff] %v2579_v29 }
 0x29d   :  { %v3141_v63 = vpop.permute.xlu2 %1026  ;;  %v3143_v14 = vpop.permute.xlu1 %981 }
 0x29e   :  { %4955 = vst [vmem:[#allocation92_spill] sm:$0xff] %v3141_v63  ;;  %v3145_v4 = vpop.permute.xlu0 %988 }
 0x29f   :  { %4956 = vst [vmem:[#allocation93_spill] sm:$0xff] %v3143_v14 }
 0x2a0   :  { %4957 = vst [vmem:[#allocation94_spill] sm:$0xff] %v3145_v4 }
 0x2a3   :  { %1326 = vrot.lane.b32.xlu1 %v1319_v43, %s2509_s24  ;;  %1328 = vrot.lane.b32.xlu2 %v1320_v42, %s2509_s24  ;;  %v1418_v29 = vld.sshfl [vmem:[#allocation1] sm:$0xff pattern:$0x73625140]  ;;  %v3174_v4 = vld.sshfl [vmem:[#allocation1 + $0x10] sm:$0xff pattern:$0x73625140] }
 0x2a4   :  { %1356 = vrot.lane.b32.xlu0 %v1350_v26, %s2510_s25 }
 0x2a5   :  { %v3155_v7 = vpop.permute.xlu2 %1051  ;;  %v3157_v39 = vpop.permute.xlu1 %990 }
 0x2a6   :  { %4958 = vst [vmem:[#allocation95_spill] sm:$0xff] %v3155_v7  ;;  %v3159_v33 = vpop.permute.xlu0 %1013  ;;  %v451_v7 = vstv %s2308_s29  ;;  %s3476_s29 = sld [smem:[#allocation6 + $0x48]] }
 0x2a7   :  { %4959 = vst [vmem:[#allocation96_spill] sm:$0xff] %v3157_v39  ;;  %v3172_v39 = vld.sshfl [vmem:[#allocation1 + $0x8] sm:$0xff pattern:$0x73625140]  ;;  %v453_v14 = vmul.f32 %v451_v7, %v2659_v60 }
 0x2a8   :  { %1656 = vst [vmem:[#allocation1] ss:$4 sm:$0xff] %v2571_v19  ;;  %v706_v19 = vstv %s2321_s3  ;;  %s3493_s3 = sld [smem:[#allocation6 + $0x3a]] }
 0x2ab   :  { %1358 = vrot.lane.b32.xlu1 %v1351_v27, %s2510_s25  ;;  %1360 = vrot.lane.b32.xlu2 %v1352_v0, %s2510_s25  ;;  %v444_v27 = vstv %s2307_s30  ;;  %v452_v0 = vmul.f32 %v451_v7, %v2645_v56  ;;  %s3487_s30 = sld [smem:[#allocation6 + $0x9]] }
 0x2ac   :  { %1372 = vrot.lane.b32.xlu0 %v1366_v1, %s2510_s25  ;;  %v447_v1 = vmul.f32 %v444_v27, %v2611_v51  ;;  %v445_v63 = vmul.f32 %v444_v27, %v2599_v22  ;;  %v446_v51 = vmul.f32 %v444_v27, %v2609_v50  ;;  %v3209_v22 = vmul.f32 %v706_v19, %v2714_v9 }
 0x2ad   :  { %v3164_v43 = vpop.permute.xlu2 %1060  ;;  %v3166_v42 = vpop.permute.xlu1 %1015  ;;  %v393_v27 = vstv %s3170_s5  ;;  %s3525_s5 = sld [smem:[#allocation6 + $0x25]] }
 0x2ae   :  { %4960 = vst [vmem:[#allocation97_spill] sm:$0xff] %v3164_v43  ;;  %v3168_v26 = vpop.permute.xlu0 %1022  ;;  %v454_v43 = vmul.f32 %v451_v7, %v2657_v59  ;;  %v713_v59 = vstv %s2322_s4  ;;  %v3204_v60 = vadd.f32 %v452_v0, %v445_v63  ;;  %v3212_v7 = vmul.f32 %v706_v19, %v2696_v2  ;;  %s3520_s4 = sld [smem:[#allocation6 + $0x2]] }
 0x2af   :  { %v3217_v50 = vadd.f32 %v453_v14, %v446_v51  ;;  %v381_v63 = vsel %vm378_vm13, %v2722_v11, %v2744_v17  ;;  %v3227_v9 = vmul.f32 %v713_v59, %v2772_v30  ;;  %v3230_v2 = vmul.f32 %v713_v59, %v2790_v35 }
 0x2b0   :  { %v428_v14 = vstv %s3176_s6  ;;  %v416_v30 = vsel %vm413_vm14, %v2730_v13, %v2756_v21  ;;  %v3261_v35 = vmul.f32 %v713_v59, %v2792_v36  ;;  %s3530_s6 = sld [smem:[#allocation6 + $0x56]] }
 0x2b1   :  { %v429_v59 = vmul.f32 %v428_v14, %v416_v30  ;;  %v389_v30 = vsel %vm378_vm13, %v2829_v53, %v2839_v55 }
 0x2b3   :  { %1374 = vrot.lane.b32.xlu1 %v1367_v32, %s2510_s25  ;;  %1376 = vrot.lane.b32.xlu2 %v1368_v16, %s2510_s25 }
 0x2b4   :  { %1404 = vrot.lane.b32.xlu0 %v1398_v45, %s2512_s8  ;;  %v3206_v45 = vadd.f32 %v454_v43, %v447_v1  ;;  %v435_v43 = vstv %s3187_s9  ;;  %s3557_s9 = sld [smem:[#allocation6 + $0x42]] }
 0x2b5   :  { %v3190_v32 = vpop.permute.xlu1 %1024  ;;  %v3192_v16 = vpop.permute.xlu2 %1092 }
 0x2b6   :  { %v3195_v56 = vpop.permute.xlu0 %1047 }
 0x2b7   :  { %4961 = vst [vmem:[#allocation98_spill] sm:$0xff] %v3195_v56  ;;  %v3215_v56 = vmul.f32 %v706_v19, %v2712_v8  ;;  %v379_v19 = vsel %vm378_vm13, %v2754_v20, %v2722_v11  ;;  %v380_v8 = vsel %vm378_vm13, %v2744_v17, %v2754_v20  ;;  %v415_v11 = vsel %vm413_vm14, %v2756_v21, %v2766_v24 }
 0x2b8   :  { %v549_v17 = vstv %s3181_s7  ;;  %v423_v20 = vsel %vm413_vm14, %v2851_v61, %v2813_v46  ;;  %v425_v21 = vsel %vm413_vm14, %v2813_v46, %v2841_v57  ;;  %v395_v36 = vmul.f32 %v393_v27, %v380_v8  ;;  %s3538_s7 = sld [smem:[#allocation6 + $0x11]] }
 0x2b9   :  { %v396_v51 = vmul.f32 %v393_v27, %v379_v19  ;;  %v390_v46 = vsel %vm378_vm13, %v2800_v37, %v2829_v53  ;;  %v436_v19 = vmul.f32 %v435_v43, %v425_v21  ;;  %v537_v8 = vsel %vm534_vm1, %v2764_v23, %v2804_v41 }
 0x2ba   :  { %v514_v21 = vstv %s3245_s12  ;;  %v536_v53 = vsel %vm534_vm1, %v2804_v41, %v2815_v47  ;;  %v544_v41 = vsel %vm534_vm1, %v2874_v28, %v2849_v58  ;;  %s3644_s12 = sld [smem:[#allocation6 + $0x1f]] }
 0x2bb   :  { %1406 = vrot.lane.b32.xlu1 %v3147_v62, %s2512_s8  ;;  %1408 = vrot.lane.b32.xlu2 %v3149_v48, %s2512_s8  ;;  %v394_v62 = vmul.f32 %v393_v27, %v381_v63  ;;  %v414_v48 = vsel %vm413_vm14, %v2766_v24, %v2730_v13  ;;  %v430_v13 = vmul.f32 %v428_v14, %v415_v11  ;;  %v400_v24 = vstv %s3199_s10  ;;  %s3617_s10 = sld [smem:[#allocation6 + $0x3]] }
 0x2bc   :  { %1424 = vrot.lane.b32.xlu0 %v1418_v29, %s2512_s8  ;;  %v424_v29 = vsel %vm413_vm14, %v2841_v57, %v2851_v61  ;;  %v431_v27 = vmul.f32 %v428_v14, %v414_v48  ;;  %v502_v57 = vsel %vm499_vm15, %v2752_v18, %v2788_v34  ;;  %v501_v61 = vsel %vm499_vm15, %v2788_v34, %v2802_v40 }
 0x2bd   :  { %v3273_v0 = vpop.permute.xlu1 %1049  ;;  %v3275_v1 = vpop.permute.xlu2 %1108  ;;  %v388_v14 = vsel %vm378_vm13, %v2839_v55, %v2800_v37  ;;  %v437_v11 = vmul.f32 %v435_v43, %v424_v29  ;;  %v535_v34 = vsel %vm534_vm1, %v2815_v47, %v2764_v23  ;;  %v556_v48 = vstv %s3224_s11  ;;  %s3629_s11 = sld [smem:[#allocation6 + $0x34]] }
 0x2be   :  { %4962 = vst [vmem:[#allocation99_spill] sm:$0xff] %v3273_v0  ;;  %v3281_v63 = vpop.permute.xlu0 %1056  ;;  %v438_v0 = vmul.f32 %v435_v43, %v423_v20  ;;  %v401_v20 = vmul.f32 %v400_v24, %v390_v46  ;;  %v546_v37 = vsel %vm534_vm1, %v2849_v58, %v2870_v12  ;;  %v545_v43 = vsel %vm534_vm1, %v2870_v12, %v2874_v28 }
 0x2bf   :  { %4963 = vst [vmem:[#allocation100_spill] sm:$0xff] %v3275_v1  ;;  %v402_v23 = vmul.f32 %v400_v24, %v389_v30  ;;  %v403_v29 = vmul.f32 %v400_v24, %v388_v14  ;;  %v439_v46 = vadd.f32 %v436_v19, %v429_v59  ;;  %v500_v47 = vsel %vm499_vm15, %v2802_v40, %v2752_v18 }
 0x2c0   :  { %4964 = vst [vmem:[#allocation101_spill] sm:$0xff] %v3281_v63  ;;  %v441_v55 = vadd.f32 %v438_v0, %v431_v27  ;;  %v552_v12 = vmul.f32 %v549_v17, %v537_v8  ;;  %v440_v0 = vadd.f32 %v437_v11, %v430_v13  ;;  %v515_v59 = vmul.f32 %v514_v21, %v501_v61  ;;  %v4966_v13 = vld [vmem:[#allocation28_spill] sm:$0xff] }
 0x2c1   :  { %v550_v27 = vmul.f32 %v549_v17, %v536_v53  ;;  %v404_v19 = vadd.f32 %v401_v20, %v394_v62  ;;  %v557_v14 = vmul.f32 %v556_v48, %v545_v43  ;;  %v551_v58 = vmul.f32 %v549_v17, %v535_v34  ;;  %v4967_v62 = vld [vmem:[#allocation33_spill] sm:$0xff] }
 0x2c2   :  { %v521_v28 = vstv %s3288_s13  ;;  %v555_v63 = vadd.f32 %v552_v12, %v441_v55  ;;  %v558_v1 = vmul.f32 %v556_v48, %v544_v41  ;;  %v405_v18 = vadd.f32 %v402_v23, %v395_v36  ;;  %v4968_v23 = vld [vmem:[#allocation35_spill] sm:$0xff]  ;;  %v4970_v12 = vld [vmem:[#allocation37_spill] sm:$0xff]  ;;  %s3650_s13 = sld [smem:[#allocation6 + $0x1e]] }
 0x2c3   :  { %1426 = vrot.lane.b32.xlu1 %v3172_v39, %s2512_s8  ;;  %1428 = vrot.lane.b32.xlu2 %v3174_v4, %s2512_s8  ;;  %v559_v39 = vmul.f32 %v556_v48, %v546_v37  ;;  %v406_v40 = vadd.f32 %v403_v29, %v396_v51  ;;  %v511_v8 = vsel %vm499_vm15, %v4966_v13, %v2864_v5  ;;  %v622_v43 = vstv %s3329_s14  ;;  %v4969_v29 = vld [vmem:[#allocation30_spill] sm:$0xff]  ;;  %s3542_s8 = sld [smem:[#allocation6 + $0x33]] }
 0x2c4   :  { %v553_v61 = vadd.f32 %v550_v27, %v439_v46  ;;  %v509_v17 = vsel %vm499_vm15, %v4967_v62, %v4966_v13  ;;  %v510_v36 = vsel %vm499_vm15, %v2864_v5, %v4967_v62  ;;  %v554_v51 = vadd.f32 %v551_v58, %v440_v0  ;;  %v4973_v58 = vld [vmem:[#allocation34_spill] sm:$0xff]  ;;  %s3664_s14 = sld [smem:[#allocation6 + $0x50]] }
 0x2c5   :  { %v3345_v4 = vpop.permute.xlu1 %1058  ;;  %v3347_v24 = vpop.permute.xlu2 %1140  ;;  %v562_v11 = vadd.f32 %v559_v39, %v555_v63  ;;  %v517_v34 = vmul.f32 %v514_v21, %v502_v57  ;;  %v516_v20 = vmul.f32 %v514_v21, %v500_v47  ;;  %v518_v48 = vadd.f32 %v515_v59, %v404_v19 }
 0x2c6   :  { %4965 = vst [vmem:[#allocation102_spill] sm:$0xff] %v3345_v4  ;;  %v3349_v30 = vpop.permute.xlu0 %1088  ;;  %v560_v37 = vadd.f32 %v557_v14, %v553_v61  ;;  %v524_v53 = vmul.f32 %v521_v28, %v511_v8  ;;  %v561_v55 = vadd.f32 %v558_v1, %v554_v51  ;;  %v610_v46 = vsel %vm343_vm3, %v4969_v29, %v4968_v23  ;;  %v4972_v14 = vld [vmem:[#allocation41_spill] sm:$0xff] }
 0x2c7   :  { %v520_v5 = vadd.f32 %v517_v34, %v406_v40  ;;  %v522_v63 = vmul.f32 %v521_v28, %v510_v36  ;;  %v523_v41 = vmul.f32 %v521_v28, %v509_v17  ;;  %v609_v57 = vsel %vm343_vm3, %v4968_v23, %v4970_v12  ;;  %v4976_v23 = vld [vmem:[#allocation47_spill] sm:$0xff] }
 0x2c8   :  { %v519_v1 = vadd.f32 %v516_v20, %v405_v18  ;;  %v712_v21 = vadd.f32 %v3209_v22, %v562_v11  ;;  %v608_v47 = vsel %vm343_vm3, %v4970_v12, %v4969_v29  ;;  %v690_v0 = vstv %s3343_s15  ;;  %v4974_v22 = vld [vmem:[#allocation42_spill] sm:$0xff]  ;;  %s3675_s15 = sld [smem:[#allocation6 + $0x4f]] }
 0x2c9   :  { %v710_v27 = vadd.f32 %v3212_v7, %v560_v37  ;;  %v623_v19 = vmul.f32 %v622_v43, %v610_v46  ;;  %v678_v28 = vsel %vm413_vm14, %v4973_v58, %v4972_v14  ;;  %v677_v18 = vsel %vm413_vm14, %v4972_v14, %v4974_v22  ;;  %v4975_v37 = vld [vmem:[#allocation52_spill] sm:$0xff] }
 0x2ca   :  { %v527_v13 = vadd.f32 %v524_v53, %v520_v5  ;;  %v711_v8 = vadd.f32 %v3215_v56, %v561_v55  ;;  %v624_v61 = vmul.f32 %v622_v43, %v609_v57  ;;  %v740_v62 = vstv %s3352_s16  ;;  %v4977_v53 = vld [vmem:[#allocation44_spill] sm:$0xff]  ;;  %s3717_s16 = sld [smem:[#allocation6 + $0xa]] }
 0x2cb   :  { %v525_v7 = vadd.f32 %v522_v63, %v518_v48  ;;  %v526_v17 = vadd.f32 %v523_v41, %v519_v1  ;;  %v625_v36 = vmul.f32 %v622_v43, %v608_v47  ;;  %v676_v11 = vsel %vm413_vm14, %v4974_v22, %v4973_v58  ;;  %v4978_v55 = vld [vmem:[#allocation36_spill] sm:$0xff]  ;;  %v4982_v58 = vld [vmem:[#allocation45_spill] sm:$0xff] }
 0x2cc   :  { %v691_v51 = vmul.f32 %v690_v0, %v678_v28  ;;  %v692_v34 = vmul.f32 %v690_v0, %v677_v18  ;;  %v629_v20 = vstv %s3367_s17  ;;  %v619_v56 = vsel %vm343_vm3, %v4976_v23, %v4975_v37  ;;  %v4983_v18 = vld [vmem:[#allocation49_spill] sm:$0xff]  ;;  %s3737_s17 = sld [smem:[#allocation6 + $0x3b]] }
 0x2cd   :  { %v3388_v39 = vpop.permute.xlu1 %1090  ;;  %v3390_v59 = vpop.permute.xlu2 %1156  ;;  %v626_v48 = vadd.f32 %v623_v19, %v3204_v60  ;;  %v728_v43 = vsel %vm464_vm4, %v4978_v55, %v4977_v53  ;;  %v3422_v29 = vadd.f32 %v3227_v9, %v710_v27  ;;  %v3425_v46 = vadd.f32 %v3261_v35, %v712_v21  ;;  %v4979_v60 = vld [vmem:[#allocation54_spill] sm:$0xff]  ;;  %v4981_v9 = vld [vmem:[#allocation53_spill] sm:$0xff] }
 0x2ce   :  { %4971 = vst [vmem:[#allocation28_spill] sm:$0xff] %v3390_v59  ;;  %v3401_v40 = vpop.permute.xlu0 %1104  ;;  %v627_v5 = vadd.f32 %v624_v61, %v3217_v50  ;;  %v693_v63 = vmul.f32 %v690_v0, %v676_v11  ;;  %v808_v41 = vstv %s3374_s0  ;;  %v3430_v12 = vadd.f32 %v3230_v2, %v711_v8  ;;  %v4980_v19 = vld [vmem:[#allocation58_spill] sm:$0xff]  ;;  %v4984_v8 = vld [vmem:[#allocation43_spill] sm:$0xff]  ;;  %s3751_s0 = sld [smem:[#allocation6 + $0x26]] }
 0x2cf   :  { %v630_v57 = vmul.f32 %v629_v20, %v619_v56  ;;  %v617_v1 = vsel %vm343_vm3, %v4979_v60, %v4976_v23  ;;  %v697_v47 = vstv %s3380_s1  ;;  %v687_v35 = vsel %vm413_vm14, %v4981_v9, %v4980_v19  ;;  %v4985_v11 = vld [vmem:[#allocation59_spill] sm:$0xff]  ;;  %s3766_s1 = sld [smem:[#allocation6 + $0x57]] }
 0x2d0   :  { %v628_v50 = vadd.f32 %v625_v36, %v3206_v45  ;;  %v694_v21 = vadd.f32 %v691_v51, %v525_v7  ;;  %v695_v0 = vadd.f32 %v692_v34, %v526_v17  ;;  %v743_v2 = vmul.f32 %v740_v62, %v728_v43 }
 0x2d1   :  { %v726_v28 = vsel %vm464_vm4, %v4982_v58, %v4978_v55  ;;  %v727_v22 = vsel %vm464_vm4, %v4977_v53, %v4982_v58  ;;  %v796_v45 = vsel %vm534_vm1, %v4984_v8, %v4983_v18  ;;  %v618_v61 = vsel %vm343_vm3, %v4975_v37, %v4979_v60  ;;  %v4986_v37 = vld [vmem:[#allocation51_spill] sm:$0xff]  ;;  %v4988_v58 = vld [vmem:[#allocation66_spill] sm:$0xff] }
 0x2d2   :  { %v632_v17 = vmul.f32 %v629_v20, %v617_v1  ;;  %v698_v36 = vmul.f32 %v697_v47, %v687_v35  ;;  %v685_v51 = vsel %vm413_vm14, %v4985_v11, %v4981_v9  ;;  %v686_v34 = vsel %vm413_vm14, %v4980_v19, %v4985_v11  ;;  %v4987_v35 = vld [vmem:[#allocation67_spill] sm:$0xff] }
 0x2d3   :  { %v696_v23 = vadd.f32 %v693_v63, %v527_v13  ;;  %v794_v56 = vsel %vm534_vm1, %v4986_v37, %v4984_v8  ;;  %v795_v53 = vsel %vm534_vm1, %v4983_v18, %v4986_v37  ;;  %v633_v55 = vadd.f32 %v630_v57, %v626_v48  ;;  %v4990_v48 = vld [vmem:[#allocation57_spill] sm:$0xff] }
 0x2d4   :  { %v741_v43 = vmul.f32 %v740_v62, %v727_v22  ;;  %v742_v60 = vmul.f32 %v740_v62, %v726_v28  ;;  %v811_v1 = vmul.f32 %v808_v41, %v796_v45  ;;  %v747_v9 = vstv %s3414_s26  ;;  %v4989_v62 = vld [vmem:[#allocation60_spill] sm:$0xff]  ;;  %s2355_s26 = sld [smem:[#allocation6 + $0x2d]] }
 0x2d5   :  { %v3444_v27 = vpop.permute.xlu1 %1106  ;;  %v3446_v14 = vpop.permute.xlu2 %1188  ;;  %v631_v19 = vmul.f32 %v629_v20, %v618_v61  ;;  %v699_v13 = vmul.f32 %v697_v47, %v686_v34  ;;  %v700_v63 = vmul.f32 %v697_v47, %v685_v51  ;;  %v804_v8 = vsel %vm534_vm1, %v4988_v58, %v4987_v35  ;;  %v4991_v20 = vld [vmem:[#allocation62_spill] sm:$0xff] }
 0x2d6   :  { %v3466_v7 = vpop.permute.xlu0 %1136  ;;  %v809_v11 = vmul.f32 %v808_v41, %v795_v53  ;;  %v810_v4 = vmul.f32 %v808_v41, %v794_v56  ;;  %v635_v59 = vadd.f32 %v632_v17, %v628_v50  ;;  %v701_v18 = vadd.f32 %v698_v36, %v694_v21  ;;  %v4992_v50 = vld [vmem:[#allocation64_spill] sm:$0xff] }
 0x2d7   :  { %v737_v57 = vsel %vm464_vm4, %v4990_v48, %v4989_v62  ;;  %v735_v47 = vsel %vm464_vm4, %v4991_v20, %v4990_v48  ;;  %v744_v28 = vadd.f32 %v741_v43, %v633_v55  ;;  %v815_v22 = vstv %s3441_s27  ;;  %s2356_s27 = sld [smem:[#allocation6 + $0x5e]] }
 0x2d8   :  { %v736_v41 = vsel %vm464_vm4, %v4989_v62, %v4991_v20  ;;  %v805_v21 = vsel %vm534_vm1, %v4992_v50, %v4988_v58  ;;  %v803_v45 = vsel %vm534_vm1, %v4987_v35, %v4992_v50  ;;  %v816_v61 = vmul.f32 %v815_v22, %v804_v8 }
 0x2d9   :  { %v634_v51 = vadd.f32 %v631_v19, %v627_v5  ;;  %v702_v34 = vadd.f32 %v699_v13, %v695_v0  ;;  %v703_v37 = vadd.f32 %v700_v63, %v696_v23  ;;  %v965_v56 = vstv %s3464_s28  ;;  %s2302_s28 = sld [smem:[#allocation6 + $0x31]] }
 0x2da   :  { %v746_v55 = vadd.f32 %v743_v2, %v635_v59  ;;  %v750_v43 = vmul.f32 %v747_v9, %v737_v57  ;;  %v812_v58 = vadd.f32 %v809_v11, %v701_v18  ;;  %v3528_v35 = vstv %s3476_s29  ;;  %v4993_v2 = vld [vmem:[#allocation68_spill] sm:$0xff]  ;;  %v4994_v11 = vld [vmem:[#allocation69_spill] sm:$0xff]  ;;  %s356_s29 = sld [smem:[#allocation6]] }
 0x2db   :  { %v748_v8 = vmul.f32 %v747_v9, %v736_v41  ;;  %v749_v62 = vmul.f32 %v747_v9, %v735_v47  ;;  %v818_v48 = vmul.f32 %v815_v22, %v805_v21  ;;  %v817_v5 = vmul.f32 %v815_v22, %v803_v45  ;;  %v4995_v9 = vld [vmem:[#allocation70_spill] sm:$0xff]  ;;  %v4996_v41 = vld [vmem:[#allocation71_spill] sm:$0xff] }
 0x2dc   :  { %v819_v0 = vadd.f32 %v816_v61, %v812_v58  ;;  %v915_v23 = vstv %s3487_s30  ;;  %v903_v59 = vsel %vm378_vm13, %v3074_v15, %v3095_v6  ;;  %v966_v19 = vmul.f32 %v965_v56, %v4993_v2  ;;  %s2309_s30 = sld [smem:[#allocation6 + $0x1c]] }
 0x2dd   :  { %v3516_v17 = vpop.permute.xlu1 %1138  ;;  %v3518_v36 = vpop.permute.xlu2 %1204  ;;  %v814_v13 = vadd.f32 %v811_v1, %v703_v37  ;;  %v813_v63 = vadd.f32 %v810_v4, %v702_v34  ;;  %v967_v18 = vmul.f32 %v965_v56, %v4994_v11  ;;  %v968_v57 = vmul.f32 %v965_v56, %v4995_v9 }
 0x2de   :  { %v3523_v53 = vpop.permute.xlu0 %1152  ;;  %v745_v20 = vadd.f32 %v742_v60, %v634_v51  ;;  %v922_v47 = vstv %s3493_s3  ;;  %v912_v22 = vsel %vm378_vm13, %v3081_v52, %v3105_v54  ;;  %v973_v50 = vmul.f32 %v3528_v35, %v4996_v41  ;;  %s2310_s3 = sld [smem:[#allocation6 + $0x4d]] }
 0x2df   :  { %v753_v21 = vadd.f32 %v750_v43, %v746_v55  ;;  %v821_v45 = vadd.f32 %v818_v48, %v814_v13  ;;  %v820_v4 = vadd.f32 %v817_v5, %v813_v63  ;;  %v916_v1 = vmul.f32 %v915_v23, %v903_v59 }
 0x2e0   :  { %v751_v61 = vadd.f32 %v748_v8, %v744_v28  ;;  %v752_v34 = vadd.f32 %v749_v62, %v745_v20  ;;  %v1020_v60 = vsel %vm499_vm15, %v3159_v33, %v3166_v42  ;;  %v969_v51 = vadd.f32 %v966_v19, %v819_v0 }
 0x2e1   :  { %v902_v56 = vsel %vm378_vm13, %v3095_v6, %v3103_v25  ;;  %v923_v28 = vmul.f32 %v922_v47, %v912_v22  ;;  %v3563_v55 = vadd.f32 %v967_v18, %v820_v4  ;;  %v3565_v43 = vadd.f32 %v968_v57, %v821_v45 }
 0x2e2   :  { %v901_v62 = vsel %vm378_vm13, %v3103_v25, %v3074_v15  ;;  %v1033_v48 = vstv %s3525_s5  ;;  %v1029_v6 = vsel %vm499_vm15, %v3168_v26, %v3190_v32  ;;  %v3578_v5 = vadd.f32 %v973_v50, %v969_v51  ;;  %s3964_s5 = sld [smem:[#allocation6 + $0x39]] }
 0x2e3   :  { %v881_v0 = vstv %s3520_s4  ;;  %v919_v59 = vadd.f32 %v916_v1, %v751_v61  ;;  %v911_v2 = vsel %vm378_vm13, %v3105_v54, %v3113_v3  ;;  %v1034_v19 = vmul.f32 %v1033_v48, %v1020_v60  ;;  %v4997_v1 = vld [vmem:[#allocation92_spill] sm:$0xff]  ;;  %s2317_s4 = sld [smem:[#allocation6 + $0x8]] }
 0x2e4   :  { %v917_v13 = vmul.f32 %v915_v23, %v902_v56  ;;  %v1040_v63 = vstv %s3530_s6  ;;  %v1211_v15 = vstv %s3538_s7  ;;  %v918_v11 = vmul.f32 %v915_v23, %v901_v62  ;;  %s3996_s6 = sld [smem:[#allocation6 + $0x24]] }
 0x2e5   :  { %v3555_v37 = vpop.permute.xlu1 %1154  ;;  %v3567_v8 = vpop.permute.xlu2 %1264  ;;  %v926_v18 = vadd.f32 %v923_v28, %v919_v59  ;;  %v910_v9 = vsel %vm378_vm13, %v3113_v3, %v3081_v52  ;;  %v1041_v57 = vmul.f32 %v1040_v63, %v1029_v6  ;;  %v869_v54 = vsel %vm343_vm3, %v3050_v31, %v3076_v10  ;;  %s4010_s7 = sld [smem:[#allocation6 + $0x55]] }
 0x2e6   :  { %v1185_v58 = vpop.permute.xlu0 %1184  ;;  %v3599_v20 = vstv %s3542_s8  ;;  %v924_v22 = vmul.f32 %v922_v47, %v911_v2  ;;  %v1019_v23 = vsel %vm499_vm15, %v3166_v42, %v3131_v49  ;;  %v867_v41 = vsel %vm343_vm3, %v3083_v44, %v3050_v31  ;;  %v4999_v2 = vld [vmem:[#allocation77_spill] sm:$0xff]  ;;  %s2513_s8 = smov 126  }
 0x2e7   :  { %v1192_v25 = vsel %vm413_vm14, %v3446_v14, %v1185_v58  ;;  %v1021_v52 = vsel %vm499_vm15, %v3131_v49, %v3159_v33  ;;  %v1037_v3 = vadd.f32 %v1034_v19, %v926_v18  ;;  %v920_v45 = vadd.f32 %v917_v13, %v752_v34 }
 0x2e8   :  { %v1212_v50 = vmul.f32 %v1211_v15, %v1192_v25  ;;  %v925_v4 = vmul.f32 %v922_v47, %v910_v9  ;;  %v1028_v61 = vsel %vm499_vm15, %v3190_v32, %v4997_v1  ;;  %v1218_v60 = vstv %s3557_s9  ;;  %s4034_s9 = sld [smem:[#allocation6 + $0x10]] }
 0x2e9   :  { %v921_v51 = vadd.f32 %v918_v11, %v753_v21  ;;  %v1035_v31 = vmul.f32 %v1033_v48, %v1019_v23  ;;  %v1030_v49 = vsel %vm499_vm15, %v4997_v1, %v3168_v26  ;;  %v1044_v33 = vadd.f32 %v1041_v57, %v1037_v3 }
 0x2ea   :  { %v927_v34 = vadd.f32 %v924_v22, %v920_v45  ;;  %v1036_v47 = vmul.f32 %v1033_v48, %v1021_v52  ;;  %v1042_v62 = vmul.f32 %v1040_v63, %v1028_v61  ;;  %v4998_v48 = vld [vmem:[#allocation81_spill] sm:$0xff]  ;;  %v1043_v25 = vmul.f32 %v1040_v63, %v1030_v49 }
 0x2eb   :  { %v1215_v21 = vadd.f32 %v1212_v50, %v1044_v33  ;;  %v878_v19 = vsel %vm343_vm3, %v4999_v2, %v4998_v48  ;;  %v928_v13 = vadd.f32 %v925_v4, %v921_v51  ;;  %v882_v22 = vmul.f32 %v881_v0, %v869_v54  ;;  %v5002_v4 = vld [vmem:[#allocation83_spill] sm:$0xff] }
 0x2ec   :  { %v1038_v11 = vadd.f32 %v1035_v31, %v927_v34  ;;  %v884_v63 = vmul.f32 %v881_v0, %v867_v41  ;;  %v889_v50 = vmul.f32 %v3599_v20, %v878_v19  ;;  %v876_v1 = vsel %vm343_vm3, %v5002_v4, %v4999_v2 }
 0x2ed   :  { %v1187_v42 = vpop.permute.xlu1 %1186  ;;  %v3634_v59 = vpop.permute.xlu2 %1280  ;;  %v1094_v54 = vsel %vm343_vm3, %v3388_v39, %v3192_v16 }
 0x2ee   :  { %v1201_v56 = vpop.permute.xlu0 %1200  ;;  %v1191_v28 = vsel %vm413_vm14, %v1185_v58, %v1187_v42  ;;  %v1190_v6 = vsel %vm413_vm14, %v1187_v42, %v3446_v14  ;;  %v868_v58 = vsel %vm343_vm3, %v3076_v10, %v3083_v44  ;;  %v5000_v14 = vld [vmem:[#allocation72_spill] sm:$0xff]  ;;  %v1039_v44 = vadd.f32 %v1036_v47, %v928_v13  ;;  %v5001_v10 = vld [vmem:[#allocation73_spill] sm:$0xff] }
 0x2ef   :  { %v1208_v32 = vsel %vm413_vm14, %v3518_v36, %v1201_v56  ;;  %v974_v18 = vmul.f32 %v3528_v35, %v5000_v14  ;;  %v1213_v9 = vmul.f32 %v1211_v15, %v1191_v28  ;;  %v975_v23 = vmul.f32 %v3528_v35, %v5001_v10  ;;  %v5003_v35 = vld [vmem:[#allocation100_spill] sm:$0xff]  ;;  %v5004_v14 = vld [vmem:[#allocation91_spill] sm:$0xff] }
 0x2f0   :  { %v1219_v26 = vmul.f32 %v1218_v60, %v1208_v32  ;;  %v1214_v52 = vmul.f32 %v1211_v15, %v1190_v6  ;;  %v883_v3 = vmul.f32 %v881_v0, %v868_v58  ;;  %v1045_v45 = vadd.f32 %v1042_v62, %v1038_v11 }
 0x2f1   :  { %v1046_v61 = vadd.f32 %v1043_v25, %v1039_v44  ;;  %v1115_v42 = vstv %s3617_s10  ;;  %v1110_v0 = vsel %vm343_vm3, %v3444_v27, %v5003_v35  ;;  %v885_v32 = vadd.f32 %v882_v22, %v3422_v29  ;;  %s4040_s10 = sld [smem:[#allocation6 + $0x41]] }
 0x2f2   :  { %v3648_v57 = vadd.f32 %v1219_v26, %v1215_v21  ;;  %v1216_v15 = vadd.f32 %v1213_v9, %v1045_v45  ;;  %v891_v62 = vmul.f32 %v3599_v20, %v876_v1  ;;  %v1118_v21 = vmul.f32 %v1115_v42, %v1094_v54 }
 0x2f3   :  { %v1217_v33 = vadd.f32 %v1214_v52, %v1046_v61  ;;  %v1122_v6 = vstv %s3629_s11  ;;  %v1287_v58 = vstv %s3644_s12  ;;  %v1096_v29 = vsel %vm343_vm3, %v3192_v16, %v3349_v30  ;;  %v5006_v61 = vld [vmem:[#allocation93_spill] sm:$0xff]  ;;  %s2341_s11 = sld [smem:[#allocation6 + $0x2c]] }
 0x2f4   :  { %v978_v2 = vadd.f32 %v975_v23, %v3565_v43  ;;  %v1125_v19 = vmul.f32 %v1122_v6, %v1110_v0  ;;  %v887_v13 = vadd.f32 %v884_v63, %v3425_v46  ;;  %v892_v25 = vadd.f32 %v889_v50, %v885_v32  ;;  %s2342_s12 = sld [smem:[#allocation6 + $0x5d]] }
 0x2f5   :  { %v1203_v51 = vpop.permute.xlu1 %1202  ;;  %v999_v11 = vstv %s3650_s13  ;;  %v1095_v43 = vsel %vm343_vm3, %v3349_v30, %v3388_v39  ;;  %v1116_v44 = vmul.f32 %v1115_v42, %v1096_v29  ;;  %v1294_v23 = vstv %s3664_s14  ;;  %s2357_s13 = sld [smem:[#allocation6 + $0x4]] }
 0x2f6   :  { %v1206_v41 = vsel %vm413_vm14, %v1203_v51, %v3518_v36  ;;  %v1207_v31 = vsel %vm413_vm14, %v1201_v56, %v1203_v51  ;;  %v1261_v49 = vpop.permute.xlu0 %1260  ;;  %v977_v36 = vadd.f32 %v974_v18, %v3563_v55  ;;  %v3697_v55 = vpop.permute.xlu2 %1312  ;;  %v5005_v18 = vld [vmem:[#allocation85_spill] sm:$0xff]  ;;  %v1121_v9 = vadd.f32 %v1118_v21, %v978_v2  ;;  %s2358_s14 = sld [smem:[#allocation6 + $0x35]] }
 0x2f7   :  { %v1220_v34 = vmul.f32 %v1218_v60, %v1207_v31  ;;  %v1221_v47 = vmul.f32 %v1218_v60, %v1206_v41  ;;  %v1268_v28 = vsel %vm464_vm4, %v3567_v8, %v1261_v49  ;;  %v3690_v60 = vadd.f32 %v883_v3, %v3430_v12 }
 0x2f8   :  { %v877_v12 = vsel %vm343_vm3, %v4998_v48, %v5002_v4  ;;  %v987_v16 = vsel %vm464_vm4, %v5005_v18, %v5004_v14  ;;  %v1290_v46 = vmul.f32 %v1287_v58, %v1268_v28  ;;  %v894_v22 = vadd.f32 %v891_v62, %v887_v13 }
 0x2f9   :  { %v3684_v56 = vadd.f32 %v1220_v34, %v1216_v15  ;;  %v3686_v26 = vadd.f32 %v1221_v47, %v1217_v33  ;;  %v1112_v48 = vsel %vm343_vm3, %v5003_v35, %v3401_v40  ;;  %v1111_v52 = vsel %vm343_vm3, %v3401_v40, %v3444_v27  ;;  %v5008_v35 = vld [vmem:[#allocation87_spill] sm:$0xff]  ;;  %v5009_v15 = vld [vmem:[#allocation96_spill] sm:$0xff] }
 0x2fa   :  { %v1128_v3 = vadd.f32 %v1125_v19, %v1121_v9  ;;  %v1002_v50 = vmul.f32 %v999_v11, %v987_v16  ;;  %v1006_v45 = vstv %s3675_s15  ;;  %v1117_v4 = vmul.f32 %v1115_v42, %v1095_v43  ;;  %v5007_v42 = vld [vmem:[#allocation94_spill] sm:$0xff]  ;;  %s2359_s15 = sld [smem:[#allocation6 + $0xb]] }
 0x2fb   :  { %v986_v40 = vsel %vm464_vm4, %v5004_v14, %v5006_v61  ;;  %v1123_v27 = vmul.f32 %v1122_v6, %v1112_v48  ;;  %v985_v51 = vsel %vm464_vm4, %v5006_v61, %v5005_v18  ;;  %v996_v0 = vsel %vm464_vm4, %v5008_v35, %v5007_v42 }
 0x2fc   :  { %v995_v41 = vsel %vm464_vm4, %v5007_v42, %v5009_v15  ;;  %v1124_v31 = vmul.f32 %v1122_v6, %v1111_v52  ;;  %v1119_v33 = vadd.f32 %v1116_v44, %v3578_v5  ;;  %v1005_v28 = vadd.f32 %v1002_v50, %v894_v22 }
 0x2fd   :  { %v1263_v10 = vpop.permute.xlu1 %1262  ;;  %v1000_v32 = vmul.f32 %v999_v11, %v986_v40  ;;  %v1120_v62 = vadd.f32 %v1117_v4, %v977_v36  ;;  %v1001_v29 = vmul.f32 %v999_v11, %v985_v51  ;;  %v1009_v2 = vmul.f32 %v1006_v45, %v996_v0 }
 0x2fe   :  { %v1266_v30 = vsel %vm464_vm4, %v1263_v10, %v3567_v8  ;;  %v1267_v39 = vsel %vm464_vm4, %v1261_v49, %v1263_v10  ;;  %v1277_v63 = vpop.permute.xlu0 %1276  ;;  %v1293_v8 = vadd.f32 %v1290_v46, %v1128_v3  ;;  %v890_v49 = vmul.f32 %v3599_v20, %v877_v12  ;;  %v1329_v14 = vpop.permute.xlu2 %1328 }
 0x2ff   :  { %v1284_v1 = vsel %vm464_vm4, %v3634_v59, %v1277_v63  ;;  %v1288_v34 = vmul.f32 %v1287_v58, %v1267_v39  ;;  %v1289_v21 = vmul.f32 %v1287_v58, %v1266_v30  ;;  %v1007_v19 = vmul.f32 %v1006_v45, %v995_v41  ;;  %v5010_v58 = vld [vmem:[#allocation28_spill] sm:$0xff] }
 0x300   :  { %v1297_v54 = vmul.f32 %v1294_v23, %v1284_v1  ;;  %v1126_v13 = vadd.f32 %v1123_v27, %v1119_v33  ;;  %v1127_v6 = vadd.f32 %v1124_v31, %v1120_v62  ;;  %v1163_v18 = vstv %s3717_s16  ;;  %s2360_s16 = sld [smem:[#allocation6 + $0x3c]] }
 0x301   :  { %v1144_v5 = vsel %vm378_vm13, %v3347_v24, %v3466_v7  ;;  %v1142_v20 = vsel %vm378_vm13, %v3516_v17, %v3347_v24  ;;  %v1158_v12 = vsel %vm378_vm13, %v3555_v37, %v5010_v58  ;;  %v1003_v48 = vadd.f32 %v1000_v32, %v892_v25 }
 0x302   :  { %v3755_v47 = vadd.f32 %v1297_v54, %v1293_v8  ;;  %v1291_v11 = vadd.f32 %v1288_v34, %v1126_v13  ;;  %v1292_v46 = vadd.f32 %v1289_v21, %v1127_v6  ;;  %v1166_v10 = vmul.f32 %v1163_v18, %v1142_v20 }
 0x303   :  { %v1170_v52 = vstv %s3737_s17  ;;  %v1160_v3 = vsel %vm378_vm13, %v5010_v58, %v3523_v53  ;;  %v994_v25 = vsel %vm464_vm4, %v5009_v15, %v5008_v35  ;;  %v893_v4 = vadd.f32 %v890_v49, %v3690_v60  ;;  %s2361_s17 = sld [smem:[#allocation6 + $0x12]] }
 0x304   :  { %v1173_v50 = vmul.f32 %v1170_v52, %v1158_v12  ;;  %v1010_v1 = vadd.f32 %v1007_v19, %v1003_v48  ;;  %v1171_v61 = vmul.f32 %v1170_v52, %v1160_v3  ;;  %v1143_v40 = vsel %vm378_vm13, %v3466_v7, %v3516_v17 }
 0x305   :  { %v1279_v36 = vpop.permute.xlu1 %1278  ;;  %v1004_v54 = vadd.f32 %v1001_v29, %v893_v4  ;;  %v1008_v51 = vmul.f32 %v1006_v45, %v994_v25  ;;  %v1342_v41 = vstv %s3766_s1  ;;  %v1159_v60 = vsel %vm378_vm13, %v3523_v53, %v3555_v37  ;;  %s2365_s1 = sld [smem:[#allocation6 + $0x20]] }
 0x306   :  { %v1282_v16 = vsel %vm464_vm4, %v1279_v36, %v3634_v59  ;;  %v1283_v43 = vsel %vm464_vm4, %v1277_v63, %v1279_v36  ;;  %v1309_v9 = vpop.permute.xlu0 %1308  ;;  %v1164_v59 = vmul.f32 %v1163_v18, %v1144_v5  ;;  %v1335_v63 = vstv %s3751_s0  ;;  %v1361_v31 = vpop.permute.xlu2 %1360  ;;  %s2362_s0 = sld [smem:[#allocation6 + $0x43]] }
 0x307   :  { %v1295_v24 = vmul.f32 %v1294_v23, %v1283_v43  ;;  %v1296_v22 = vmul.f32 %v1294_v23, %v1282_v16  ;;  %v1316_v44 = vsel %vm499_vm15, %v3697_v55, %v1309_v9  ;;  %v1012_v23 = vadd.f32 %v1009_v2, %v1005_v28 }
 0x308   :  { %v1338_v8 = vmul.f32 %v1335_v63, %v1316_v44  ;;  %v1167_v42 = vadd.f32 %v1164_v59, %v1010_v1  ;;  %v1165_v45 = vmul.f32 %v1163_v18, %v1143_v40  ;;  %v1011_v62 = vadd.f32 %v1008_v51, %v1004_v54  ;;  %v5011_v51 = vld [vmem:[#allocation16_spill] sm:$0xff] }
 0x309   :  { %v3785_v30 = vadd.f32 %v1295_v24, %v1291_v11  ;;  %v3787_v39 = vadd.f32 %v1296_v22, %v1292_v46  ;;  %v1169_v27 = vadd.f32 %v1166_v10, %v1012_v23  ;;  %v1172_v53 = vmul.f32 %v1170_v52, %v1159_v60 }
 0x30a   :  { %v1174_v49 = vadd.f32 %v1171_v61, %v1167_v42  ;;  %v1168_v29 = vadd.f32 %v1165_v45, %v1011_v62  ;;  %v1383_v13 = vstv %s2355_s26  ;;  %vm128_vm6 = vcmp.lt.s32.totalorder %v5011_v51, 15  ;;  %v5012_v42 = vld [vmem:[#allocation17_spill] sm:$0xff]  ;;  %s2366_s26 = sld [smem:[#allocation6 + $0x51]] }
 0x30b   :  { %v1176_v35 = vadd.f32 %v1173_v50, %v1169_v27  ;;  %vm129_vm7 = vcmp.lt.s32.totalorder %v5012_v42, 15  ;;  %vm144_vm8 = vcmp.lt.s32.totalorder %v5012_v42, 14  ;;  %vm143_vm9 = vcmp.lt.s32.totalorder %v5011_v51, 14 }
 0x30c   :  { %v1175_v2 = vadd.f32 %v1172_v53, %v1168_v29  ;;  %v3921_v29 = vld.sshfl [vmem:[#allocation1 + $0x8] sm:$0xff pattern:$0x73625140]  ;;  %vm159_vm11 = vcmp.lt.s32.totalorder %v5012_v42, 13  ;;  %vm158_vm12 = vcmp.lt.s32.totalorder %v5011_v51, 13 }
 0x30d   :  { %v1311_v0 = vpop.permute.xlu1 %1310  ;;  %v1341_v28 = vadd.f32 %v1338_v8, %v1176_v35 }
 0x30e   :  { %v1314_v15 = vsel %vm499_vm15, %v1311_v0, %v3697_v55  ;;  %v1315_v7 = vsel %vm499_vm15, %v1309_v9, %v1311_v0  ;;  %v1325_v17 = vpop.permute.xlu0 %1324  ;;  %v1377_v16 = vpop.permute.xlu2 %1376  ;;  %v5013_v0 = vmov 0.0  }
 0x30f   :  { %v1336_v33 = vmul.f32 %v1335_v63, %v1315_v7  ;;  %v1332_v34 = vsel %vm499_vm15, %v1329_v14, %v1325_v17  ;;  %v1337_v55 = vmul.f32 %v1335_v63, %v1314_v15  ;;  %v2297_v60 = vsel %vm129_vm7, 1.0, %v5013_v0 }
 0x310   :  { %v1345_v32 = vmul.f32 %v1342_v41, %v1332_v34 }
 0x311   :  { %v1339_v37 = vadd.f32 %v1336_v33, %v1174_v49  ;;  %v1340_v20 = vadd.f32 %v1337_v55, %v1175_v2  ;;  %v3927_v55 = vld.sshfl [vmem:[#allocation1] sm:$0xff pattern:$0x73625140]  ;;  %v3929_v2 = vld.sshfl [vmem:[#allocation1 + $0x10] sm:$0xff pattern:$0x73625140] }
 0x312   :  { %v3811_v21 = vadd.f32 %v1345_v32, %v1341_v28 }
 0x315   :  { %v1327_v19 = vpop.permute.xlu1 %1326 }
 0x316   :  { %v1330_v6 = vsel %vm499_vm15, %v1327_v19, %v1329_v14  ;;  %v1331_v18 = vsel %vm499_vm15, %v1325_v17, %v1327_v19  ;;  %v1357_v5 = vpop.permute.xlu0 %1356  ;;  %v1390_v14 = vstv %s2356_s27  ;;  %v1409_v25 = vpop.permute.xlu2 %1408  ;;  %v5014_v19 = vld [vmem:[#allocation15_spill] sm:$0xff]  ;;  %s2367_s27 = sld [smem:[#allocation6 + $0x27]] }
 0x317   :  { %v1343_v36 = vmul.f32 %v1342_v41, %v1331_v18  ;;  %v1344_v58 = vmul.f32 %v1342_v41, %v1330_v6  ;;  %v1364_v12 = vsel %vm534_vm1, %v1361_v31, %v1357_v5  ;;  %v2296_v41 = vsel %vm128_vm6, 1.0, %v5013_v0  ;;  %1676 = vst [vmem:[#allocation1] ss:$4 sm:$0xff] %v5014_v19  ;;  %v5015_v6 = vld [vmem:[#allocation25_spill] sm:$0xff]  ;;  %v5016_v18 = vld [vmem:[#allocation23_spill] sm:$0xff] }
 0x318   :  { %v1386_v11 = vmul.f32 %v1383_v13, %v1364_v12  ;;  %v358_v12 = vstv %s356_s29  ;;  %s2369_s29 = sld [smem:[#allocation6 + $0x2e]] }
 0x319   :  { %v3819_v43 = vadd.f32 %v1343_v36, %v1339_v37  ;;  %v3821_v9 = vadd.f32 %v1344_v58, %v1340_v20  ;;  %v5017_v20 = vld [vmem:[#allocation27_spill] sm:$0xff] }
 0x31a   :  { %v1389_v46 = vadd.f32 %v1386_v11, %v3686_v26  ;;  %v353_v36 = vsel %vm343_vm3, %v5017_v20, %v5016_v18  ;;  %v354_v58 = vsel %vm343_vm3, %v5015_v6, %v5017_v20  ;;  %v5018_v11 = vld [vmem:[#allocation19_spill] sm:$0xff]  ;;  %v5029_v20 = vld [vmem:[#allocation40_spill] sm:$0xff] }
 0x31d   :  { %v1359_v24 = vpop.permute.xlu1 %1358 }
 0x31e   :  { %v1362_v22 = vsel %vm534_vm1, %v1359_v24, %v1361_v31  ;;  %v1363_v44 = vsel %vm534_vm1, %v1357_v5, %v1359_v24  ;;  %v1373_v48 = vpop.permute.xlu0 %1372  ;;  %v1429_v35 = vpop.permute.xlu2 %1428  ;;  %v355_v5 = vsel %vm343_vm3, %v5016_v18, %v5015_v6  ;;  %v5020_v24 = vld [vmem:[#allocation21_spill] sm:$0xff]  ;;  %v5027_v6 = vld [vmem:[#allocation38_spill] sm:$0xff]  ;;  %v5028_v18 = vld [vmem:[#allocation32_spill] sm:$0xff] }
 0x31f   :  { %v1384_v10 = vmul.f32 %v1383_v13, %v1363_v44  ;;  %v1385_v52 = vmul.f32 %v1383_v13, %v1362_v22  ;;  %v1380_v3 = vsel %vm534_vm1, %v1377_v16, %v1373_v48  ;;  %v365_v13 = vstv %s2302_s28  ;;  %s2368_s28 = sld [smem:[#allocation6 + $0x58]] }
 0x320   :  { %v1393_v59 = vmul.f32 %v1390_v14, %v1380_v3  ;;  %v345_v22 = vsel %vm343_vm3, %v5018_v11, %v5020_v24  ;;  %v366_v44 = vmul.f32 %v365_v13, %v355_v5  ;;  %v644_v5 = vsel %vm378_vm13, %v5028_v18, %v5027_v6 }
 0x321   :  { %v1387_v63 = vadd.f32 %v1384_v10, %v3648_v57  ;;  %v1388_v23 = vadd.f32 %v1385_v52, %v3684_v56  ;;  %v367_v10 = vmul.f32 %v365_v13, %v354_v58  ;;  %v643_v58 = vsel %vm378_vm13, %v5027_v6, %v5029_v20  ;;  %v5038_v6 = vld [vmem:[#allocation65_spill] sm:$0xff] }
 0x322   :  { %v3832_v26 = vadd.f32 %v1393_v59, %v1389_v46  ;;  %v479_v59 = vstv %s2309_s30  ;;  %s2370_s30 = sld [smem:[#allocation6 + $0x5f]] }
 0x325   :  { %v1375_v50 = vpop.permute.xlu1 %1374 }
 0x326   :  { %v1378_v4 = vsel %vm534_vm1, %v1375_v50, %v1377_v16  ;;  %v1379_v1 = vsel %vm534_vm1, %v1373_v48, %v1375_v50  ;;  %v1405_v61 = vpop.permute.xlu0 %1404  ;;  %v5019_v16 = vld [vmem:[#allocation18_spill] sm:$0xff]  ;;  %v368_v48 = vmul.f32 %v365_v13, %v353_v36  ;;  %v642_v36 = vsel %vm378_vm13, %v5029_v20, %v5028_v18  ;;  %v1679_v20 = vld.sshfl [vmem:[#allocation1 + $0x10] sm:$0xff pattern:$0x73625140] }
 0x327   :  { %v1391_v40 = vmul.f32 %v1390_v14, %v1379_v1  ;;  %v1392_v27 = vmul.f32 %v1390_v14, %v1378_v4  ;;  %v1413_v57 = vsel %vm1410_vm5, %v1409_v25, %v1405_v61  ;;  %v346_v46 = vsel %vm343_vm3, %v5019_v16, %v5018_v11  ;;  %v5023_v4 = vld [vmem:[#allocation24_spill] sm:$0xff] }
 0x328   :  { %v3841_v8 = vmul.f32 0.0, %v1413_v57  ;;  %v344_v14 = vsel %vm343_vm3, %v5020_v24, %v5019_v16  ;;  %v359_v52 = vmul.f32 %v358_v12, %v346_v46  ;;  %v486_v57 = vstv %s2310_s3  ;;  %s2514_s3 = smov 125  }
 0x329   :  { %v3843_v56 = vadd.f32 %v1391_v40, %v1387_v63  ;;  %v3845_v54 = vadd.f32 %v1392_v27, %v1388_v23  ;;  %v361_v3 = vmul.f32 %v358_v12, %v344_v14  ;;  %v360_v63 = vmul.f32 %v358_v12, %v345_v22  ;;  %v5021_v23 = vld [vmem:[#allocation22_spill] sm:$0xff] }
 0x32a   :  { %1440 = vrot.lane.b32.xlu2 %v3841_v8, %s2505_s20  ;;  %v369_v40 = vadd.f32 %v366_v44, %v359_v52  ;;  %v663_v22 = vstv %s3964_s5  ;;  %v5030_v44 = vld [vmem:[#allocation55_spill] sm:$0xff]  ;;  %v5032_v52 = vld [vmem:[#allocation56_spill] sm:$0xff]  ;;  %s2364_s5 = sld [smem:[#allocation6 + $0x4a]] }
 0x32b   :  { %v371_v27 = vadd.f32 %v368_v48, %v361_v3  ;;  %v5031_v48 = vld [vmem:[#allocation50_spill] sm:$0xff] }
 0x32c   :  { %v651_v3 = vsel %vm378_vm13, %v5032_v52, %v5031_v48 }
 0x32d   :  { %v1407_v15 = vpop.permute.xlu1 %1406 }
 0x32e   :  { %v1411_v7 = vsel %vm1410_vm5, %v1407_v15, %v1409_v25  ;;  %v1412_v17 = vsel %vm1410_vm5, %v1405_v61, %v1407_v15  ;;  %v1425_v31 = vpop.permute.xlu0 %1424  ;;  %v5022_v25 = vld [vmem:[#allocation20_spill] sm:$0xff]  ;;  %v466_v61 = vsel %vm464_vm4, %v5021_v23, %v5023_v4  ;;  %v370_v15 = vadd.f32 %v367_v10, %v360_v63 }
 0x32f   :  { %v3857_v45 = vmul.f32 %v2296_v41, %v1412_v17  ;;  %v3859_v49 = vmul.f32 %v2297_v60, %v1411_v7  ;;  %v1432_v33 = vsel %vm1410_vm5, %v1429_v35, %v1425_v31  ;;  %v467_v50 = vsel %vm464_vm4, %v5022_v25, %v5021_v23  ;;  %v5026_v7 = vld [vmem:[#allocation31_spill] sm:$0xff] }
 0x330   :  { %v3863_v34 = vmul.f32 0.0, %v1432_v33  ;;  %v465_v1 = vsel %vm464_vm4, %v5023_v4, %v5022_v25  ;;  %v482_v33 = vmul.f32 %v479_v59, %v467_v50  ;;  %v653_v10 = vsel %vm378_vm13, %v5031_v48, %v5030_v44 }
 0x331   :  { %1438 = vrot.lane.b32.xlu1 %v3859_v49, %s2505_s20  ;;  %1436 = vrot.lane.b32.xlu0 %v3857_v45, %s2505_s20  ;;  %v652_v25 = vsel %vm378_vm13, %v5030_v44, %v5032_v52 }
 0x332   :  { %1449 = vrot.lane.b32.xlu2 %v3863_v34, %s2505_s20  ;;  %v485_v12 = vadd.f32 %v482_v33, %v371_v27  ;;  %v774_v27 = vstv %s3996_s6  ;;  %s2371_s6 = sld [smem:[#allocation6 + $0x5]] }
 0x335   :  { %v1427_v28 = vpop.permute.xlu1 %1426 }
 0x336   :  { %v1430_v32 = vsel %vm1410_vm5, %v1427_v28, %v1429_v35  ;;  %v1431_v62 = vsel %vm1410_vm5, %v1425_v31, %v1427_v28  ;;  %v480_v28 = vmul.f32 %v479_v59, %v466_v61  ;;  %v664_v61 = vmul.f32 %v663_v22, %v653_v10 }
 0x337   :  { %v3875_v53 = vmul.f32 %v2296_v41, %v1431_v62  ;;  %v3877_v37 = vmul.f32 %v2297_v60, %v1430_v32  ;;  %v5024_v41 = vld [vmem:[#allocation29_spill] sm:$0xff]  ;;  %v5025_v60 = vld [vmem:[#allocation26_spill] sm:$0xff]  ;;  %v481_v32 = vmul.f32 %v479_v59, %v465_v1  ;;  %v656_v62 = vstv %s2317_s4  ;;  %s2363_s4 = sld [smem:[#allocation6 + $0x19]] }
 0x338   :  { %v476_v35 = vsel %vm464_vm4, %v5025_v60, %v5024_v41  ;;  %v474_v17 = vsel %vm464_vm4, %v5026_v7, %v5025_v60  ;;  %v475_v31 = vsel %vm464_vm4, %v5024_v41, %v5026_v7  ;;  %v483_v11 = vadd.f32 %v480_v28, %v369_v40  ;;  %v5034_v7 = vld [vmem:[#allocation39_spill] sm:$0xff] }
 0x339   :  { %1447 = vrot.lane.b32.xlu1 %v3877_v37, %s2505_s20  ;;  %1445 = vrot.lane.b32.xlu0 %v3875_v53, %s2505_s20  ;;  %v489_v13 = vmul.f32 %v486_v57, %v476_v35  ;;  %v487_v16 = vmul.f32 %v486_v57, %v475_v31  ;;  %v488_v46 = vmul.f32 %v486_v57, %v474_v17  ;;  %v5035_v31 = vld [vmem:[#allocation48_spill] sm:$0xff]  ;;  %v781_v28 = vstv %s4010_s7  ;;  %s2372_s7 = sld [smem:[#allocation6 + $0x36]] }
 0x33a   :  { %1474 = vrot.lane.b32.xlu2 %v3841_v8, %s2506_s21  ;;  %v484_v14 = vadd.f32 %v481_v32, %v370_v15  ;;  %v657_v59 = vmul.f32 %v656_v62, %v644_v5  ;;  %v658_v63 = vmul.f32 %v656_v62, %v643_v58  ;;  %v659_v23 = vmul.f32 %v656_v62, %v642_v36  ;;  %v5033_v15 = vld [vmem:[#allocation46_spill] sm:$0xff]  ;;  %v5036_v32 = vld [vmem:[#allocation63_spill] sm:$0xff]  ;;  %v5037_v62 = vld [vmem:[#allocation61_spill] sm:$0xff] }
 0x33b   :  { %v492_v50 = vadd.f32 %v489_v13, %v485_v12  ;;  %v490_v4 = vadd.f32 %v487_v16, %v483_v11  ;;  %v666_v40 = vmul.f32 %v663_v22, %v651_v3  ;;  %v665_v57 = vmul.f32 %v663_v22, %v652_v25  ;;  %v1677_v5 = vld.sshfl [vmem:[#allocation1] sm:$0xff pattern:$0x73625140]  ;;  %v5041_v25 = vld [vmem:[#allocation88_spill] sm:$0xff] }
 0x33c   :  { %v491_v1 = vadd.f32 %v488_v46, %v484_v14  ;;  %v762_v17 = vsel %vm499_vm15, %v5034_v7, %v5033_v15  ;;  %v761_v33 = vsel %vm499_vm15, %v5033_v15, %v5035_v31  ;;  %v771_v13 = vsel %vm499_vm15, %v5037_v62, %v5036_v32  ;;  %v5039_v16 = vld [vmem:[#allocation14_spill] sm:$0xff] }
 0x33d   :  { %v660_v41 = vadd.f32 %v657_v59, %v490_v4  ;;  %v662_v35 = vadd.f32 %v659_v23, %v492_v50  ;;  %v770_v18 = vsel %vm499_vm15, %v5036_v32, %v5038_v6  ;;  %v760_v36 = vsel %vm499_vm15, %v5035_v31, %v5034_v7  ;;  %v5040_v23 = vld [vmem:[#allocation82_spill] sm:$0xff] }
 0x33e   :  { %v661_v60 = vadd.f32 %v658_v63, %v491_v1  ;;  %v769_v11 = vsel %vm499_vm15, %v5038_v6, %v5037_v62  ;;  %v777_v14 = vmul.f32 %v774_v27, %v762_v17  ;;  %v775_v22 = vmul.f32 %v774_v27, %v761_v33  ;;  %v5042_v4 = vld [vmem:[#allocation86_spill] sm:$0xff]  ;;  %v5045_v17 = vld [vmem:[#allocation89_spill] sm:$0xff] }
 0x33f   :  { %v667_v58 = vadd.f32 %v664_v61, %v660_v41  ;;  %v669_v12 = vadd.f32 %v666_v40, %v662_v35  ;;  %v784_v44 = vmul.f32 %v781_v28, %v771_v13  ;;  %v782_v48 = vmul.f32 %v781_v28, %v770_v18  ;;  %v5044_v41 = vld [vmem:[#allocation90_spill] sm:$0xff]  ;;  %v5047_v13 = vld [vmem:[#allocation95_spill] sm:$0xff] }
 0x340   :  { %v668_v46 = vadd.f32 %v665_v57, %v661_v60  ;;  %v776_v52 = vmul.f32 %v774_v27, %v760_v36  ;;  %v783_v3 = vmul.f32 %v781_v28, %v769_v11  ;;  %v949_v50 = vstv %s4034_s9  ;;  %v5043_v57 = vld [vmem:[#allocation84_spill] sm:$0xff]  ;;  %v5046_v62 = vld [vmem:[#allocation98_spill] sm:$0xff]  ;;  %v5048_v36 = vld [vmem:[#allocation99_spill] sm:$0xff]  ;;  %s2374_s9 = sld [smem:[#allocation6 + $0x3d]] }
 0x341   :  { %1472 = vrot.lane.b32.xlu1 %v3859_v49, %s2506_s21  ;;  %1470 = vrot.lane.b32.xlu0 %v3857_v45, %s2506_s21  ;;  %v780_v59 = vadd.f32 %v777_v14, %v669_v12  ;;  %v778_v63 = vadd.f32 %v775_v22, %v667_v58  ;;  %v937_v1 = vsel %vm413_vm14, %v5040_v23, %v5042_v4  ;;  %v956_v7 = vstv %s4040_s10  ;;  %v5050_v14 = vld [vmem:[#allocation97_spill] sm:$0xff]  ;;  %s2375_s10 = sld [smem:[#allocation6 + $0x13]] }
 0x342   :  { %1483 = vrot.lane.b32.xlu2 %v3863_v34, %s2506_s21  ;;  %v936_v27 = vsel %vm413_vm14, %v5042_v4, %v5041_v25  ;;  %v944_v60 = vsel %vm413_vm14, %v5044_v41, %v5043_v57  ;;  %v946_v31 = vsel %vm413_vm14, %v5043_v57, %v5045_v17  ;;  %v950_v33 = vmul.f32 %v949_v50, %v937_v1 }
 0x343   :  { %v787_v61 = vadd.f32 %v784_v44, %v780_v59  ;;  %v785_v40 = vadd.f32 %v782_v48, %v778_v63  ;;  %v945_v28 = vsel %vm413_vm14, %v5045_v17, %v5044_v41  ;;  %v1067_v32 = vstv %s2341_s11  ;;  %s2376_s11 = sld [smem:[#allocation6 + $0x44]] }
 0x344   :  { %v1055_v6 = vsel %vm534_vm1, %v5047_v13, %v5046_v62  ;;  %v951_v18 = vmul.f32 %v949_v50, %v936_v27  ;;  %v1054_v58 = vsel %vm534_vm1, %v5046_v62, %v5048_v36  ;;  %v957_v12 = vmul.f32 %v956_v7, %v946_v31  ;;  %v5052_v62 = vld [vmem:[#allocation76_spill] sm:$0xff] }
 0x345   :  { %v1053_v11 = vsel %vm534_vm1, %v5048_v36, %v5047_v13  ;;  %v958_v48 = vmul.f32 %v956_v7, %v945_v28  ;;  %v1068_v59 = vmul.f32 %v1067_v32, %v1054_v58  ;;  %v5054_v36 = vld [vmem:[#allocation75_spill] sm:$0xff]  ;;  %vm1928_vm5 = vcmp.lt.s32.totalorder %v2586_v38, 125 }
 0x349   :  { %1481 = vrot.lane.b32.xlu1 %v3877_v37, %s2506_s21  ;;  %1479 = vrot.lane.b32.xlu0 %v3875_v53, %s2506_s21 }
 0x34a   :  { %1508 = vrot.lane.b32.xlu2 %v3841_v8, %s2507_s22 }
 0x351   :  { %1506 = vrot.lane.b32.xlu1 %v3859_v49, %s2507_s22  ;;  %1504 = vrot.lane.b32.xlu0 %v3857_v45, %s2507_s22 }
 0x352   :  { %1517 = vrot.lane.b32.xlu2 %v3863_v34, %s2507_s22 }
 0x359   :  { %1515 = vrot.lane.b32.xlu1 %v3877_v37, %s2507_s22  ;;  %1513 = vrot.lane.b32.xlu0 %v3875_v53, %s2507_s22 }
 0x35a   :  { %1558 = vrot.lane.b32.xlu2 %v3841_v8, %s2508_s23 }
 0x361   :  { %1556 = vrot.lane.b32.xlu1 %v3859_v49, %s2508_s23  ;;  %1554 = vrot.lane.b32.xlu0 %v3857_v45, %s2508_s23 }
 0x362   :  { %1567 = vrot.lane.b32.xlu2 %v3863_v34, %s2508_s23 }
 0x369   :  { %1565 = vrot.lane.b32.xlu1 %v3877_v37, %s2508_s23  ;;  %1563 = vrot.lane.b32.xlu0 %v3875_v53, %s2508_s23 }
 0x36a   :  { %1592 = vrot.lane.b32.xlu2 %v3841_v8, %s2509_s24 }
 0x371   :  { %1590 = vrot.lane.b32.xlu1 %v3859_v49, %s2509_s24  ;;  %1588 = vrot.lane.b32.xlu0 %v3857_v45, %s2509_s24 }
 0x372   :  { %1601 = vrot.lane.b32.xlu2 %v3863_v34, %s2509_s24 }
 0x379   :  { %1599 = vrot.lane.b32.xlu1 %v3877_v37, %s2509_s24  ;;  %1597 = vrot.lane.b32.xlu0 %v3875_v53, %s2509_s24 }
 0x37a   :  { %1626 = vrot.lane.b32.xlu2 %v3841_v8, %s2510_s25 }
 0x381   :  { %1624 = vrot.lane.b32.xlu1 %v3859_v49, %s2510_s25  ;;  %1622 = vrot.lane.b32.xlu0 %v3857_v45, %s2510_s25 }
 0x382   :  { %1635 = vrot.lane.b32.xlu2 %v3863_v34, %s2510_s25 }
 0x384   :  { %v4012_v24 = vpop.permute.xlu2 %1440 }
 0x389   :  { %1633 = vrot.lane.b32.xlu1 %v3877_v37, %s2510_s25  ;;  %1631 = vrot.lane.b32.xlu0 %v3875_v53, %s2510_s25 }
 0x38a   :  { %1667 = vrot.lane.b32.xlu2 %v3929_v2, %s2513_s8  ;;  %v1678_v2 = vld.sshfl [vmem:[#allocation1 + $0x8] sm:$0xff pattern:$0x73625140] }
 0x38b   :  { %1915 = vst [vmem:[#allocation1] ss:$4 sm:$0xff] %v5039_v16  ;;  %v1074_v16 = vstv %s2342_s12  ;;  %s2379_s12 = sld [smem:[#allocation6 + $0x21]] }
 0x38c   :  { %v4068_v10 = vpop.permute.xlu2 %1449 }
 0x391   :  { %1665 = vrot.lane.b32.xlu1 %v3921_v29, %s2513_s8  ;;  %1663 = vrot.lane.b32.xlu0 %v3927_v55, %s2513_s8  ;;  %v935_v29 = vsel %vm413_vm14, %v5041_v25, %v5040_v23  ;;  %v779_v55 = vadd.f32 %v776_v52, %v668_v46  ;;  %v5049_v46 = vld [vmem:[#allocation101_spill] sm:$0xff]  ;;  %v1070_v52 = vmul.f32 %v1067_v32, %v1055_v6  ;;  %v5053_v6 = vld [vmem:[#allocation74_spill] sm:$0xff] }
 0x392   :  { %1687 = vrot.lane.b32.xlu2 %v1679_v20, %s2513_s8  ;;  %v952_v15 = vmul.f32 %v949_v50, %v935_v29  ;;  %v959_v20 = vmul.f32 %v956_v7, %v944_v60  ;;  %v1064_v22 = vsel %vm534_vm1, %v5050_v14, %v5049_v46 }
 0x393   :  { %v786_v35 = vadd.f32 %v783_v3, %v779_v55  ;;  %v5051_v3 = vld [vmem:[#allocation102_spill] sm:$0xff]  ;;  %v1069_v55 = vmul.f32 %v1067_v32, %v1053_v11  ;;  %v1077_v50 = vmul.f32 %v1074_v16, %v1064_v22 }
 0x394   :  { %v955_v44 = vadd.f32 %v952_v15, %v787_v61  ;;  %v1062_v63 = vsel %vm534_vm1, %v5051_v3, %v5050_v14  ;;  %v1475_v23 = vpop.permute.xlu2 %1474  ;;  %v5056_v22 = vld [vmem:[#allocation78_spill] sm:$0xff] }
 0x395   :  { %v954_v25 = vadd.f32 %v951_v18, %v786_v35  ;;  %v1076_v57 = vmul.f32 %v1074_v16, %v1062_v63 }
 0x396   :  { %v962_v29 = vadd.f32 %v959_v20, %v955_v44 }
 0x397   :  { %v961_v61 = vadd.f32 %v958_v48, %v954_v25  ;;  %v1463_v48 = vstv %s2358_s14  ;;  %s2381_s14 = sld [smem:[#allocation6 + $0x28]] }
 0x398   :  { %v1073_v27 = vadd.f32 %v1070_v52, %v962_v29 }
 0x399   :  { %1685 = vrot.lane.b32.xlu1 %v1678_v2, %s2513_s8  ;;  %1683 = vrot.lane.b32.xlu0 %v1677_v5, %s2513_s8  ;;  %v1063_v2 = vsel %vm534_vm1, %v5049_v46, %v5051_v3  ;;  %v953_v5 = vadd.f32 %v950_v33, %v785_v40  ;;  %v1072_v60 = vadd.f32 %v1069_v55, %v961_v61  ;;  %v1456_v33 = vstv %s2357_s13  ;;  %v5057_v3 = vld [vmem:[#allocation79_spill] sm:$0xff]  ;;  %s2373_s8 = sld [smem:[#allocation6 + $0xc]] }
 0x39a   :  { %v1075_v1 = vmul.f32 %v1074_v16, %v1063_v2  ;;  %v1080_v40 = vadd.f32 %v1077_v50, %v1073_v27  ;;  %v5055_v16 = vld [vmem:[#allocation80_spill] sm:$0xff]  ;;  %s2380_s13 = sld [smem:[#allocation6 + $0x52]] }
 0x39b   :  { %v960_v4 = vadd.f32 %v957_v12, %v953_v5  ;;  %v1079_v7 = vadd.f32 %v1076_v57, %v1072_v60  ;;  %v1490_v60 = vstv %s2359_s15  ;;  %s2382_s15 = sld [smem:[#allocation6 + $0x59]] }
 0x39c   :  { %v1239_v13 = vadd.f32 %v5052_v62, %v1080_v40  ;;  %v1484_v20 = vpop.permute.xlu2 %1483 }
 0x39d   :  { %v1071_v41 = vadd.f32 %v1068_v59, %v960_v4  ;;  %v1238_v58 = vadd.f32 %v5054_v36, %v1079_v7 }
 0x39e   :  { %v1252_v46 = vadd.f32 %v5055_v16, %v1239_v13 }
 0x39f   :  { %v1078_v15 = vadd.f32 %v1075_v1, %v1071_v41  ;;  %v1251_v2 = vadd.f32 %v5057_v3, %v1238_v58 }
 0x3a1   :  { %v1237_v18 = vadd.f32 %v5053_v6, %v1078_v15  ;;  %v1497_v6 = vstv %s2360_s16  ;;  %s2383_s16 = sld [smem:[#allocation6 + $0x2f]] }
 0x3a3   :  { %v1439_v17 = vpop.permute.xlu1 %1438  ;;  %v1437_v31 = vpop.permute.xlu0 %1436  ;;  %v1250_v44 = vadd.f32 %v5056_v22, %v1237_v18 }
 0x3a4   :  { %v1442_v35 = vsel %vm343_vm3, %v1439_v17, %v4012_v24  ;;  %v1443_v28 = vsel %vm343_vm3, %v1437_v31, %v1439_v17  ;;  %v1444_v32 = vsel %vm343_vm3, %v4012_v24, %v1437_v31  ;;  %v1509_v41 = vpop.permute.xlu2 %1508 }
 0x3a5   :  { %v1459_v12 = vmul.f32 %v1456_v33, %v1442_v35  ;;  %v1457_v11 = vmul.f32 %v1456_v33, %v1444_v32  ;;  %v1458_v14 = vmul.f32 %v1456_v33, %v1443_v28 }
 0x3a7   :  { %v1462_v52 = vadd.f32 %v1459_v12, %v1252_v46  ;;  %v1460_v59 = vadd.f32 %v1457_v11, %v1250_v44  ;;  %v1461_v55 = vadd.f32 %v1458_v14, %v1251_v2  ;;  %v1524_v14 = vstv %s2361_s17  ;;  %s2384_s17 = sld [smem:[#allocation6 + $0x60]] }
 0x3ab   :  { %v1448_v24 = vpop.permute.xlu1 %1447  ;;  %v1446_v5 = vpop.permute.xlu0 %1445 }
 0x3ac   :  { %v1451_v63 = vsel %vm343_vm3, %v1448_v24, %v4068_v10  ;;  %v1452_v25 = vsel %vm343_vm3, %v1446_v5, %v1448_v24  ;;  %v1453_v29 = vsel %vm343_vm3, %v4068_v10, %v1446_v5  ;;  %v1518_v13 = vpop.permute.xlu2 %1517 }
 0x3ad   :  { %v1466_v50 = vmul.f32 %v1463_v48, %v1451_v63  ;;  %v1464_v4 = vmul.f32 %v1463_v48, %v1453_v29  ;;  %v1465_v1 = vmul.f32 %v1463_v48, %v1452_v25  ;;  %v1531_v29 = vstv %s2362_s0  ;;  %s2391_s0 = sld [smem:[#allocation6 + $0x1b]] }
 0x3af   :  { %v4145_v61 = vadd.f32 %v1466_v50, %v1462_v52  ;;  %v4147_v27 = vadd.f32 %v1464_v4, %v1460_v59  ;;  %v4149_v57 = vadd.f32 %v1465_v1, %v1461_v55 }
 0x3b3   :  { %v1473_v40 = vpop.permute.xlu1 %1472  ;;  %v1471_v15 = vpop.permute.xlu0 %1470 }
 0x3b4   :  { %v1476_v7 = vsel %vm378_vm13, %v1473_v40, %v1475_v23  ;;  %v1477_v10 = vsel %vm378_vm13, %v1471_v15, %v1473_v40  ;;  %v1478_v17 = vsel %vm378_vm13, %v1475_v23, %v1471_v15  ;;  %v1559_v48 = vpop.permute.xlu2 %1558 }
 0x3b5   :  { %v1493_v31 = vmul.f32 %v1490_v60, %v1476_v7  ;;  %v1491_v33 = vmul.f32 %v1490_v60, %v1478_v17  ;;  %v1492_v35 = vmul.f32 %v1490_v60, %v1477_v10  ;;  %v1574_v10 = vstv %s2365_s1  ;;  %s2385_s1 = sld [smem:[#allocation6 + $0x6]] }
 0x3b7   :  { %v1496_v28 = vadd.f32 %v1493_v31, %v3755_v47  ;;  %v1494_v32 = vadd.f32 %v1491_v33, %v3785_v30  ;;  %v1495_v62 = vadd.f32 %v1492_v35, %v3787_v39 }
 0x3bb   :  { %v1482_v18 = vpop.permute.xlu1 %1481  ;;  %v1480_v36 = vpop.permute.xlu0 %1479 }
 0x3bc   :  { %v1485_v58 = vsel %vm378_vm13, %v1482_v18, %v1484_v20  ;;  %v1486_v23 = vsel %vm378_vm13, %v1480_v36, %v1482_v18  ;;  %v1487_v12 = vsel %vm378_vm13, %v1484_v20, %v1480_v36  ;;  %v1568_v15 = vpop.permute.xlu2 %1567 }
 0x3bd   :  { %v1500_v11 = vmul.f32 %v1497_v6, %v1485_v58  ;;  %v1498_v47 = vmul.f32 %v1497_v6, %v1487_v12  ;;  %v1499_v16 = vmul.f32 %v1497_v6, %v1486_v23  ;;  %v1581_v23 = vstv %s2366_s26  ;;  %s2392_s26 = sld [smem:[#allocation6 + $0x4c]] }
 0x3bf   :  { %v4166_v30 = vadd.f32 %v1500_v11, %v1496_v28  ;;  %v4168_v39 = vadd.f32 %v1498_v47, %v1494_v32  ;;  %v4170_v46 = vadd.f32 %v1499_v16, %v1495_v62 }
 0x3c3   :  { %v1507_v22 = vpop.permute.xlu1 %1506  ;;  %v1505_v44 = vpop.permute.xlu0 %1504 }
 0x3c4   :  { %v1510_v52 = vsel %vm413_vm14, %v1507_v22, %v1509_v41  ;;  %v1511_v20 = vsel %vm413_vm14, %v1505_v44, %v1507_v22  ;;  %v1512_v3 = vsel %vm413_vm14, %v1509_v41, %v1505_v44  ;;  %v1593_v58 = vpop.permute.xlu2 %1592 }
 0x3c5   :  { %v1527_v2 = vmul.f32 %v1524_v14, %v1510_v52  ;;  %v1525_v24 = vmul.f32 %v1524_v14, %v1512_v3  ;;  %v1526_v5 = vmul.f32 %v1524_v14, %v1511_v20  ;;  %v1608_v20 = vstv %s2367_s27  ;;  %s2398_s27 = sld [smem:[#allocation6 + $0x61]] }
 0x3c7   :  { %v1530_v59 = vadd.f32 %v1527_v2, %v3811_v21  ;;  %v1528_v63 = vadd.f32 %v1525_v24, %v3819_v43  ;;  %v1529_v25 = vadd.f32 %v1526_v5, %v3821_v9 }
 0x3cb   :  { %v1516_v55 = vpop.permute.xlu1 %1515  ;;  %v1514_v50 = vpop.permute.xlu0 %1513 }
 0x3cc   :  { %v1519_v4 = vsel %vm413_vm14, %v1516_v55, %v1518_v13  ;;  %v1520_v1 = vsel %vm413_vm14, %v1514_v50, %v1516_v55  ;;  %v1521_v41 = vsel %vm413_vm14, %v1518_v13, %v1514_v50  ;;  %v1602_v52 = vpop.permute.xlu2 %1601 }
 0x3cd   :  { %v1534_v60 = vmul.f32 %v1531_v29, %v1519_v4  ;;  %v1532_v40 = vmul.f32 %v1531_v29, %v1521_v41  ;;  %v1533_v21 = vmul.f32 %v1531_v29, %v1520_v1  ;;  %v1615_v1 = vstv %s2368_s28  ;;  %s2386_s28 = sld [smem:[#allocation6 + $0x37]] }
 0x3cf   :  { %v4187_v43 = vadd.f32 %v1534_v60, %v1530_v59  ;;  %v4189_v9 = vadd.f32 %v1532_v40, %v1528_v63  ;;  %v4191_v7 = vadd.f32 %v1533_v21, %v1529_v25 }
 0x3d3   :  { %v1557_v17 = vpop.permute.xlu1 %1556  ;;  %v1555_v31 = vpop.permute.xlu0 %1554 }
 0x3d4   :  { %v1560_v33 = vsel %vm464_vm4, %v1557_v17, %v1559_v48  ;;  %v1561_v35 = vsel %vm464_vm4, %v1555_v31, %v1557_v17  ;;  %v1562_v28 = vsel %vm464_vm4, %v1559_v48, %v1555_v31 }
 0x3d5   :  { %v1576_v32 = vmul.f32 %v1574_v10, %v1560_v33  ;;  %v1575_v62 = vmul.f32 %v1574_v10, %v1561_v35  ;;  %v1577_v13 = vmul.f32 %v1574_v10, %v1562_v28  ;;  %v1627_v10 = vpop.permute.xlu2 %1626  ;;  %v1642_v35 = vstv %s2369_s29  ;;  %s2388_s29 = sld [smem:[#allocation6 + $0x3e]] }
 0x3d7   :  { %v1579_v6 = vadd.f32 %v1576_v32, %v4149_v57  ;;  %v1578_v18 = vadd.f32 %v1575_v62, %v4147_v27  ;;  %v1580_v36 = vadd.f32 %v1577_v13, %v4145_v61 }
 0x3db   :  { %v1566_v12 = vpop.permute.xlu1 %1565  ;;  %v1564_v11 = vpop.permute.xlu0 %1563 }
 0x3dc   :  { %v1569_v47 = vsel %vm464_vm4, %v1566_v12, %v1568_v15  ;;  %v1570_v16 = vsel %vm464_vm4, %v1564_v11, %v1566_v12  ;;  %v1571_v14 = vsel %vm464_vm4, %v1568_v15, %v1564_v11 }
 0x3dd   :  { %v1583_v22 = vmul.f32 %v1581_v23, %v1569_v47  ;;  %v1582_v57 = vmul.f32 %v1581_v23, %v1570_v16  ;;  %v1584_v44 = vmul.f32 %v1581_v23, %v1571_v14  ;;  %v1636_v23 = vpop.permute.xlu2 %1635  ;;  %v1649_v16 = vstv %s2370_s30  ;;  %s2393_s30 = sld [smem:[#allocation6 + $0x22]] }
 0x3df   :  { %v4208_v27 = vadd.f32 %v1583_v22, %v1579_v6  ;;  %v4210_v61 = vadd.f32 %v1582_v57, %v1578_v18  ;;  %v4212_v48 = vadd.f32 %v1584_v44, %v1580_v36 }
 0x3e3   :  { %v1591_v3 = vpop.permute.xlu1 %1590  ;;  %v1589_v2 = vpop.permute.xlu0 %1588 }
 0x3e4   :  { %v1594_v24 = vsel %vm499_vm15, %v1591_v3, %v1593_v58  ;;  %v1595_v5 = vsel %vm499_vm15, %v1589_v2, %v1591_v3  ;;  %v1596_v59 = vsel %vm499_vm15, %v1593_v58, %v1589_v2 }
 0x3e5   :  { %v1610_v63 = vmul.f32 %v1608_v20, %v1594_v24  ;;  %v1609_v25 = vmul.f32 %v1608_v20, %v1595_v5  ;;  %v1611_v29 = vmul.f32 %v1608_v20, %v1596_v59  ;;  %v1668_v24 = vpop.permute.xlu2 %1667  ;;  %v2299_v5 = vsel %vm144_vm8, 1.0, %v5013_v0 }
 0x3e6   :  { %v2298_v59 = vsel %vm143_vm9, 1.0, %v5013_v0 }
 0x3e7   :  { %v1613_v55 = vadd.f32 %v1610_v63, %v4170_v46  ;;  %v1612_v50 = vadd.f32 %v1609_v25, %v4168_v39  ;;  %v1614_v4 = vadd.f32 %v1611_v29, %v4166_v30 }
 0x3eb   :  { %v1600_v41 = vpop.permute.xlu1 %1599  ;;  %v1598_v60 = vpop.permute.xlu0 %1597 }
 0x3ec   :  { %v1603_v40 = vsel %vm499_vm15, %v1600_v41, %v1602_v52  ;;  %v1604_v21 = vsel %vm499_vm15, %v1598_v60, %v1600_v41  ;;  %v1605_v15 = vsel %vm499_vm15, %v1602_v52, %v1598_v60 }
 0x3ed   :  { %v1617_v17 = vmul.f32 %v1615_v1, %v1603_v40  ;;  %v1616_v46 = vmul.f32 %v1615_v1, %v1604_v21  ;;  %v1618_v31 = vmul.f32 %v1615_v1, %v1605_v15  ;;  %v1688_v60 = vpop.permute.xlu2 %1687 }
 0x3ef   :  { %v4229_v39 = vadd.f32 %v1617_v17, %v1613_v55  ;;  %v4231_v30 = vadd.f32 %v1616_v46, %v1612_v50  ;;  %v4233_v33 = vadd.f32 %v1618_v31, %v1614_v4 }
 0x3f3   :  { %v1625_v28 = vpop.permute.xlu1 %1624  ;;  %v1623_v32 = vpop.permute.xlu0 %1622 }
 0x3f4   :  { %v1628_v62 = vsel %vm534_vm1, %v1625_v28, %v1627_v10  ;;  %v1629_v13 = vsel %vm534_vm1, %v1623_v32, %v1625_v28  ;;  %v1630_v6 = vsel %vm534_vm1, %v1627_v10, %v1623_v32  ;;  %v1918_v28 = vld.sshfl [vmem:[#allocation1 + $0x10] sm:$0xff pattern:$0x73625140]  ;;  %v1917_v32 = vld.sshfl [vmem:[#allocation1 + $0x8] sm:$0xff pattern:$0x73625140] }
 0x3f5   :  { %v1644_v18 = vmul.f32 %v1642_v35, %v1628_v62  ;;  %v1643_v36 = vmul.f32 %v1642_v35, %v1629_v13  ;;  %v1645_v58 = vmul.f32 %v1642_v35, %v1630_v6  ;;  %v1916_v62 = vld.sshfl [vmem:[#allocation1] sm:$0xff pattern:$0x73625140] }
 0x3f6   :  { %1935 = vst [vmem:[#allocation1] ss:$4 sm:$0xff] %v5014_v19 }
 0x3f7   :  { %v1647_v12 = vadd.f32 %v1644_v18, %v4191_v7  ;;  %v1646_v11 = vadd.f32 %v1643_v36, %v4189_v9  ;;  %v1648_v47 = vadd.f32 %v1645_v58, %v4187_v43  ;;  %v1540_v58 = vstv %s2363_s4  ;;  %s4684_s4 = sld [smem:[#allocation6 + $0x53]] }
 0x3fb   :  { %v1634_v14 = vpop.permute.xlu1 %1633  ;;  %v1632_v22 = vpop.permute.xlu0 %1631 }
 0x3fc   :  { %v1637_v57 = vsel %vm534_vm1, %v1634_v14, %v1636_v23  ;;  %v1638_v44 = vsel %vm534_vm1, %v1632_v22, %v1634_v14  ;;  %v1639_v52 = vsel %vm534_vm1, %v1636_v23, %v1632_v22  ;;  %v1715_v22 = vstv %s2371_s6  ;;  %s2515_s6 = smov [#allocation10]  }
 0x3fd   :  { %v1651_v20 = vmul.f32 %v1649_v16, %v1637_v57  ;;  %v1650_v3 = vmul.f32 %v1649_v16, %v1638_v44  ;;  %v1652_v2 = vmul.f32 %v1649_v16, %v1639_v52  ;;  %v1938_v19 = vld.sshfl [vmem:[#allocation1 + $0x10] sm:$0xff pattern:$0x73625140]  ;;  %v1937_v13 = vld.sshfl [vmem:[#allocation1 + $0x8] sm:$0xff pattern:$0x73625140]  ;;  %v1542_v16 = vmul.f32 %v1540_v58, %v3859_v49 }
 0x3fe   :  { %v1936_v6 = vld.sshfl [vmem:[#allocation1] sm:$0xff pattern:$0x73625140] }
 0x3ff   :  { %v4251_v9 = vadd.f32 %v1651_v20, %v1647_v12  ;;  %v4253_v43 = vadd.f32 %v1650_v3, %v1646_v11  ;;  %v4255_v7 = vadd.f32 %v1652_v2, %v1648_v47  ;;  %v1547_v12 = vstv %s2364_s5  ;;  %s4692_s5 = sld [smem:[#allocation6 + $0x5a]] }
 0x400   :  { %v1543_v11 = vmul.f32 %v1540_v58, %v3841_v8  ;;  %v1541_v47 = vmul.f32 %v1540_v58, %v3857_v45  ;;  %v1550_v14 = vmul.f32 %v1547_v12, %v3863_v34  ;;  %v1548_v57 = vmul.f32 %v1547_v12, %v3875_v53 }
 0x401   :  { %v1549_v44 = vmul.f32 %v1547_v12, %v3877_v37  ;;  %v1545_v45 = vadd.f32 %v1542_v16, %v3845_v54 }
 0x402   :  { %v1546_v52 = vadd.f32 %v1543_v11, %v3832_v26  ;;  %v1544_v8 = vadd.f32 %v1541_v47, %v3843_v56  ;;  %v1722_v56 = vstv %s2372_s7  ;;  %s2275_s7 = sshll.u32 %s2515_s6, 4  ;;  %s2276_s7 = int_to_ptr.vmem [resolvable:$true] %s2275_s7 }
 0x403   :  { %v1666_v63 = vpop.permute.xlu1 %1665  ;;  %v1664_v25 = vpop.permute.xlu0 %1663 }
 0x404   :  { %v1670_v29 = vsel %vm1669_vm10, %v1666_v63, %v1668_v24  ;;  %v1671_v55 = vsel %vm1669_vm10, %v1664_v25, %v1666_v63  ;;  %v1672_v50 = vsel %vm1669_vm10, %v1668_v24, %v1664_v25  ;;  %v1553_v49 = vadd.f32 %v1550_v14, %v1546_v52 }
 0x405   :  { %v4267_v4 = vmul.f32 %v2299_v5, %v1670_v29  ;;  %v4269_v1 = vmul.f32 %v2298_v59, %v1671_v55  ;;  %v4271_v41 = vmul.f32 0.0, %v1672_v50  ;;  %v1551_v37 = vadd.f32 %v1548_v57, %v1544_v8 }
 0x407   :  { %1699 = vrot.lane.b32.xlu2 %v4271_v41, %s2505_s20  ;;  %1697 = vrot.lane.b32.xlu1 %v4267_v4, %s2505_s20 }
 0x408   :  { %1695 = vrot.lane.b32.xlu0 %v4269_v1, %s2505_s20 }
 0x40b   :  { %v1686_v40 = vpop.permute.xlu1 %1685  ;;  %v1684_v21 = vpop.permute.xlu0 %1683 }
 0x40c   :  { %v1689_v15 = vsel %vm1669_vm10, %v1686_v40, %v1688_v60  ;;  %v1690_v10 = vsel %vm1669_vm10, %v1684_v21, %v1686_v40  ;;  %v1691_v17 = vsel %vm1669_vm10, %v1688_v60, %v1684_v21 }
 0x40d   :  { %v4285_v46 = vmul.f32 %v2299_v5, %v1689_v15  ;;  %v4287_v31 = vmul.f32 %v2298_v59, %v1690_v10  ;;  %v4289_v35 = vmul.f32 0.0, %v1691_v17  ;;  %v1552_v5 = vadd.f32 %v1549_v44, %v1545_v45 }
 0x40e   :  { %v1756_v44 = vstv %s2374_s9 }
 0x40f   :  { %1706 = vrot.lane.b32.xlu1 %v4285_v46, %s2505_s20  ;;  %1708 = vrot.lane.b32.xlu2 %v4289_v35, %s2505_s20 }
 0x410   :  { %1704 = vrot.lane.b32.xlu0 %v4287_v31, %s2505_s20 }
 0x417   :  { %1731 = vrot.lane.b32.xlu1 %v4267_v4, %s2506_s21  ;;  %1733 = vrot.lane.b32.xlu2 %v4271_v41, %s2506_s21 }
 0x418   :  { %1729 = vrot.lane.b32.xlu0 %v4269_v1, %s2506_s21 }
 0x41f   :  { %1740 = vrot.lane.b32.xlu1 %v4285_v46, %s2506_s21  ;;  %1742 = vrot.lane.b32.xlu2 %v4289_v35, %s2506_s21 }
 0x420   :  { %1738 = vrot.lane.b32.xlu0 %v4287_v31, %s2506_s21 }
 0x427   :  { %1765 = vrot.lane.b32.xlu1 %v4267_v4, %s2507_s22  ;;  %1767 = vrot.lane.b32.xlu2 %v4271_v41, %s2507_s22 }
 0x428   :  { %1763 = vrot.lane.b32.xlu0 %v4269_v1, %s2507_s22 }
 0x42f   :  { %1774 = vrot.lane.b32.xlu1 %v4285_v46, %s2507_s22  ;;  %1776 = vrot.lane.b32.xlu2 %v4289_v35, %s2507_s22 }
 0x430   :  { %1772 = vrot.lane.b32.xlu0 %v4287_v31, %s2507_s22 }
 0x437   :  { %1815 = vrot.lane.b32.xlu1 %v4267_v4, %s2508_s23  ;;  %1817 = vrot.lane.b32.xlu2 %v4271_v41, %s2508_s23 }
 0x438   :  { %1813 = vrot.lane.b32.xlu0 %v4269_v1, %s2508_s23 }
 0x43f   :  { %1824 = vrot.lane.b32.xlu1 %v4285_v46, %s2508_s23  ;;  %1826 = vrot.lane.b32.xlu2 %v4289_v35, %s2508_s23 }
 0x440   :  { %1822 = vrot.lane.b32.xlu0 %v4287_v31, %s2508_s23 }
 0x447   :  { %1849 = vrot.lane.b32.xlu1 %v4267_v4, %s2509_s24  ;;  %1851 = vrot.lane.b32.xlu2 %v4271_v41, %s2509_s24 }
 0x448   :  { %1847 = vrot.lane.b32.xlu0 %v4269_v1, %s2509_s24 }
 0x44f   :  { %1858 = vrot.lane.b32.xlu1 %v4285_v46, %s2509_s24  ;;  %1860 = vrot.lane.b32.xlu2 %v4289_v35, %s2509_s24 }
 0x450   :  { %1856 = vrot.lane.b32.xlu0 %v4287_v31, %s2509_s24 }
 0x457   :  { %1926 = vrot.lane.b32.xlu2 %v1918_v28, %s2514_s3  ;;  %1924 = vrot.lane.b32.xlu1 %v1917_v32, %s2514_s3 }
 0x458   :  { %1922 = vrot.lane.b32.xlu0 %v1916_v62, %s2514_s3 }
 0x45f   :  { %1946 = vrot.lane.b32.xlu2 %v1938_v19, %s2514_s3  ;;  %1944 = vrot.lane.b32.xlu1 %v1937_v13, %s2514_s3  ;;  %v1749_v13 = vstv %s2373_s8 }
 0x460   :  { %1942 = vrot.lane.b32.xlu0 %v1936_v6, %s2514_s3  ;;  %s2395_s3 = sld [smem:[#allocation6 + $0x29]] }
 0x461   :  { %v1700_v18 = vpop.permute.xlu2 %1699 }
 0x467   :  { %1885 = vrot.lane.b32.xlu2 %v4271_v41, %s2510_s25  ;;  %1883 = vrot.lane.b32.xlu1 %v4267_v4, %s2510_s25 }
 0x468   :  { %1881 = vrot.lane.b32.xlu0 %v4269_v1, %s2510_s25 }
 0x469   :  { %v1709_v36 = vpop.permute.xlu2 %1708 }
 0x46f   :  { %1894 = vrot.lane.b32.xlu2 %v4289_v35, %s2510_s25  ;;  %1892 = vrot.lane.b32.xlu1 %v4285_v46, %s2510_s25 }
 0x470   :  { %1890 = vrot.lane.b32.xlu0 %v4287_v31, %s2510_s25 }
 0x471   :  { %v1734_v23 = vpop.permute.xlu2 %1733 }
 0x479   :  { %v1698_v20 = vpop.permute.xlu1 %1697  ;;  %v1743_v25 = vpop.permute.xlu2 %1742 }
 0x47a   :  { %v1701_v3 = vsel %vm343_vm3, %v1698_v20, %v1700_v18  ;;  %v1696_v2 = vpop.permute.xlu0 %1695 }
 0x47b   :  { %v1718_v24 = vmul.f32 %v1715_v22, %v1701_v3  ;;  %v1702_v34 = vsel %vm343_vm3, %v1696_v2, %v1698_v20  ;;  %v1703_v53 = vsel %vm343_vm3, %v1700_v18, %v1696_v2 }
 0x47c   :  { %v1716_v26 = vmul.f32 %v1715_v22, %v1703_v53  ;;  %v1717_v59 = vmul.f32 %v1715_v22, %v1702_v34  ;;  %v1783_v34 = vstv %s2375_s10  ;;  %s2277_s10 = sshll.u32 %s4783_s2, 4  ;;  %s2278_s10 = int_to_ptr.hbm [resolvable:$true] %s2277_s10 }
 0x47d   :  { %v1721_v63 = vadd.f32 %v1718_v24, %v1553_v49 }
 0x47e   :  { %v1719_v29 = vadd.f32 %v1716_v26, %v1551_v37  ;;  %v1720_v55 = vadd.f32 %v1717_v59, %v1552_v5 }
 0x481   :  { %v1707_v54 = vpop.permute.xlu1 %1706  ;;  %v1768_v19 = vpop.permute.xlu2 %1767 }
 0x482   :  { %v1710_v50 = vsel %vm343_vm3, %v1707_v54, %v1709_v36  ;;  %v1705_v60 = vpop.permute.xlu0 %1704 }
 0x483   :  { %v1725_v40 = vmul.f32 %v1722_v56, %v1710_v50  ;;  %v1711_v21 = vsel %vm343_vm3, %v1705_v60, %v1707_v54  ;;  %v1712_v15 = vsel %vm343_vm3, %v1709_v36, %v1705_v60  ;;  %v1790_v60 = vstv %s2376_s11 }
 0x484   :  { %v1723_v10 = vmul.f32 %v1722_v56, %v1712_v15  ;;  %v1724_v17 = vmul.f32 %v1722_v56, %v1711_v21 }
 0x485   :  { %v4379_v28 = vadd.f32 %v1725_v40, %v1721_v63 }
 0x486   :  { %v4381_v32 = vadd.f32 %v1723_v10, %v1719_v29  ;;  %v4383_v62 = vadd.f32 %v1724_v17, %v1720_v55 }
 0x489   :  { %v1732_v6 = vpop.permute.xlu1 %1731  ;;  %v1777_v52 = vpop.permute.xlu2 %1776 }
 0x48a   :  { %v1735_v18 = vsel %vm378_vm13, %v1732_v6, %v1734_v23  ;;  %v1730_v58 = vpop.permute.xlu0 %1729 }
 0x48b   :  { %v1752_v12 = vmul.f32 %v1749_v13, %v1735_v18  ;;  %v1736_v36 = vsel %vm378_vm13, %v1730_v58, %v1732_v6  ;;  %v1737_v11 = vsel %vm378_vm13, %v1734_v23, %v1730_v58  ;;  %v1833_v58 = vstv %s2379_s12 }
 0x48c   :  { %v1750_v47 = vmul.f32 %v1749_v13, %v1737_v11  ;;  %v1751_v16 = vmul.f32 %v1749_v13, %v1736_v36 }
 0x48d   :  { %v1755_v14 = vadd.f32 %v1752_v12, %v4212_v48 }
 0x48e   :  { %v1753_v22 = vadd.f32 %v1750_v47, %v4210_v61  ;;  %v1754_v57 = vadd.f32 %v1751_v16, %v4208_v27 }
 0x491   :  { %v1741_v20 = vpop.permute.xlu1 %1740  ;;  %v1818_v26 = vpop.permute.xlu2 %1817 }
 0x492   :  { %v1744_v3 = vsel %vm378_vm13, %v1741_v20, %v1743_v25  ;;  %v1739_v8 = vpop.permute.xlu0 %1738 }
 0x493   :  { %v1759_v45 = vmul.f32 %v1756_v44, %v1744_v3  ;;  %v1745_v23 = vsel %vm378_vm13, %v1739_v8, %v1741_v20  ;;  %v1746_v2 = vsel %vm378_vm13, %v1743_v25, %v1739_v8  ;;  %v1840_v8 = vstv %s2380_s13 }
 0x494   :  { %v1757_v48 = vmul.f32 %v1756_v44, %v1746_v2  ;;  %v1758_v49 = vmul.f32 %v1756_v44, %v1745_v23 }
 0x495   :  { %v4400_v61 = vadd.f32 %v1759_v45, %v1755_v14 }
 0x496   :  { %v4402_v27 = vadd.f32 %v1757_v48, %v1753_v22  ;;  %v4404_v24 = vadd.f32 %v1758_v49, %v1754_v57 }
 0x499   :  { %v1766_v53 = vpop.permute.xlu1 %1765  ;;  %v1827_v6 = vpop.permute.xlu2 %1826 }
 0x49a   :  { %v1769_v37 = vsel %vm413_vm14, %v1766_v53, %v1768_v19  ;;  %v1764_v5 = vpop.permute.xlu0 %1763 }
 0x49b   :  { %v1786_v59 = vmul.f32 %v1783_v34, %v1769_v37  ;;  %v1770_v63 = vsel %vm413_vm14, %v1764_v5, %v1766_v53  ;;  %v1771_v25 = vsel %vm413_vm14, %v1768_v19, %v1764_v5  ;;  %v1867_v5 = vstv %s2381_s14 }
 0x49c   :  { %v1784_v29 = vmul.f32 %v1783_v34, %v1771_v25  ;;  %v1785_v55 = vmul.f32 %v1783_v34, %v1770_v63 }
 0x49d   :  { %v1789_v56 = vadd.f32 %v1786_v59, %v4233_v33 }
 0x49e   :  { %v1787_v54 = vadd.f32 %v1784_v29, %v4231_v30  ;;  %v1788_v50 = vadd.f32 %v1785_v55, %v4229_v39 }
 0x4a1   :  { %v1775_v40 = vpop.permute.xlu1 %1774  ;;  %v1852_v3 = vpop.permute.xlu2 %1851 }
 0x4a2   :  { %v1778_v21 = vsel %vm413_vm14, %v1775_v40, %v1777_v52  ;;  %v1773_v15 = vpop.permute.xlu0 %1772 }
 0x4a3   :  { %v1793_v10 = vmul.f32 %v1790_v60, %v1778_v21  ;;  %v1779_v17 = vsel %vm413_vm14, %v1773_v15, %v1775_v40  ;;  %v1780_v19 = vsel %vm413_vm14, %v1777_v52, %v1773_v15  ;;  %v1874_v15 = vstv %s2382_s15 }
 0x4a4   :  { %v1791_v13 = vmul.f32 %v1790_v60, %v1780_v19  ;;  %v1792_v33 = vmul.f32 %v1790_v60, %v1779_v17 }
 0x4a5   :  { %v4421_v30 = vadd.f32 %v1793_v10, %v1789_v56 }
 0x4a6   :  { %v4423_v39 = vadd.f32 %v1791_v13, %v1787_v54  ;;  %v4425_v18 = vadd.f32 %v1792_v33, %v1788_v50 }
 0x4a9   :  { %v1816_v12 = vpop.permute.xlu1 %1815 }
 0x4aa   :  { %v1819_v36 = vsel %vm464_vm4, %v1816_v12, %v1818_v26  ;;  %v1814_v11 = vpop.permute.xlu0 %1813 }
 0x4ab   :  { %v1835_v47 = vmul.f32 %v1833_v58, %v1819_v36  ;;  %v1820_v16 = vsel %vm464_vm4, %v1814_v11, %v1816_v12  ;;  %v1821_v14 = vsel %vm464_vm4, %v1818_v26, %v1814_v11  ;;  %v1861_v26 = vpop.permute.xlu2 %1860  ;;  %v2301_v11 = vsel %vm159_vm11, 1.0, %v5013_v0 }
 0x4ac   :  { %v1834_v22 = vmul.f32 %v1833_v58, %v1820_v16  ;;  %v1836_v57 = vmul.f32 %v1833_v58, %v1821_v14  ;;  %v2300_v16 = vsel %vm158_vm12, 1.0, %v5013_v0 }
 0x4ad   :  { %v1838_v44 = vadd.f32 %v1835_v47, %v4383_v62 }
 0x4ae   :  { %v1837_v52 = vadd.f32 %v1834_v22, %v4381_v32  ;;  %v1839_v20 = vadd.f32 %v1836_v57, %v4379_v28 }
 0x4b1   :  { %v1825_v45 = vpop.permute.xlu1 %1824 }
 0x4b2   :  { %v1828_v23 = vsel %vm464_vm4, %v1825_v45, %v1827_v6  ;;  %v1823_v2 = vpop.permute.xlu0 %1822 }
 0x4b3   :  { %v1842_v48 = vmul.f32 %v1840_v8, %v1828_v23  ;;  %v1829_v49 = vsel %vm464_vm4, %v1823_v2, %v1825_v45  ;;  %v1830_v34 = vsel %vm464_vm4, %v1827_v6, %v1823_v2  ;;  %v1927_v13 = vpop.permute.xlu2 %1926 }
 0x4b4   :  { %v1841_v62 = vmul.f32 %v1840_v8, %v1829_v49  ;;  %v1843_v53 = vmul.f32 %v1840_v8, %v1830_v34  ;;  %v1901_v8 = vstv %s2383_s16 }
 0x4b5   :  { %v4442_v32 = vadd.f32 %v1842_v48, %v1838_v44 }
 0x4b6   :  { %v4444_v28 = vadd.f32 %v1841_v62, %v1837_v52  ;;  %v4446_v37 = vadd.f32 %v1843_v53, %v1839_v20 }
 0x4b9   :  { %v1850_v59 = vpop.permute.xlu1 %1849 }
 0x4ba   :  { %v1853_v63 = vsel %vm499_vm15, %v1850_v59, %v1852_v3  ;;  %v1848_v25 = vpop.permute.xlu0 %1847 }
 0x4bb   :  { %v1869_v29 = vmul.f32 %v1867_v5, %v1853_v63  ;;  %v1854_v55 = vsel %vm499_vm15, %v1848_v25, %v1850_v59  ;;  %v1855_v56 = vsel %vm499_vm15, %v1852_v3, %v1848_v25  ;;  %v1947_v52 = vpop.permute.xlu2 %1946 }
 0x4bc   :  { %v1868_v54 = vmul.f32 %v1867_v5, %v1854_v55  ;;  %v1870_v50 = vmul.f32 %v1867_v5, %v1855_v56  ;;  %v1908_v55 = vstv %s2384_s17 }
 0x4bd   :  { %v1872_v60 = vadd.f32 %v1869_v29, %v4404_v24 }
 0x4be   :  { %v1871_v40 = vadd.f32 %v1868_v54, %v4402_v27  ;;  %v1873_v21 = vadd.f32 %v1870_v50, %v4400_v61 }
 0x4c1   :  { %v1859_v10 = vpop.permute.xlu1 %1858 }
 0x4c2   :  { %v1862_v17 = vsel %vm499_vm15, %v1859_v10, %v1861_v26  ;;  %v1857_v19 = vpop.permute.xlu0 %1856 }
 0x4c3   :  { %v1876_v33 = vmul.f32 %v1874_v15, %v1862_v17  ;;  %v1863_v6 = vsel %vm499_vm15, %v1857_v19, %v1859_v10  ;;  %v1864_v58 = vsel %vm499_vm15, %v1861_v26, %v1857_v19  ;;  %v1886_v20 = vpop.permute.xlu2 %1885 }
 0x4c4   :  { %v1875_v12 = vmul.f32 %v1874_v15, %v1863_v6  ;;  %v1877_v24 = vmul.f32 %v1874_v15, %v1864_v58 }
 0x4c5   :  { %v4463_v36 = vadd.f32 %v1876_v33, %v1872_v60  ;;  %v2058_v60 = vstv %s2391_s0 }
 0x4c6   :  { %v4466_v61 = vadd.f32 %v1875_v12, %v1871_v40  ;;  %v4468_v27 = vadd.f32 %v1877_v24, %v1873_v21 }
 0x4c9   :  { %v1925_v47 = vpop.permute.xlu1 %1924 }
 0x4ca   :  { %v1929_v14 = vsel %vm1928_vm5, %v1925_v47, %v1927_v13  ;;  %v1923_v22 = vpop.permute.xlu0 %1922 }
 0x4cb   :  { %v4476_v57 = vmul.f32 %v2301_v11, %v1929_v14  ;;  %v1930_v42 = vsel %vm1928_vm5, %v1923_v22, %v1925_v47  ;;  %v1931_v3 = vsel %vm1928_vm5, %v1927_v13, %v1923_v22  ;;  %v1895_v56 = vpop.permute.xlu2 %1894 }
 0x4cc   :  { %v4480_v44 = vmul.f32 %v2300_v16, %v1930_v42  ;;  %v1934_v48 = vmul.f32 0.0, %v1931_v3 }
 0x4cd   :  { %1956 = vrot.lane.b32.xlu1 %v4476_v57, %s2505_s20  ;;  %v2060_v19 = vmul.f32 %v2058_v60, %v4476_v57 }
 0x4ce   :  { %1988 = vrot.lane.b32.xlu2 %v4480_v44, %s2506_s21  ;;  %1954 = vrot.lane.b32.xlu0 %v4480_v44, %s2505_s20  ;;  %v2059_v33 = vmul.f32 %v2058_v60, %v4480_v44  ;;  %v2061_v6 = vmul.f32 %v2058_v60, %v1934_v48 }
 0x4d1   :  { %v1945_v51 = vpop.permute.xlu1 %1944 }
 0x4d2   :  { %v1943_v0 = vpop.permute.xlu0 %1942  ;;  %v1948_v59 = vsel %vm1928_vm5, %v1945_v51, %v1947_v52 }
 0x4d3   :  { %v1949_v29 = vsel %vm1928_vm5, %v1943_v0, %v1945_v51  ;;  %v4512_v54 = vmul.f32 %v2301_v11, %v1948_v59 }
 0x4d4   :  { %v4514_v50 = vmul.f32 %v2300_v16, %v1949_v29  ;;  %v1950_v16 = vsel %vm1928_vm5, %v1947_v52, %v1943_v0 }
 0x4d5   :  { %2022 = vrot.lane.b32.xlu1 %v4480_v44, %s2507_s22  ;;  %v4544_v14 = vmul.f32 0.0, %v1950_v16 }
 0x4d6   :  { %2024 = vrot.lane.b32.xlu2 %v4476_v57, %s2507_s22  ;;  %1990 = vrot.lane.b32.xlu0 %v4476_v57, %s2506_s21 }
 0x4d9   :  { %v1884_v45 = vpop.permute.xlu1 %1883 }
 0x4da   :  { %v1887_v23 = vsel %vm534_vm1, %v1884_v45, %v1886_v20  ;;  %v1882_v2 = vpop.permute.xlu0 %1881 }
 0x4db   :  { %v1903_v49 = vmul.f32 %v1901_v8, %v1887_v23  ;;  %v1888_v34 = vsel %vm534_vm1, %v1882_v2, %v1884_v45  ;;  %v1889_v62 = vsel %vm534_vm1, %v1886_v20, %v1882_v2  ;;  %v1974_v2 = vstv %s2385_s1 }
 0x4dc   :  { %v1902_v53 = vmul.f32 %v1901_v8, %v1888_v34  ;;  %v1904_v5 = vmul.f32 %v1901_v8, %v1889_v62 }
 0x4dd   :  { %v1906_v26 = vadd.f32 %v1903_v49, %v4425_v18  ;;  %1992 = vrot.lane.b32.xlu1 %v1934_v48, %s2506_s21 }
 0x4de   :  { %v1905_v63 = vadd.f32 %v1902_v53, %v4423_v39  ;;  %v1907_v25 = vadd.f32 %v1904_v5, %v4421_v30  ;;  %2026 = vrot.lane.b32.xlu2 %v1934_v48, %s2507_s22  ;;  %1958 = vrot.lane.b32.xlu0 %v1934_v48, %s2505_s20 }
 0x4e1   :  { %v1893_v18 = vpop.permute.xlu1 %1892 }
 0x4e2   :  { %v1896_v39 = vsel %vm534_vm1, %v1893_v18, %v1895_v56  ;;  %v1891_v40 = vpop.permute.xlu0 %1890 }
 0x4e3   :  { %v1910_v30 = vmul.f32 %v1908_v55, %v1896_v39  ;;  %v1897_v21 = vsel %vm534_vm1, %v1891_v40, %v1893_v18  ;;  %v1898_v15 = vsel %vm534_vm1, %v1895_v56, %v1891_v40 }
 0x4e4   :  { %v1909_v10 = vmul.f32 %v1908_v55, %v1897_v21  ;;  %v1911_v17 = vmul.f32 %v1908_v55, %v1898_v15 }
 0x4e5   :  { %v1913_v13 = vadd.f32 %v1910_v30, %v1906_v26  ;;  %1965 = vrot.lane.b32.xlu1 %v4512_v54, %s2505_s20 }
 0x4e6   :  { %v1912_v58 = vadd.f32 %v1909_v10, %v1905_v63  ;;  %v1914_v12 = vadd.f32 %v1911_v17, %v1907_v25  ;;  %1997 = vrot.lane.b32.xlu2 %v4514_v50, %s2506_s21  ;;  %1963 = vrot.lane.b32.xlu0 %v4514_v50, %s2505_s20 }
 0x4e7   :  { %v4530_v24 = vadd.f32 %v2060_v19, %v1913_v13 }
 0x4e8   :  { %v4532_v11 = vadd.f32 %v2059_v33, %v1912_v58  ;;  %v4534_v47 = vadd.f32 %v2061_v6, %v1914_v12 }
 0x4ed   :  { %2031 = vrot.lane.b32.xlu1 %v4514_v50, %s2507_s22 }
 0x4ee   :  { %2033 = vrot.lane.b32.xlu2 %v4512_v54, %s2507_s22  ;;  %1999 = vrot.lane.b32.xlu0 %v4512_v54, %s2506_s21 }
 0x4f5   :  { %2001 = vrot.lane.b32.xlu1 %v4544_v14, %s2506_s21  ;;  %s2377_s21 = sld [smem:[#allocation6 + $0x1a]] }
 0x4f6   :  { %2035 = vrot.lane.b32.xlu2 %v4544_v14, %s2507_s22  ;;  %1967 = vrot.lane.b32.xlu0 %v4544_v14, %s2505_s20  ;;  %s2389_s20 = sld [smem:[#allocation6 + $0x14]] }
 0x4f7   :  { %s2378_s22 = sld [smem:[#allocation6 + $0x4b]] }
 0x4fb   :  { %v1799_v51 = vstv %s2377_s21 }
 0x4fc   :  { %v2042_v42 = vstv %s2389_s20  ;;  %v1801_v8 = vmul.f32 %v1799_v51, %v4267_v4  ;;  %v1802_v40 = vmul.f32 %v1799_v51, %v4271_v41  ;;  %v1800_v30 = vmul.f32 %v1799_v51, %v4269_v1 }
 0x4fd   :  { %2076 = vrot.lane.b32.xlu1 %v1934_v48, %s2508_s23  ;;  %v1806_v20 = vstv %s2378_s22 }
 0x4fe   :  { %2108 = vrot.lane.b32.xlu2 %v4476_v57, %s2509_s24  ;;  %2074 = vrot.lane.b32.xlu0 %v4476_v57, %s2508_s23  ;;  %v1808_v45 = vmul.f32 %v1806_v20, %v4285_v46  ;;  %v1804_v49 = vadd.f32 %v1801_v8, %v4251_v9  ;;  %v1809_v21 = vmul.f32 %v1806_v20, %v4289_v35 }
 0x4ff   :  { %v1807_v10 = vmul.f32 %v1806_v20, %v4287_v31  ;;  %v1805_v19 = vadd.f32 %v1802_v40, %v4255_v7  ;;  %v1803_v41 = vadd.f32 %v1800_v30, %v4253_v43 }
 0x500   :  { %v1811_v53 = vadd.f32 %v1808_v45, %v1804_v49 }
 0x501   :  { %v1812_v35 = vadd.f32 %v1809_v21, %v1805_v19  ;;  %v1810_v7 = vadd.f32 %v1807_v10, %v1803_v41 }
 0x505   :  { %2142 = vrot.lane.b32.xlu1 %v4476_v57, %s2510_s25 }
 0x506   :  { %2144 = vrot.lane.b32.xlu2 %v1934_v48, %s2510_s25  ;;  %2110 = vrot.lane.b32.xlu0 %v1934_v48, %s2509_s24 }
 0x50d   :  { %2106 = vrot.lane.b32.xlu1 %v4480_v44, %s2509_s24 }
 0x50e   :  { %2140 = vrot.lane.b32.xlu2 %v4480_v44, %s2510_s25  ;;  %2072 = vrot.lane.b32.xlu0 %v4480_v44, %s2508_s23 }
 0x515   :  { %2085 = vrot.lane.b32.xlu1 %v4544_v14, %s2508_s23 }
 0x516   :  { %2117 = vrot.lane.b32.xlu2 %v4512_v54, %s2509_s24  ;;  %2083 = vrot.lane.b32.xlu0 %v4512_v54, %s2508_s23 }
 0x51d   :  { %2151 = vrot.lane.b32.xlu1 %v4512_v54, %s2510_s25 }
 0x51e   :  { %2153 = vrot.lane.b32.xlu2 %v4544_v14, %s2510_s25  ;;  %2119 = vrot.lane.b32.xlu0 %v4544_v14, %s2509_s24 }
 0x525   :  { %2115 = vrot.lane.b32.xlu1 %v4514_v50, %s2509_s24  ;;  %s2390_s24 = sld [smem:[#allocation6 + $0x45]] }
 0x526   :  { %2149 = vrot.lane.b32.xlu2 %v4514_v50, %s2510_s25  ;;  %2081 = vrot.lane.b32.xlu0 %v4514_v50, %s2508_s23  ;;  %s2387_s23 = sld [smem:[#allocation6 + $0xd]] }
 0x527   :  { %s2397_s25 = sld [smem:[#allocation6 + $0x30]] }
 0x528   :  { %v1989_v22 = vpop.permute.xlu2 %1988 }
 0x52c   :  { %v2008_v59 = vstv %s2387_s23 }
 0x530   :  { %v2025_v57 = vpop.permute.xlu2 %2024 }
 0x538   :  { %v2027_v44 = vpop.permute.xlu2 %2026 }
 0x539   :  { %v2028_v52 = vsel %vm413_vm14, %v2025_v57, %v2027_v44 }
 0x53a   :  { %v2045_v0 = vmul.f32 %v2042_v42, %v2028_v52 }
 0x53c   :  { %v4588_v3 = vadd.f32 %v2045_v0, %v4468_v27 }
 0x53f   :  { %v1957_v23 = vpop.permute.xlu1 %1956 }
 0x540   :  { %v4592_v48 = vpop.permute.xlu2 %1997  ;;  %v1955_v34 = vpop.permute.xlu0 %1954 }
 0x541   :  { %v1961_v62 = vsel %vm343_vm3, %v1955_v34, %v1957_v23 }
 0x542   :  { %v1976_v5 = vmul.f32 %v1974_v2, %v1961_v62  ;;  %v2049_v62 = vstv %s2390_s24 }
 0x544   :  { %v4597_v26 = vadd.f32 %v1976_v5, %v1811_v53  ;;  %v2160_v5 = vstv %s2397_s25 }
 0x547   :  { %v2023_v27 = vpop.permute.xlu1 %2022 }
 0x548   :  { %v2029_v4 = vsel %vm413_vm14, %v2023_v27, %v2025_v57  ;;  %v2030_v46 = vsel %vm413_vm14, %v2027_v44, %v2023_v27  ;;  %v4603_v63 = vpop.permute.xlu2 %2033  ;;  %v1991_v25 = vpop.permute.xlu0 %1990 }
 0x549   :  { %v2043_v9 = vmul.f32 %v2042_v42, %v2030_v46  ;;  %v2044_v29 = vmul.f32 %v2042_v42, %v2029_v4  ;;  %v1995_v55 = vsel %vm378_vm13, %v1989_v22, %v1991_v25  ;;  %v2065_v46 = vstv %s2392_s26 }
 0x54a   :  { %v2010_v56 = vmul.f32 %v2008_v59, %v1995_v55  ;;  %v2068_v40 = vmul.f32 %v2065_v46, %v4544_v14 }
 0x54b   :  { %v4608_v18 = vadd.f32 %v2043_v9, %v4466_v61  ;;  %v4611_v60 = vadd.f32 %v2044_v29, %v4463_v36  ;;  %v4661_v9 = vstv %s2398_s27 }
 0x54c   :  { %v4614_v39 = vadd.f32 %v2010_v56, %v4442_v32  ;;  %v2071_v10 = vadd.f32 %v2068_v40, %v4534_v47 }
 0x54f   :  { %v1993_v15 = vpop.permute.xlu1 %1992 }
 0x550   :  { %v1994_v17 = vsel %vm378_vm13, %v1991_v25, %v1993_v15  ;;  %v1996_v61 = vsel %vm378_vm13, %v1993_v15, %v1989_v22  ;;  %v2036_v36 = vpop.permute.xlu2 %2035  ;;  %v1959_v32 = vpop.permute.xlu0 %1958 }
 0x551   :  { %v2009_v13 = vmul.f32 %v2008_v59, %v1996_v61  ;;  %v2011_v33 = vmul.f32 %v2008_v59, %v1994_v17  ;;  %v1960_v1 = vsel %vm343_vm3, %v1957_v23, %v1959_v32  ;;  %v1962_v31 = vsel %vm343_vm3, %v1959_v32, %v1955_v34 }
 0x552   :  { %v1977_v6 = vmul.f32 %v1974_v2, %v1960_v1  ;;  %v1975_v16 = vmul.f32 %v1974_v2, %v1962_v31  ;;  %v2037_v53 = vsel %vm413_vm14, %v4603_v63, %v2036_v36  ;;  %v1981_v17 = vstv %s2386_s28 }
 0x553   :  { %v4631_v58 = vadd.f32 %v2009_v13, %v4444_v28  ;;  %v4634_v12 = vadd.f32 %v2011_v33, %v4446_v37  ;;  %v2052_v59 = vmul.f32 %v2049_v62, %v2037_v53  ;;  %v2015_v32 = vstv %s2388_s29 }
 0x554   :  { %v4636_v22 = vadd.f32 %v1977_v6, %v1812_v35  ;;  %v4638_v57 = vadd.f32 %v1975_v16, %v1810_v7  ;;  %v2066_v35 = vmul.f32 %v2065_v46, %v4514_v50  ;;  %v2126_v53 = vstv %s2395_s3 }
 0x555   :  { %v2055_v29 = vadd.f32 %v2052_v59, %v4588_v3 }
 0x557   :  { %v4640_v43 = vpop.permute.xlu1 %1965 }
 0x558   :  { %v4642_v42 = vpop.permute.xlu2 %2108  ;;  %v4644_v44 = vpop.permute.xlu0 %1963 }
 0x559   :  { %v1970_v3 = vsel %vm343_vm3, %v4644_v44, %v4640_v43 }
 0x55a   :  { %v1983_v33 = vmul.f32 %v1981_v17, %v1970_v3 }
 0x55f   :  { %v2032_v52 = vpop.permute.xlu1 %2031 }
 0x560   :  { %v2145_v51 = vpop.permute.xlu2 %2144  ;;  %v2000_v0 = vpop.permute.xlu0 %1999  ;;  %v2039_v61 = vsel %vm413_vm14, %v2036_v36, %v2032_v52  ;;  %v2038_v14 = vsel %vm413_vm14, %v2032_v52, %v4603_v63  ;;  %v2067_v36 = vmul.f32 %v2065_v46, %v4512_v54  ;;  %v2092_v52 = vstv %s2393_s30 }
 0x561   :  { %v2004_v13 = vsel %vm378_vm13, %v4592_v48, %v2000_v0  ;;  %v2050_v41 = vmul.f32 %v2049_v62, %v2039_v61  ;;  %v2051_v63 = vmul.f32 %v2049_v62, %v2038_v14  ;;  %v2069_v54 = vadd.f32 %v2066_v35, %v4532_v11 }
 0x562   :  { %v2017_v31 = vmul.f32 %v2015_v32, %v2004_v13 }
 0x567   :  { %v2002_v28 = vpop.permute.xlu1 %2001 }
 0x568   :  { %v2141_v20 = vpop.permute.xlu2 %2140  ;;  %v1968_v8 = vpop.permute.xlu0 %1967  ;;  %v2003_v50 = vsel %vm378_vm13, %v2000_v0, %v2002_v28  ;;  %v2005_v62 = vsel %vm378_vm13, %v2002_v28, %v4592_v48  ;;  %v1986_v0 = vadd.f32 %v1983_v33, %v4597_v26  ;;  %v2054_v28 = vadd.f32 %v2051_v63, %v4611_v60 }
 0x569   :  { %v2148_v27 = vsel %vm534_vm1, %v2145_v51, %v2141_v20  ;;  %v2018_v59 = vmul.f32 %v2015_v32, %v2003_v50 }
 0x56a   :  { %v2163_v4 = vmul.f32 %v2160_v5, %v2148_v27  ;;  %v2070_v27 = vadd.f32 %v2067_v36, %v4530_v24 }
 0x56c   :  { %v2166_v21 = vadd.f32 %v2163_v4, %v2055_v29  ;;  %v2099_v4 = vstv %s4684_s4 }
 0x56f   :  { %v4646_v37 = vpop.permute.xlu1 %2076 }
 0x570   :  { %v4648_v45 = vpop.permute.xlu2 %2117  ;;  %v4650_v23 = vpop.permute.xlu0 %2074 }
 0x571   :  { %v2078_v24 = vsel %vm464_vm4, %v4650_v23, %v4646_v37 }
 0x572   :  { %v2094_v40 = vmul.f32 %v2092_v52, %v2078_v24 }
 0x577   :  { %v2143_v2 = vpop.permute.xlu1 %2142 }
 0x578   :  { %v4652_v49 = vpop.permute.xlu2 %2153  ;;  %v4654_v34 = vpop.permute.xlu0 %2110  ;;  %v2146_v6 = vsel %vm534_vm1, %v2143_v2, %v2145_v51  ;;  %v2147_v7 = vsel %vm534_vm1, %v2141_v20, %v2143_v2  ;;  %v1969_v51 = vsel %vm343_vm3, %v4640_v43, %v1968_v8  ;;  %v1971_v20 = vsel %vm343_vm3, %v1968_v8, %v4644_v44 }
 0x579   :  { %v2161_v11 = vmul.f32 %v2160_v5, %v2147_v7  ;;  %v2162_v2 = vmul.f32 %v2160_v5, %v2146_v6  ;;  %v2112_v48 = vsel %vm499_vm15, %v4642_v42, %v4654_v34  ;;  %v2053_v43 = vadd.f32 %v2050_v41, %v4608_v18 }
 0x57a   :  { %v2020_v44 = vadd.f32 %v2017_v31, %v4614_v39  ;;  %v2016_v8 = vmul.f32 %v2015_v32, %v2005_v62  ;;  %v1982_v46 = vmul.f32 %v1981_v17, %v1971_v20  ;;  %v1984_v29 = vmul.f32 %v1981_v17, %v1969_v51 }
 0x57b   :  { %v2164_v26 = vadd.f32 %v2161_v11, %v2053_v43  ;;  %v2133_v39 = vstv %s4692_s5  ;;  %v2021_v31 = vadd.f32 %v2018_v59, %v4634_v12 }
 0x57c   :  { %v1985_v50 = vadd.f32 %v1982_v46, %v4638_v57  ;;  %v1987_v51 = vadd.f32 %v1984_v29, %v4636_v22 }
 0x57f   :  { %v2107_v25 = vpop.permute.xlu1 %2106 }
 0x580   :  { %v2150_v55 = vpop.permute.xlu2 %2149  ;;  %v4664_v56 = vpop.permute.xlu0 %2072  ;;  %v2113_v18 = vsel %vm499_vm15, %v2107_v25, %v4642_v42 }
 0x581   :  { %v2157_v30 = vsel %vm534_vm1, %v4652_v49, %v2150_v55  ;;  %v2079_v42 = vsel %vm464_vm4, %v4664_v56, %v4650_v23 }
 0x582   :  { %v2170_v15 = vmul.f32 %v4661_v9, %v2157_v30  ;;  %v2128_v30 = vmul.f32 %v2126_v53, %v2112_v48  ;;  %v2093_v36 = vmul.f32 %v2092_v52, %v2079_v42 }
 0x584   :  { %v2173_v19 = vadd.f32 %v2170_v15, %v2166_v21  ;;  %v2165_v21 = vadd.f32 %v2162_v2, %v2054_v28  ;;  %v2114_v15 = vsel %vm499_vm15, %v4654_v34, %v2107_v25  ;;  %v2097_v25 = vadd.f32 %v2094_v40, %v1986_v0 }
 0x585   :  { %v2131_v32 = vadd.f32 %v2128_v30, %v2020_v44  ;;  %v2129_v33 = vmul.f32 %v2126_v53, %v2114_v15 }
 0x586   :  { %v4686_v47 = vadd.f32 %v2173_v19, %v2071_v10 }
 0x587   :  { %v4688_v1 = vpop.permute.xlu1 %2085  ;;  %v2132_v24 = vadd.f32 %v2129_v33, %v2021_v31 }
 0x588   :  { %v4698_v16 = vpop.permute.xlu0 %2083 }
 0x589   :  { %v2087_v5 = vsel %vm464_vm4, %v4698_v16, %v4688_v1 }
 0x58a   :  { %v2101_v10 = vmul.f32 %v2099_v4, %v2087_v5 }
 0x58c   :  { %v2104_v35 = vadd.f32 %v2101_v10, %v2097_v25 }
 0x58f   :  { %v2152_v60 = vpop.permute.xlu1 %2151 }
 0x590   :  { %v2155_v3 = vsel %vm534_vm1, %v2152_v60, %v4652_v49  ;;  %v2156_v17 = vsel %vm534_vm1, %v2150_v55, %v2152_v60  ;;  %v2120_v61 = vpop.permute.xlu0 %2119  ;;  %v2127_v49 = vmul.f32 %v2126_v53, %v2113_v18  ;;  %v2080_v55 = vsel %vm464_vm4, %v4646_v37, %v4664_v56 }
 0x591   :  { %v2168_v19 = vmul.f32 %v4661_v9, %v2156_v17  ;;  %v2169_v14 = vmul.f32 %v4661_v9, %v2155_v3  ;;  %v2121_v34 = vsel %vm499_vm15, %v4648_v45, %v2120_v61  ;;  %v2019_v9 = vadd.f32 %v2016_v8, %v4631_v58 }
 0x592   :  { %v2135_v13 = vmul.f32 %v2133_v39, %v2121_v34  ;;  %v2095_v62 = vmul.f32 %v2092_v52, %v2080_v55  ;;  %v2096_v56 = vadd.f32 %v2093_v36, %v1985_v50 }
 0x593   :  { %v2171_v41 = vadd.f32 %v2168_v19, %v2164_v26  ;;  %v2172_v23 = vadd.f32 %v2169_v14, %v2165_v21  ;;  %v2130_v20 = vadd.f32 %v2127_v49, %v2019_v9 }
 0x594   :  { %v2138_v63 = vadd.f32 %v2135_v13, %v2131_v32  ;;  %v2098_v52 = vadd.f32 %v2095_v62, %v1987_v51 }
 0x595   :  { %v2174_v6 = vadd.f32 %v2171_v41, %v2069_v54  ;;  %v2175_v7 = vadd.f32 %v2172_v23, %v2070_v27 }
 0x596   :  { %v2178_v53 = vadd.f32 %v2138_v63, %v2104_v35 }
 0x597   :  { %v2116_v37 = vpop.permute.xlu1 %2115 }
 0x598   :  { %v2181_v11 = vadd.f32 %v2178_v53, %v2175_v7  ;;  %v2122_v2 = vsel %vm499_vm15, %v2116_v37, %v4648_v45  ;;  %v2123_v58 = vsel %vm499_vm15, %v2120_v61, %v2116_v37  ;;  %v2082_v12 = vpop.permute.xlu0 %2081 }
 0x599   :  { %v2134_v27 = vmul.f32 %v2133_v39, %v2122_v2  ;;  %v2136_v54 = vmul.f32 %v2133_v39, %v2123_v58  ;;  %v2088_v57 = vsel %vm464_vm4, %v2082_v12, %v4698_v16  ;;  %v2089_v22 = vsel %vm464_vm4, %v4688_v1, %v2082_v12  ;;  %v2250_v58 = vld [vmem:[#allocation7] sm:$0xff] }
 0x59a   :  { %v2400_v48 = vmul.f32 -1.442695, %v2181_v11  ;;  %v2100_v0 = vmul.f32 %v2099_v4, %v2088_v57  ;;  %v2102_v43 = vmul.f32 %v2099_v4, %v2089_v22 }
 0x59b   :  { %v2137_v28 = vadd.f32 %v2134_v27, %v2130_v20  ;;  %v2139_v45 = vadd.f32 %v2136_v54, %v2132_v24  ;;  %v2261_v54 = vld [vmem:[#allocation7 + $0x8] sm:$0xff] }
 0x59c   :  { %2420 = vpow2.f32 %v2400_v48  ;;  %v2103_v44 = vadd.f32 %v2100_v0, %v2096_v56  ;;  %v2105_v8 = vadd.f32 %v2102_v43, %v2098_v52 }
 0x59e   :  { %v2177_v59 = vadd.f32 %v2137_v28, %v2103_v44  ;;  %v2179_v5 = vadd.f32 %v2139_v45, %v2105_v8 }
 0x5a0   :  { %v2180_v46 = vadd.f32 %v2177_v59, %v2174_v6  ;;  %v2182_v29 = vadd.f32 %v2179_v5, %v4686_v47 }
 0x5a2   :  { %v2421_v40 = vpop.eup %2420  ;;  %v2399_v16 = vmul.f32 -1.442695, %v2180_v46  ;;  %v2401_v30 = vmul.f32 -1.442695, %v2182_v29 }
 0x5a3   :  { %v2193_v26 = vadd.f32 1.0, %v2421_v40 }
 0x5a4   :  { %2422 = vpow2.f32 %v2399_v16 }
 0x5a5   :  { %2424 = vrcp.f32 %v2193_v26  ;;  %v2221_v3 = vand.u32 2147483648, %v2193_v26  ;;  %vm2215_vm14 = vweird.f32 %v2193_v26  ;;  %v2219_v17 = vand.u32 2147483647, %v2193_v26 }
 0x5a6   :  { %2426 = vpow2.f32 %v2401_v30 }
 0x5a7   :  { %v2222_v25 = vor.u32 1.1754944e-38, %v2221_v3  ;;  %vm2220_vm1 = vcmp.eq.f32.partialorder %v2219_v17, 8.507059e+37 }
 0x5aa   :  { %v2423_v38 = vpop.eup %2422 }
 0x5ab   :  { %v2425_v1 = vpop.eup %2424  ;;  %v2192_v4 = vadd.f32 1.0, %v2423_v38 }
 0x5ac   :  { %v2427_v21 = vpop.eup %2426  ;;  %v2211_v18 = vmul.f32 %v2425_v1, %v2193_v26  ;;  %vm2216_vm13 = vweird.f32 %v2425_v1 }
 0x5ad   :  { %v2194_v60 = vadd.f32 1.0, %v2427_v21  ;;  %2428 = vrcp.f32 %v2192_v4  ;;  %vm2217_vm15 = vmor %vm2215_vm14, %vm2216_vm13  ;;  %v2204_v32 = vand.u32 2147483647, %v2192_v4  ;;  %v2206_v49 = vand.u32 2147483648, %v2192_v4 }
 0x5ae   :  { %v2212_v39 = vsub.f32 1.0, %v2211_v18  ;;  %vm2200_vm4 = vweird.f32 %v2192_v4 }
 0x5af   :  { %2430 = vrcp.f32 %v2194_v60  ;;  %v2236_v41 = vand.u32 2147483648, %v2194_v60  ;;  %v2234_v35 = vand.u32 2147483647, %v2194_v60  ;;  %vm2205_vm8 = vcmp.eq.f32.partialorder %v2204_v32, 8.507059e+37 }
 0x5b0   :  { %v2213_v15 = vmul.f32 %v2425_v1, %v2212_v39  ;;  %v2207_v63 = vor.u32 1.1754944e-38, %v2206_v49  ;;  %vm2230_vm9 = vweird.f32 %v2194_v60 }
 0x5b1   :  { %v2237_v50 = vor.u32 1.1754944e-38, %v2236_v41  ;;  %vm2235_vm11 = vcmp.eq.f32.partialorder %v2234_v35, 8.507059e+37 }
 0x5b2   :  { %v2214_v10 = vadd.f32 %v2425_v1, %v2213_v15 }
 0x5b3   :  { %v2429_v47 = vpop.eup %2428 }
 0x5b4   :  { %v2196_v61 = vmul.f32 %v2429_v47, %v2192_v4  ;;  %v2218_v19 = vsel %vm2217_vm15, %v2425_v1, %v2214_v10  ;;  %vm2201_vm3 = vweird.f32 %v2429_v47 }
 0x5b5   :  { %v2431_v42 = vpop.eup %2430  ;;  %v2223_v55 = vsel %vm2220_vm1, %v2222_v25, %v2218_v19  ;;  %vm2202_vm7 = vmor %vm2200_vm4, %vm2201_vm3 }
 0x5b6   :  { %v2197_v14 = vsub.f32 1.0, %v2196_v61  ;;  %v2226_v34 = vmul.f32 %v2431_v42, %v2194_v60  ;;  %vm2231_vm6 = vweird.f32 %v2431_v42  ;;  %v2243_v9 = vrot.slane %v2223_v55, 6 }
 0x5b7   :  { %vm2232_vm10 = vmor %vm2230_vm9, %vm2231_vm6 }
 0x5b8   :  { %v2198_v13 = vmul.f32 %v2429_v47, %v2197_v14  ;;  %v2227_v33 = vsub.f32 1.0, %v2226_v34 }
 0x5ba   :  { %v2199_v23 = vadd.f32 %v2429_v47, %v2198_v13  ;;  %v2228_v36 = vmul.f32 %v2431_v42, %v2227_v33 }
 0x5bc   :  { %v2203_v31 = vsel %vm2202_vm7, %v2429_v47, %v2199_v23  ;;  %v2229_v6 = vadd.f32 %v2431_v42, %v2228_v36 }
 0x5bd   :  { %v2208_v7 = vsel %vm2205_vm8, %v2207_v63, %v2203_v31 }
 0x5be   :  { %v2233_v62 = vsel %vm2232_vm10, %v2431_v42, %v2229_v6  ;;  %v2245_v53 = vsel %vm218_vm2, %v2208_v7, %v2243_v9 }
 0x5bf   :  { %v2238_v51 = vsel %vm2235_vm11, %v2237_v50, %v2233_v62 }
 0x5c0   :  { %v2244_v20 = vrot.slane %v2238_v51, 4 }
 0x5c2   :  { %v2246_v24 = vsel %vm177_vm0, %v2245_v53, %v2244_v20 }
 0x5c3   :  { %2248 = vst [vmem:[#allocation4] sm:$0x3f] %v2246_v24 }
 0x5ca   :  { %v2249_v37 = vld [vmem:[#allocation4] ss:$2 sm:$0x3]  ;;  %v2260_v56 = vld [vmem:[#allocation4 + $0x1] ss:$2 sm:$0x3] }
 0x5cb   :  { %v2253_v11 = vperm.slane %v2249_v37, 1  ;;  %v2264_v2 = vperm.slane %v2260_v56, 1  ;;  %v2252_v12 = vperm.slane %v2249_v37, 0  ;;  %v2263_v57 = vperm.slane %v2260_v56, 0 }
 0x5cd   :  { %v2254_v27 = vrot.slane %v2253_v11, 4  ;;  %v2265_v22 = vrot.slane %v2264_v2, 4 }
 0x5cf   :  { %v2255_v52 = vsel %vm177_vm0, %v2252_v12, %v2254_v27  ;;  %v2266_v48 = vsel %vm177_vm0, %v2263_v57, %v2265_v22 }
 0x5d0   :  { %v2257_v0 = vmul.f32 %v2255_v52, %v2250_v58  ;;  %v2268_v43 = vmul.f32 %v2266_v48, %v2261_v54 }
 0x5d2   :  { %2258 = vst [vmem:[#allocation10] sm:$0xff] %v2257_v0 }
 0x5d3   :  { %2270 = vst [vmem:[#allocation10 + $0x8] sm:$0xff] %v2268_v43 }
 0x5d4   :  { %2283 = dma.vmem_to_hbm [thread:$0]  %s2276_s7, 256, %s2278_s10, [#allocation9], %s2500_s18, %s2500_s18, %s2501_s19  }
 0x5d5   :  { %2496 = dma.done.wait [#allocation9], 256  }
 0x5d6   :  { %2497 = vsyncadd [#allocation9], 4294967040 }
 0x5d7   :  { %2288 = vsyncpa [#allocation8], 1 }
 0x5d8   :  { %2289 = vsyncpa [#allocation9], 1 }

</bundles_post_ra>
